<compile_context>
chip_gen: v7x
topology: tpu7x:2x2x1
jax: 0.10.0
libtpu: 0.0.40
codegen_flags: <defaults>
</compile_context>

<pallas_src>
import functools

import jax
import jax.numpy as jnp
from jax import lax
from jax.experimental import pallas as pl
from jax.experimental.pallas import tpu as pltpu


# ----------------------------------------------------------------------------
# Fused Pallas kernel: full IntermediateDnCNN stack for one batch element
# ----------------------------------------------------------------------------
def _ffdnet_fused_kernel(x_ref, w_mid_ref, shift_ref, w_last_ref, o_ref,
                         buf_ref, *, H, W, cin_p, cout_p, mid, n_mid):
    """Per grid step (one batch element):
       x_ref:      (1, H, W, cin_p)         bf16 downsampled input + noise map
       w_mid_ref:  (n_mid, 9*mid, mid)      bf16 (BN scale folded, layer-0 cin
                                                  zero-padded to mid)
       shift_ref:  (n_mid, 1, mid)          f32 folded BN shift (0 for layer 0)
       w_last_ref: (9*mid, cout_p)          bf16 last conv (cout padded to 8x)
       o_ref:      (1, H, W, cout_p)        f32 last-conv output
       buf_ref:    (2, H+2, W+16, mid)      bf16 ping-pong activation buffers
                   (interior at rows 1..H, columns 8..8+W-1; halo at row 0,
                    row H+1, column 7 and column 8+W)
    """
    Hp, Wp = H + 2, W + 16
    K9 = 9 * mid
    bf16, f32 = jnp.bfloat16, jnp.float32

    # ---- zero ONLY the halo ring (O(perimeter), not O(area)). ------------
    # Columns [0:8] / [W+8:W+16] cover the left/right halo, rows 0 and H+1
    # cover the top/bottom halo; every other buffer element read by a conv is
    # written by the producing layer (or the padded input store) first.
    buf_ref[:, 0:1, :, :] = jnp.zeros((2, 1, Wp, mid), bf16)
    buf_ref[:, H + 1:H + 2, :, :] = jnp.zeros((2, 1, Wp, mid), bf16)
    buf_ref[:, :, 0:8, :] = jnp.zeros((2, Hp, 8, mid), bf16)
    buf_ref[:, :, W + 8:W + 16, :] = jnp.zeros((2, Hp, 8, mid), bf16)

    # ---- input: pad to mid channels in-register, single full-width store --
    # (initializes ALL interior channels of buf0, so the zero-padded layer-0
    #  weights can never hit stale/NaN VMEM.)
    x0 = jnp.concatenate(
        [x_ref[0], jnp.zeros((H, W, mid - cin_p), bf16)], axis=-1)
    buf_ref[0, 1:H + 1, 8:8 + W, :] = x0

    def im2col(src):
        """Full 3x3 im2col patch: (H*W, 9*mid) bf16 from ping-pong buffer src."""
        cols = [buf_ref[src, dy:dy + H, 7 + dx:7 + dx + W, :]
                for dy in range(3) for dx in range(3)]
        return jnp.concatenate(cols, axis=-1).reshape(H * W, K9)

    # ---- layers 0 .. n_mid-1: one fat K=576 matmul + folded-BN shift + ReLU
    def body(l, src):
        dst = 1 - src
        acc = jnp.dot(im2col(src), w_mid_ref[l], preferred_element_type=f32)
        acc = jnp.maximum(acc + shift_ref[l], 0.0)
        buf_ref[dst, 1:H + 1, 8:8 + W, :] = (
            acc.astype(bf16).reshape(H, W, mid))
        return dst

    src = lax.fori_loop(0, n_mid, body, jnp.int32(0))

    # ---- final conv (peeled): mid -> cout_p, no BN, no ReLU; f32 output ---
    acc = jnp.dot(im2col(src), w_last_ref[...], preferred_element_type=f32)
    o_ref[...] = acc.reshape(1, H, W, cout_p)


# ----------------------------------------------------------------------------
# Glue: FFDNet pixel (un)shuffling, matching the PyTorch helpers
#   downsampled channel index = c*4 + 2*dy + dx, concatenated after the
#   noise map; upsample sends channel c*4 + 2*dy + dx to offset (dy, dx).
# ----------------------------------------------------------------------------
def concat_input_noise_map(x, noise_sigma):
    """x: (N, C, H, W), noise_sigma: (N,) -> (N, C + 4*C, H/2, W/2) NCHW."""
    N, C, H, W = x.shape
    Hd, Wd = H // 2, W // 2
    xr = x.reshape(N, C, Hd, 2, Wd, 2)
    xr = jnp.transpose(xr, (0, 1, 3, 5, 2, 4))            # (N, C, dy, dx, Hd, Wd)
    down = xr.reshape(N, 4 * C, Hd, Wd)
    noise = jnp.broadcast_to(noise_sigma.reshape(N, 1, 1, 1), (N, C, Hd, Wd))
    return jnp.concatenate([noise, down], axis=1)


def upsample_features(h):
    """h: (N, 4*C, Hd, Wd) NCHW -> (N, C, 2*Hd, 2*Wd)."""
    N, Cin, Hd, Wd = h.shape
    C = Cin // 4
    hr = h.reshape(N, C, 2, 2, Hd, Wd)                    # (N, C, dy, dx, Hd, Wd)
    hr = jnp.transpose(hr, (0, 1, 4, 2, 5, 3))            # (N, C, Hd, dy, Wd, dx)
    return hr.reshape(N, C, 2 * Hd, 2 * Wd)


# ----------------------------------------------------------------------------
# Deterministic parameter construction (FFDNet shapes from __init__)
# ----------------------------------------------------------------------------
def init_ffdnet_params(key, num_input_channels):
    if num_input_channels == 1:
        mid, nconv, cin, cout = 64, 15, 5, 4
    elif num_input_channels == 3:
        mid, nconv, cin, cout = 96, 12, 15, 12
    else:
        raise ValueError("Invalid number of input features")

    cin_p = cin + (-cin) % 8          # downsampled input channels padded to x8
    cout_p = cout + (-cout) % 8       # output channels padded to x8
    n_mid = nconv - 1                 # ReLU layers: first conv + (nconv-2) BN convs
    n_bn = nconv - 2
    eps = 1e-5                        # nn.BatchNorm2d default eps

    def he(k, shape):
        fan_in = shape[0] * shape[1] * shape[2]
        return jax.random.normal(k, shape, jnp.float32) * jnp.sqrt(2.0 / fan_in)

    keys = iter(jax.random.split(key, 8 * nconv))

    ref_layers = []                   # (w_hwio f32, scale, shift, relu) for JAX ref
    w_mid_list, shift_list = [], []

    # layer 0: conv(cin -> mid) + ReLU, no BN; zero-pad cin -> mid so it fits
    # the uniform K = 9*mid im2col matmul of the in-kernel loop.
    w0 = he(next(keys), (3, 3, cin, mid))
    ref_layers.append((w0, jnp.ones((mid,), jnp.float32),
                       jnp.zeros((mid,), jnp.float32), True))
    w0p = jnp.pad(w0, ((0, 0), (0, 0), (0, mid - cin), (0, 0)))
    w_mid_list.append(w0p.reshape(9 * mid, mid))
    shift_list.append(jnp.zeros((1, mid), jnp.float32))

    # middle convs (mid -> mid) + inference-folded BatchNorm + ReLU
    for _ in range(n_bn):
        w = he(next(keys), (3, 3, mid, mid))
        gamma = 1.0 + 0.1 * jax.random.normal(next(keys), (mid,), jnp.float32)
        beta = 0.1 * jax.random.normal(next(keys), (mid,), jnp.float32)
        rmean = 0.1 * jax.random.normal(next(keys), (mid,), jnp.float32)
        rvar = 1.0 + jax.random.uniform(next(keys), (mid,), jnp.float32,
                                        minval=0.0, maxval=0.1)
        scale = gamma / jnp.sqrt(rvar + eps)
        shift = beta - rmean * scale
        ref_layers.append((w, scale, shift, True))
        # Fold BN scale into conv output channels; keep shift as the bias.
        w_mid_list.append((w * scale[None, None, None, :]).reshape(9 * mid, mid))
        shift_list.append(shift.reshape(1, mid))

    # last conv (mid -> cout), no BN, no ReLU; zero-pad cout -> cout_p
    wl = he(next(keys), (3, 3, mid, cout))
    ref_layers.append((wl, jnp.ones((cout,), jnp.float32),
                       jnp.zeros((cout,), jnp.float32), False))
    wl_p = jnp.pad(wl, ((0, 0), (0, 0), (0, 0), (0, cout_p - cout)))

    params = dict(
        w_mid=jnp.stack(w_mid_list).astype(jnp.bfloat16),    # (n_mid, 9*mid, mid)
        shift=jnp.stack(shift_list),                         # (n_mid, 1, mid) f32
        w_last=wl_p.reshape(9 * mid, cout_p).astype(jnp.bfloat16),
    )
    meta = dict(cin=cin, cin_p=cin_p, cout=cout, cout_p=cout_p,
                mid=mid, n_mid=n_mid)
    return params, ref_layers, meta


# ----------------------------------------------------------------------------
# Full forward (fused Pallas kernel) and a pure-JAX f32 reference
# ----------------------------------------------------------------------------
def ffdnet_forward(x, noise_sigma, params, meta):
    """x: (N, C, H, W) NCHW, noise_sigma: (N,) -> (N, C, H, W)."""
    N, C, H, W = x.shape
    if H % 2 != 0 or W % 2 != 0:
        raise ValueError("FFDNet requires even H and W for the space-to-depth step")
    Hd, Wd = H // 2, W // 2
    cin, cin_p = meta["cin"], meta["cin_p"]
    cout, cout_p = meta["cout"], meta["cout_p"]
    mid, n_mid = meta["mid"], meta["n_mid"]

    concat = concat_input_noise_map(x, noise_sigma)            # (N, cin, Hd, Wd)
    h = jnp.transpose(concat, (0, 2, 3, 1))                    # NHWC
    h = jnp.pad(h, ((0, 0), (0, 0), (0, 0), (0, cin_p - cin))).astype(jnp.bfloat16)

    kern = functools.partial(_ffdnet_fused_kernel, H=Hd, W=Wd, cin_p=cin_p,
                             cout_p=cout_p, mid=mid, n_mid=n_mid)

    out = pl.pallas_call(
        kern,
        out_shape=jax.ShapeDtypeStruct((N, Hd, Wd, cout_p), jnp.float32),
        grid_spec=pltpu.PrefetchScalarGridSpec(
            num_scalar_prefetch=0,
            grid=(N,),
            in_specs=[
                pl.BlockSpec((1, Hd, Wd, cin_p), lambda n: (n, 0, 0, 0)),
                pl.BlockSpec((n_mid, 9 * mid, mid), lambda n: (0, 0, 0)),
                pl.BlockSpec((n_mid, 1, mid), lambda n: (0, 0, 0)),
                pl.BlockSpec((9 * mid, cout_p), lambda n: (0, 0)),
            ],
            out_specs=pl.BlockSpec((1, Hd, Wd, cout_p), lambda n: (n, 0, 0, 0)),
            scratch_shapes=[pltpu.VMEM((2, Hd + 2, Wd + 16, mid), jnp.bfloat16)],
        ),
        compiler_params=pltpu.CompilerParams(
            dimension_semantics=("parallel",),
            vmem_limit_bytes=64 * 1024 * 1024,
        ),
    )(h, params["w_mid"], params["shift"], params["w_last"])

    feat = out[..., :cout]                                     # drop channel padding
    return upsample_features(jnp.transpose(feat, (0, 3, 1, 2)))


def ffdnet_forward_ref(x, noise_sigma, ref_layers, meta):
    """Pure-JAX f32 reference matching the PyTorch forward semantics."""
    del meta
    concat = concat_input_noise_map(x, noise_sigma)
    h = jnp.transpose(concat, (0, 2, 3, 1)).astype(jnp.float32)
    for (w, scale, shift, relu) in ref_layers:
        h = lax.conv_general_dilated(
            h, w, window_strides=(1, 1), padding="SAME",
            dimension_numbers=("NHWC", "HWIO", "NHWC"),
            precision=lax.Precision.HIGHEST)
        h = h * scale + shift
        if relu:
            h = jnp.maximum(h, 0.0)
    return upsample_features(jnp.transpose(h, (0, 3, 1, 2)))


# ----------------------------------------------------------------------------
if __name__ == "__main__":
    key = jax.random.PRNGKey(0)
    k_param, k_x = jax.random.split(key)

    num_input_channels = 1            # FFDNet grayscale variant (5 -> 64 x15 -> 4)
    params, ref_layers, meta = init_ffdnet_params(k_param, num_input_channels)

    N, C, H, W = 2, num_input_channels, 16, 16
    x = jax.random.normal(k_x, (N, C, H, W), jnp.float32)
    noise_sigma = jnp.array([0.08, 0.15], jnp.float32)

    fwd = jax.jit(lambda xx, ss: ffdnet_forward(xx, ss, params, meta))
    out = jax.block_until_ready(fwd(x, noise_sigma))

    assert out.shape == (N, C, H, W), out.shape
    assert bool(jnp.all(jnp.isfinite(out)))

    ref = ffdnet_forward_ref(x, noise_sigma, ref_layers, meta)
    denom = float(jnp.max(jnp.abs(ref))) + 1e-6
    rel_err = float(jnp.max(jnp.abs(out - ref))) / denom
    assert rel_err < 5e-2, f"relative error vs reference: {rel_err}"

    print("KERNEL_OK")
</pallas_src>

<mosaic_0001>
module attributes {stable_mosaic.version = 11 : i64} {
  func.func @_ffdnet_fused_kernel(%arg0: i32, %arg1: memref<1x8x8x8xbf16, #tpu.memory_space<vmem>>, %arg2: memref<14x576x64xbf16, #tpu.memory_space<vmem>>, %arg3: memref<14x1x64xf32, #tpu.memory_space<vmem>>, %arg4: memref<576x8xbf16, #tpu.memory_space<vmem>>, %arg5: memref<1x8x8x8xf32, #tpu.memory_space<vmem>>, %arg6: memref<2x10x24x64xbf16, #tpu.memory_space<vmem>>) attributes {dimension_semantics = [#tpu.dimension_semantics<parallel>], iteration_bounds = array<i64: 2>, scalar_prefetch = 0 : i64, scratch_operands = 1 : i64, tpu.core_type = #tpu.core_type<tc>, window_params = [{transform_indices = @transform_0, window_bounds = array<i64: 1, 8, 8, 8>}, {pipeline_mode = #tpu.pipeline_mode<synchronous>, transform_indices = @transform_1, window_bounds = array<i64: 14, 576, 64>}, {pipeline_mode = #tpu.pipeline_mode<synchronous>, transform_indices = @transform_2, window_bounds = array<i64: 14, 1, 64>}, {pipeline_mode = #tpu.pipeline_mode<synchronous>, transform_indices = @transform_3, window_bounds = array<i64: 576, 8>}, {transform_indices = @transform_4, window_bounds = array<i64: 1, 8, 8, 8>}]} {
    %cst = arith.constant 0.000000e+00 : bf16
    %0 = vector.broadcast %cst : bf16 to vector<2x1x24x64xbf16>
    %c0 = arith.constant 0 : index
    %c0_0 = arith.constant 0 : index
    %c0_1 = arith.constant 0 : index
    %c0_2 = arith.constant 0 : index
    %1 = vector.load %arg6[%c0, %c0_0, %c0_1, %c0_2] : memref<2x10x24x64xbf16, #tpu.memory_space<vmem>>, vector<2x1x24x64xbf16>
    tpu.vector_store %arg6[%c0, %c0_0, %c0_1, %c0_2], %0 {strides = array<i32>} : memref<2x10x24x64xbf16, #tpu.memory_space<vmem>>, vector<2x1x24x64xbf16>,
    %cst_3 = arith.constant 0.000000e+00 : bf16
    %2 = vector.broadcast %cst_3 : bf16 to vector<2x1x24x64xbf16>
    %c0_4 = arith.constant 0 : index
    %c9 = arith.constant 9 : index
    %c0_5 = arith.constant 0 : index
    %c0_6 = arith.constant 0 : index
    %3 = vector.load %arg6[%c0_4, %c9, %c0_5, %c0_6] : memref<2x10x24x64xbf16, #tpu.memory_space<vmem>>, vector<2x1x24x64xbf16>
    tpu.vector_store %arg6[%c0_4, %c9, %c0_5, %c0_6], %2 {strides = array<i32>} : memref<2x10x24x64xbf16, #tpu.memory_space<vmem>>, vector<2x1x24x64xbf16>,
    %cst_7 = arith.constant 0.000000e+00 : bf16
    %4 = vector.broadcast %cst_7 : bf16 to vector<2x10x8x64xbf16>
    %c0_8 = arith.constant 0 : index
    %c0_9 = arith.constant 0 : index
    %c0_10 = arith.constant 0 : index
    %c0_11 = arith.constant 0 : index
    %5 = vector.load %arg6[%c0_8, %c0_9, %c0_10, %c0_11] : memref<2x10x24x64xbf16, #tpu.memory_space<vmem>>, vector<2x10x8x64xbf16>
    tpu.vector_store %arg6[%c0_8, %c0_9, %c0_10, %c0_11], %4 {strides = array<i32>} : memref<2x10x24x64xbf16, #tpu.memory_space<vmem>>, vector<2x10x8x64xbf16>,
    %cst_12 = arith.constant 0.000000e+00 : bf16
    %6 = vector.broadcast %cst_12 : bf16 to vector<2x10x8x64xbf16>
    %c0_13 = arith.constant 0 : index
    %c0_14 = arith.constant 0 : index
    %c16 = arith.constant 16 : index
    %c0_15 = arith.constant 0 : index
    %7 = vector.load %arg6[%c0_13, %c0_14, %c16, %c0_15] : memref<2x10x24x64xbf16, #tpu.memory_space<vmem>>, vector<2x10x8x64xbf16>
    tpu.vector_store %arg6[%c0_13, %c0_14, %c16, %c0_15], %6 {strides = array<i32>} : memref<2x10x24x64xbf16, #tpu.memory_space<vmem>>, vector<2x10x8x64xbf16>,
    %c0_16 = arith.constant 0 : index
    %c0_17 = arith.constant 0 : index
    %c0_18 = arith.constant 0 : index
    %c0_19 = arith.constant 0 : index
    %8 = vector.load %arg1[%c0_16, %c0_17, %c0_18, %c0_19] : memref<1x8x8x8xbf16, #tpu.memory_space<vmem>>, vector<1x8x8x8xbf16>
    %9 = vector.shape_cast %8 : vector<1x8x8x8xbf16> to vector<8x8x8xbf16>
    %cst_20 = arith.constant 0.000000e+00 : bf16
    %10 = vector.broadcast %cst_20 : bf16 to vector<8x8x56xbf16>
    %11 = tpu.concatenate %9, %10 in 2 : vector<8x8x8xbf16>, vector<8x8x56xbf16> -> vector<8x8x64xbf16>
    %c0_21 = arith.constant 0 : index
    %c1 = arith.constant 1 : index
    %c8 = arith.constant 8 : index
    %c0_22 = arith.constant 0 : index
    %12 = vector.load %arg6[%c0_21, %c1, %c8, %c0_22] : memref<2x10x24x64xbf16, #tpu.memory_space<vmem>>, vector<1x8x8x64xbf16>
    %13 = vector.shape_cast %12 : vector<1x8x8x64xbf16> to vector<8x8x64xbf16>
    %14 = vector.shape_cast %11 : vector<8x8x64xbf16> to vector<1x8x8x64xbf16>
    tpu.vector_store %arg6[%c0_21, %c1, %c8, %c0_22], %14 {strides = array<i32>} : memref<2x10x24x64xbf16, #tpu.memory_space<vmem>>, vector<1x8x8x64xbf16>,
    %c0_i32 = arith.constant 0 : i32
    %c0_i32_23 = arith.constant 0 : i32
    %c14_i32 = arith.constant 14 : i32
    %15 = arith.addi %c0_i32_23, %c14_i32 : i32
    %c1_i32 = arith.constant 1 : i32
    %16 = scf.for %arg7 = %c0_i32_23 to %15 step %c1_i32 iter_args(%arg8 = %c0_i32) -> (i32)  : i32 {
      %c1_i32_57 = arith.constant 1 : i32
      %50 = arith.subi %c1_i32_57, %arg8 : i32
      %51 = arith.index_cast %arg8 : i32 to index
      %c0_58 = arith.constant 0 : index
      %c7_59 = arith.constant 7 : index
      %c0_60 = arith.constant 0 : index
      %52 = vector.load %arg6[%51, %c0_58, %c7_59, %c0_60] : memref<2x10x24x64xbf16, #tpu.memory_space<vmem>>, vector<1x8x8x64xbf16>
      %53 = vector.shape_cast %52 : vector<1x8x8x64xbf16> to vector<8x8x64xbf16>
      %54 = arith.index_cast %arg8 : i32 to index
      %c0_61 = arith.constant 0 : index
      %c8_62 = arith.constant 8 : index
      %c0_63 = arith.constant 0 : index
      %55 = vector.load %arg6[%54, %c0_61, %c8_62, %c0_63] : memref<2x10x24x64xbf16, #tpu.memory_space<vmem>>, vector<1x8x8x64xbf16>
      %56 = vector.shape_cast %55 : vector<1x8x8x64xbf16> to vector<8x8x64xbf16>
      %57 = arith.index_cast %arg8 : i32 to index
      %c0_64 = arith.constant 0 : index
      %c9_65 = arith.constant 9 : index
      %c0_66 = arith.constant 0 : index
      %58 = vector.load %arg6[%57, %c0_64, %c9_65, %c0_66] : memref<2x10x24x64xbf16, #tpu.memory_space<vmem>>, vector<1x8x8x64xbf16>
      %59 = vector.shape_cast %58 : vector<1x8x8x64xbf16> to vector<8x8x64xbf16>
      %60 = arith.index_cast %arg8 : i32 to index
      %c1_67 = arith.constant 1 : index
      %c7_68 = arith.constant 7 : index
      %c0_69 = arith.constant 0 : index
      %61 = vector.load %arg6[%60, %c1_67, %c7_68, %c0_69] : memref<2x10x24x64xbf16, #tpu.memory_space<vmem>>, vector<1x8x8x64xbf16>
      %62 = vector.shape_cast %61 : vector<1x8x8x64xbf16> to vector<8x8x64xbf16>
      %63 = arith.index_cast %arg8 : i32 to index
      %c1_70 = arith.constant 1 : index
      %c8_71 = arith.constant 8 : index
      %c0_72 = arith.constant 0 : index
      %64 = vector.load %arg6[%63, %c1_70, %c8_71, %c0_72] : memref<2x10x24x64xbf16, #tpu.memory_space<vmem>>, vector<1x8x8x64xbf16>
      %65 = vector.shape_cast %64 : vector<1x8x8x64xbf16> to vector<8x8x64xbf16>
      %66 = arith.index_cast %arg8 : i32 to index
      %c1_73 = arith.constant 1 : index
      %c9_74 = arith.constant 9 : index
      %c0_75 = arith.constant 0 : index
      %67 = vector.load %arg6[%66, %c1_73, %c9_74, %c0_75] : memref<2x10x24x64xbf16, #tpu.memory_space<vmem>>, vector<1x8x8x64xbf16>
      %68 = vector.shape_cast %67 : vector<1x8x8x64xbf16> to vector<8x8x64xbf16>
      %69 = arith.index_cast %arg8 : i32 to index
      %c2_76 = arith.constant 2 : index
      %c7_77 = arith.constant 7 : index
      %c0_78 = arith.constant 0 : index
      %70 = vector.load %arg6[%69, %c2_76, %c7_77, %c0_78] : memref<2x10x24x64xbf16, #tpu.memory_space<vmem>>, vector<1x8x8x64xbf16>
      %71 = vector.shape_cast %70 : vector<1x8x8x64xbf16> to vector<8x8x64xbf16>
      %72 = arith.index_cast %arg8 : i32 to index
      %c2_79 = arith.constant 2 : index
      %c8_80 = arith.constant 8 : index
      %c0_81 = arith.constant 0 : index
      %73 = vector.load %arg6[%72, %c2_79, %c8_80, %c0_81] : memref<2x10x24x64xbf16, #tpu.memory_space<vmem>>, vector<1x8x8x64xbf16>
      %74 = vector.shape_cast %73 : vector<1x8x8x64xbf16> to vector<8x8x64xbf16>
      %75 = arith.index_cast %arg8 : i32 to index
      %c2_82 = arith.constant 2 : index
      %c9_83 = arith.constant 9 : index
      %c0_84 = arith.constant 0 : index
      %76 = vector.load %arg6[%75, %c2_82, %c9_83, %c0_84] : memref<2x10x24x64xbf16, #tpu.memory_space<vmem>>, vector<1x8x8x64xbf16>
      %77 = vector.shape_cast %76 : vector<1x8x8x64xbf16> to vector<8x8x64xbf16>
      %78 = tpu.concatenate %53, %56, %59, %62, %65, %68, %71, %74, %77 in 2 : vector<8x8x64xbf16>, vector<8x8x64xbf16>, vector<8x8x64xbf16>, vector<8x8x64xbf16>, vector<8x8x64xbf16>, vector<8x8x64xbf16>, vector<8x8x64xbf16>, vector<8x8x64xbf16>, vector<8x8x64xbf16> -> vector<8x8x576xbf16>
      %79 = vector.shape_cast %78 : vector<8x8x576xbf16> to vector<64x576xbf16>
      %80 = arith.index_cast %arg7 : i32 to index
      %c0_85 = arith.constant 0 : index
      %c0_86 = arith.constant 0 : index
      %81 = vector.load %arg2[%80, %c0_85, %c0_86] : memref<14x576x64xbf16, #tpu.memory_space<vmem>>, vector<1x576x64xbf16>
      %82 = vector.shape_cast %81 : vector<1x576x64xbf16> to vector<576x64xbf16>
      %cst_87 = arith.constant dense<0.000000e+00> : vector<64x64xf32>
      %83 = tpu.matmul %79, %82, %cst_87 {dimension_numbers = #tpu.dot_dimension_numbers<[1], [0], [0], [1], [0, 0, 1, 1], [], []>} : vector<64x576xbf16>, vector<576x64xbf16>, vector<64x64xf32> -> vector<64x64xf32>
      %84 = arith.index_cast %arg7 : i32 to index
      %c0_88 = arith.constant 0 : index
      %c0_89 = arith.constant 0 : index
      %85 = vector.load %arg3[%84, %c0_88, %c0_89] : memref<14x1x64xf32, #tpu.memory_space<vmem>>, vector<1x1x64xf32>
      %86 = vector.shape_cast %85 : vector<1x1x64xf32> to vector<1x64xf32>
      %87 = vector.broadcast %86 : vector<1x64xf32> to vector<64x64xf32>
      %88 = arith.addf %83, %87 : vector<64x64xf32>
      %cst_90 = arith.constant 0.000000e+00 : f32
      %89 = vector.broadcast %cst_90 : f32 to vector<64x64xf32>
      %90 = arith.maximumf %88, %89 : vector<64x64xf32>
      %91 = arith.truncf %90 : vector<64x64xf32> to vector<64x64xbf16>
      %92 = vector.shape_cast %91 : vector<64x64xbf16> to vector<8x8x64xbf16>
      %93 = arith.index_cast %50 : i32 to index
      %c1_91 = arith.constant 1 : index
      %c8_92 = arith.constant 8 : index
      %c0_93 = arith.constant 0 : index
      %94 = vector.load %arg6[%93, %c1_91, %c8_92, %c0_93] : memref<2x10x24x64xbf16, #tpu.memory_space<vmem>>, vector<1x8x8x64xbf16>
      %95 = vector.shape_cast %94 : vector<1x8x8x64xbf16> to vector<8x8x64xbf16>
      %96 = vector.shape_cast %92 : vector<8x8x64xbf16> to vector<1x8x8x64xbf16>
      tpu.vector_store %arg6[%93, %c1_91, %c8_92, %c0_93], %96 {strides = array<i32>} : memref<2x10x24x64xbf16, #tpu.memory_space<vmem>>, vector<1x8x8x64xbf16>,
      scf.yield %50 : i32
    }
    %c14_i32_24 = arith.constant 14 : i32
    %17 = arith.index_cast %16 : i32 to index
    %c0_25 = arith.constant 0 : index
    %c7 = arith.constant 7 : index
    %c0_26 = arith.constant 0 : index
    %18 = vector.load %arg6[%17, %c0_25, %c7, %c0_26] : memref<2x10x24x64xbf16, #tpu.memory_space<vmem>>, vector<1x8x8x64xbf16>
    %19 = vector.shape_cast %18 : vector<1x8x8x64xbf16> to vector<8x8x64xbf16>
    %20 = arith.index_cast %16 : i32 to index
    %c0_27 = arith.constant 0 : index
    %c8_28 = arith.constant 8 : index
    %c0_29 = arith.constant 0 : index
    %21 = vector.load %arg6[%20, %c0_27, %c8_28, %c0_29] : memref<2x10x24x64xbf16, #tpu.memory_space<vmem>>, vector<1x8x8x64xbf16>
    %22 = vector.shape_cast %21 : vector<1x8x8x64xbf16> to vector<8x8x64xbf16>
    %23 = arith.index_cast %16 : i32 to index
    %c0_30 = arith.constant 0 : index
    %c9_31 = arith.constant 9 : index
    %c0_32 = arith.constant 0 : index
    %24 = vector.load %arg6[%23, %c0_30, %c9_31, %c0_32] : memref<2x10x24x64xbf16, #tpu.memory_space<vmem>>, vector<1x8x8x64xbf16>
    %25 = vector.shape_cast %24 : vector<1x8x8x64xbf16> to vector<8x8x64xbf16>
    %26 = arith.index_cast %16 : i32 to index
    %c1_33 = arith.constant 1 : index
    %c7_34 = arith.constant 7 : index
    %c0_35 = arith.constant 0 : index
    %27 = vector.load %arg6[%26, %c1_33, %c7_34, %c0_35] : memref<2x10x24x64xbf16, #tpu.memory_space<vmem>>, vector<1x8x8x64xbf16>
    %28 = vector.shape_cast %27 : vector<1x8x8x64xbf16> to vector<8x8x64xbf16>
    %29 = arith.index_cast %16 : i32 to index
    %c1_36 = arith.constant 1 : index
    %c8_37 = arith.constant 8 : index
    %c0_38 = arith.constant 0 : index
    %30 = vector.load %arg6[%29, %c1_36, %c8_37, %c0_38] : memref<2x10x24x64xbf16, #tpu.memory_space<vmem>>, vector<1x8x8x64xbf16>
    %31 = vector.shape_cast %30 : vector<1x8x8x64xbf16> to vector<8x8x64xbf16>
    %32 = arith.index_cast %16 : i32 to index
    %c1_39 = arith.constant 1 : index
    %c9_40 = arith.constant 9 : index
    %c0_41 = arith.constant 0 : index
    %33 = vector.load %arg6[%32, %c1_39, %c9_40, %c0_41] : memref<2x10x24x64xbf16, #tpu.memory_space<vmem>>, vector<1x8x8x64xbf16>
    %34 = vector.shape_cast %33 : vector<1x8x8x64xbf16> to vector<8x8x64xbf16>
    %35 = arith.index_cast %16 : i32 to index
    %c2 = arith.constant 2 : index
    %c7_42 = arith.constant 7 : index
    %c0_43 = arith.constant 0 : index
    %36 = vector.load %arg6[%35, %c2, %c7_42, %c0_43] : memref<2x10x24x64xbf16, #tpu.memory_space<vmem>>, vector<1x8x8x64xbf16>
    %37 = vector.shape_cast %36 : vector<1x8x8x64xbf16> to vector<8x8x64xbf16>
    %38 = arith.index_cast %16 : i32 to index
    %c2_44 = arith.constant 2 : index
    %c8_45 = arith.constant 8 : index
    %c0_46 = arith.constant 0 : index
    %39 = vector.load %arg6[%38, %c2_44, %c8_45, %c0_46] : memref<2x10x24x64xbf16, #tpu.memory_space<vmem>>, vector<1x8x8x64xbf16>
    %40 = vector.shape_cast %39 : vector<1x8x8x64xbf16> to vector<8x8x64xbf16>
    %41 = arith.index_cast %16 : i32 to index
    %c2_47 = arith.constant 2 : index
    %c9_48 = arith.constant 9 : index
    %c0_49 = arith.constant 0 : index
    %42 = vector.load %arg6[%41, %c2_47, %c9_48, %c0_49] : memref<2x10x24x64xbf16, #tpu.memory_space<vmem>>, vector<1x8x8x64xbf16>
    %43 = vector.shape_cast %42 : vector<1x8x8x64xbf16> to vector<8x8x64xbf16>
    %44 = tpu.concatenate %19, %22, %25, %28, %31, %34, %37, %40, %43 in 2 : vector<8x8x64xbf16>, vector<8x8x64xbf16>, vector<8x8x64xbf16>, vector<8x8x64xbf16>, vector<8x8x64xbf16>, vector<8x8x64xbf16>, vector<8x8x64xbf16>, vector<8x8x64xbf16>, vector<8x8x64xbf16> -> vector<8x8x576xbf16>
    %45 = vector.shape_cast %44 : vector<8x8x576xbf16> to vector<64x576xbf16>
    %c0_50 = arith.constant 0 : index
    %c0_51 = arith.constant 0 : index
    %46 = vector.load %arg4[%c0_50, %c0_51] : memref<576x8xbf16, #tpu.memory_space<vmem>>, vector<576x8xbf16>
    %cst_52 = arith.constant dense<0.000000e+00> : vector<64x8xf32>
    %47 = tpu.matmul %45, %46, %cst_52 {dimension_numbers = #tpu.dot_dimension_numbers<[1], [0], [0], [1], [0, 0, 1, 1], [], []>} : vector<64x576xbf16>, vector<576x8xbf16>, vector<64x8xf32> -> vector<64x8xf32>
    %48 = vector.shape_cast %47 : vector<64x8xf32> to vector<1x8x8x8xf32>
    %c0_53 = arith.constant 0 : index
    %c0_54 = arith.constant 0 : index
    %c0_55 = arith.constant 0 : index
    %c0_56 = arith.constant 0 : index
    %49 = vector.load %arg5[%c0_53, %c0_54, %c0_55, %c0_56] : memref<1x8x8x8xf32, #tpu.memory_space<vmem>>, vector<1x8x8x8xf32>
    tpu.vector_store %arg5[%c0_53, %c0_54, %c0_55, %c0_56], %48 {strides = array<i32>} : memref<1x8x8x8xf32, #tpu.memory_space<vmem>>, vector<1x8x8x8xf32>,
    return
  }
  func.func @transform_0(%arg0: i32) -> (i32, i32, i32, i32) {
    %c0_i32 = arith.constant 0 : i32
    %c0_i32_0 = arith.constant 0 : i32
    %c0_i32_1 = arith.constant 0 : i32
    %c0_i32_2 = arith.constant 0 : i32
    return %arg0, %c0_i32, %c0_i32_0, %c0_i32_1 : i32, i32, i32, i32
  }
  func.func @transform_1(%arg0: i32) -> (i32, i32, i32) {
    %c0_i32 = arith.constant 0 : i32
    %c0_i32_0 = arith.constant 0 : i32
    %c0_i32_1 = arith.constant 0 : i32
    %c0_i32_2 = arith.constant 0 : i32
    return %c0_i32, %c0_i32_0, %c0_i32_1 : i32, i32, i32
  }
  func.func @transform_2(%arg0: i32) -> (i32, i32, i32) {
    %c0_i32 = arith.constant 0 : i32
    %c0_i32_0 = arith.constant 0 : i32
    %c0_i32_1 = arith.constant 0 : i32
    %c0_i32_2 = arith.constant 0 : i32
    return %c0_i32, %c0_i32_0, %c0_i32_1 : i32, i32, i32
  }
  func.func @transform_3(%arg0: i32) -> (i32, i32) {
    %c0_i32 = arith.constant 0 : i32
    %c0_i32_0 = arith.constant 0 : i32
    %c0_i32_1 = arith.constant 0 : i32
    return %c0_i32, %c0_i32_0 : i32, i32
  }
  func.func @transform_4(%arg0: i32) -> (i32, i32, i32, i32) {
    %c0_i32 = arith.constant 0 : i32
    %c0_i32_0 = arith.constant 0 : i32
    %c0_i32_1 = arith.constant 0 : i32
    %c0_i32_2 = arith.constant 0 : i32
    return %arg0, %c0_i32, %c0_i32_0, %c0_i32_1 : i32, i32, i32, i32
  }
}

</mosaic_0001>

<bundles_post_ra>
// kernel: _lambda_.1
= control target key start
LH: loop header
LB: loop body
LE: loop exit
PB: predicated region body
PF: predicated region fallthrough
CT: control target
= control target key end

     0   :  { %9 = vsyncpa [#allocation4], 0  ;;  %s7071_s0 = inlined_call_operand.hbm [shape: bf16[2,8,8,8], index: 0, kind: input, shape index: {}]   ;;  %s7072_s1 = inlined_call_operand.hbm [shape: bf16[14,576,64], index: 1, kind: input, shape index: {}]   ;;  %s7073_s2 = inlined_call_operand.hbm [shape: f32[14,1,64], index: 2, kind: input, shape index: {}]   ;;  %s7074_s3 = inlined_call_operand.hbm [shape: bf16[576,8], index: 3, kind: input, shape index: {}]   ;;  %s7075_s4 = inlined_call_operand.hbm [shape: f32[2,8,8,8], index: 4, kind: output, shape index: {}]  }
   0x1   :  { %11 = vsyncpa [#allocation4 + $0x1], 0 }
   0x2   :  { %12 = vsyncpa [#allocation7], 0 }
   0x3   :  { %13 = vsyncpa [#allocation10], 0 }
   0x4   :  { %14 = vsyncpa [#allocation5], 0 }
   0x5   :  { %16 = vsyncpa [#allocation5 + $0x1], 0  ;;  %s5381_s15 = smov 0   ;;  %s5383_s16 = smov 0  }
   0x6   :  { %s5385_s17 = smov 0   ;;  %s5387_s18 = smov 0  }
   0x7 LB: > { %s5402_s19 = sadd.s32 4294967295, %s5332_s18   ;;  %s4028_s20 = sadd.s32 4294967294, %s5332_s18   ;;  %s5332_s18 = sphi %s5387_s18, %s7245_s18   ;;  %s5328_s17 = sphi %s5385_s17, %s7244_s17   ;;  %s5324_s16 = sphi %s5383_s16, %s7243_s16   ;;  %s5320_s15 = sphi %s5381_s15, %s7242_s15  }
   0x8   : > { %p42_p0 = scmp.ne.s32.totalorder %s5324_s16, %s5320_s15  ;;  %p7076_p1 = scmp.eq.s32.totalorder %s5402_s19, 0 }
   0x9   : > { %p135_p3 = scmp.eq.s32.totalorder %s4028_s20, 1  ;;  %p4029_p5 = scmp.ge.s32.totalorder %s5332_s18, 1 }
   0xa   : > { %p5411_p4 = por %p7076_p1, %p42_p0  ;;  %p142_p7 = scmp.lt.s32.totalorder %s5332_s18, 3 }
   0xb   : > { %p5416_p6 = por %p135_p3, %p42_p0  ;;  %s5342_s24 = smov [#allocation6]  }
   0xc   : > { %s7112_s21 = scalar_select %p5411_p4, 1, 0 }
   0xd   : > { %s7113_s22 = scalar_select %p5416_p6, 1, 0 }
   0xe   : > { %p5421_p8 = pnand %p4029_p5, %p142_p7  ;;  %s154_s25 = sshll.u32 %s5342_s24, 4  ;;  %s5425_s25 = int_to_ptr.vmem [resolvable:$true] %s154_s25 }
   0xf   : > { %s5343_s27 = smov [#allocation8]   ;;  %s5136_s5 = scalar_lea.hbm %s7072_s1, 64512 }
  0x10   : > { %s7114_s23 = scalar_select %p5421_p8, 1, 0 }
  0x11   : > { %p4830_p9 = pneg %p5421_p8  ;;  %s167_s28 = sshll.u32 %s5343_s27, 4  ;;  %s5436_s28 = int_to_ptr.vmem [resolvable:$true] %s167_s28 }
  0x12   : > { %p5137_p12 = scmp.ne.s32.totalorder %s7072_s1, %s5136_s5  ;;  %p5143_p5 = scmp.lt.u32.totalorder %s5136_s5, %s7072_s1 }
  0x13   : > { %p5432_p11 = pnand %p4830_p9, %p7076_p1 }
  0x15   : > { %p5446_p13 = pneg %p5432_p11 }
  0x17   : > { %p5139_p0 = pnand %p5446_p13, %p5137_p12 }
  0x19   : > { %p5140_p3 = pneg %p5139_p0 }
  0x1b   : > { %p5145_p7 = pnand %p5143_p5, %p5140_p3 }
  0x1d   : > { %5148 = shalt.err (!%p5145_p7)
}
  0x1e   : > { %s5149_s11 = scalar_lea.vmem %s5425_s25, 64512  ;;  %p5157_p2 = scmp.lt.s32.totalorder %s5425_s25, %s5425_s25 }
  0x1f   : > { %p5150_p9 = scmp.ne.s32.totalorder %s5425_s25, %s5149_s11  ;;  %p5158_p6 = scmp.lt.s32.totalorder %s5149_s11, %s5149_s11 }
  0x21   : > { %p5152_p10 = pnand %p5150_p9, %p5446_p13  ;;  %p5159_p12 = por %p5158_p6, %p5157_p2 }
  0x23   : > { %p5153_p1 = pneg %p5152_p10 }
  0x25   : > { %p5160_p0 = pnand %p5159_p12, %p5153_p1 }
  0x27   : > { %5163 = shalt.err (!%p5160_p0)
}
  0x28   : > { %s7077_s12 = smov 64   ;;  %s5345_s13 = smov 4  }
  0x29   : > { %4833 = dma.hbm_to_vmem [thread:$0]  (!%p5432_p11), %s7072_s1, 64512, %s5425_s25, [#allocation7], %s7077_s12, %s7077_s12, %s5345_s13  }
  0x2a   : > { %s5164_s29 = scalar_lea.hbm %s7073_s2, 224 }
  0x2b   : > { %p5165_p1 = scmp.ne.s32.totalorder %s7073_s2, %s5164_s29  ;;  %p5171_p10 = scmp.lt.u32.totalorder %s5164_s29, %s7073_s2 }
  0x2d   : > { %p5167_p2 = pnand %p5165_p1, %p5446_p13 }
  0x2f   : > { %p5168_p6 = pneg %p5167_p2 }
  0x31   : > { %p5173_p3 = pnand %p5171_p10, %p5168_p6 }
  0x33   : > { %5176 = shalt.err (!%p5173_p3)
}
  0x34   : > { %s5177_s25 = scalar_lea.vmem %s5436_s28, 224  ;;  %p5185_p12 = scmp.lt.s32.totalorder %s5436_s28, %s5436_s28 }
  0x35   : > { %p5178_p5 = scmp.ne.s32.totalorder %s5436_s28, %s5177_s25  ;;  %p5186_p0 = scmp.lt.s32.totalorder %s5177_s25, %s5177_s25 }
  0x37   : > { %p5180_p7 = pnand %p5178_p5, %p5446_p13  ;;  %p5187_p1 = por %p5186_p0, %p5185_p12 }
  0x39   : > { %p5181_p9 = pneg %p5180_p7 }
  0x3b   : > { %p5188_p2 = pnand %p5187_p1, %p5181_p9 }
  0x3d   : > { %5191 = shalt.err (!%p5188_p2)
}
  0x3e   : > { %s5346_s9 = smov 16   ;;  %s5347_s10 = smov 1  }
  0x3f   : > { %4836 = dma.hbm_to_vmem [thread:$0]  (!%p5432_p11), %s7073_s2, 224, %s5436_s28, [#allocation7], %s5346_s9, %s5346_s9, %s5347_s10  }
  0x40   : > { %s5348_s20 = smov [#allocation9]   ;;  %s5494_s27 = sadd.s32 1, %s5332_s18  }
  0x41   : > { %s180_s24 = sshll.u32 %s5348_s20, 4  ;;  %s5192_s5 = scalar_lea.hbm %s7074_s3, 4608  ;;  %s181_s24 = int_to_ptr.vmem [resolvable:$true] %s180_s24 }
  0x42   : > { %p5193_p6 = scmp.ne.s32.totalorder %s7074_s3, %s5192_s5  ;;  %p5199_p5 = scmp.lt.u32.totalorder %s5192_s5, %s7074_s3 }
  0x44   : > { %p5195_p10 = pnand %p5193_p6, %p5446_p13 }
  0x46   : > { %p5196_p3 = pneg %p5195_p10 }
  0x48   : > { %p5201_p7 = pnand %p5199_p5, %p5196_p3 }
  0x4a   : > { %5204 = shalt.err (!%p5201_p7)
}
  0x4b   : > { %s5205_s28 = scalar_lea.vmem %s181_s24, 4608  ;;  %p5213_p1 = scmp.lt.s32.totalorder %s181_s24, %s181_s24 }
  0x4c   : > { %p5206_p9 = scmp.ne.s32.totalorder %s181_s24, %s5205_s28  ;;  %p5214_p2 = scmp.lt.s32.totalorder %s5205_s28, %s5205_s28 }
  0x4e   : > { %p5208_p12 = pnand %p5206_p9, %p5446_p13  ;;  %p5215_p4 = por %p5214_p2, %p5213_p1 }
  0x50   : > { %p5209_p0 = pneg %p5208_p12 }
  0x52   : > { %p5216_p8 = pnand %p5215_p4, %p5209_p0 }
  0x54   : > { %5219 = shalt.err (!%p5216_p8)
}
  0x55   : > { %s7117_s9 = smov 64   ;;  %s26_s8 = ssub.s32 %s5332_s18, %s5494_s27 }
  0x56   : > { %4839 = dma.hbm_to_vmem [thread:$0]  (!%p5432_p11), %s7074_s3, 4608, %s181_s24, [#allocation10], %s7117_s9, %s7117_s9, %s5345_s13  }
  0x57   : > { %s29_s26 = sadd.s32 1, %s5328_s17  ;;  %p27_p4 = scmp.eq.s32.totalorder %s26_s8, 0 }
  0x58   : > { %p36_p8 = scmp.ne.s32.totalorder %s5328_s17, %s5324_s16  ;;  %p37_p13 = scmp.eq.s32.totalorder %s5332_s18, 0 }
  0x59   : > { %p4851_p6 = scmp.lt.s32.totalorder %s5332_s18, 2  ;;  %p7118_p3 = scmp.eq.s32.totalorder %s5402_s19, 1 }
  0x5a   : > { %s5525_s11 = scalar_select %p27_p4, %s5328_s17, %s29_s26  }
  0x5b   : > { %p38_p10 = por %p37_p13, %p36_p8  ;;  %p5529_p5 = por %p7118_p3, %p36_p8 }
  0x5c   : > { %s194_s20 = sand.u32 1, %s5328_s17   ;;  %s4577_s29 = sshll.u32 %s5332_s18, 9 }
  0x5d   : > { %s4034_s30 = sshll.u32 %s194_s20, 5  ;;  %s5538_s24 = scalar_lea.hbm %s7071_s0, %s4577_s29 }
  0x5e   : > { %s198_s7 = scalar_lea.vmem [#allocation3], %s4034_s30  ;;  %p5540_p11 = pnand %p4851_p6, %p38_p10 }
  0x5f   : > { %s205_s25 = sshll.u32 %s198_s7, 4  ;;  %s5546_s12 = scalar_lea.sflag [#allocation4], %s194_s20  ;;  %s5544_s25 = int_to_ptr.vmem [resolvable:$true] %s205_s25 }
  0x60   : > { %s5220_s10 = scalar_lea.hbm %s5538_s24, 512  ;;  %p5222_p9 = pneg %p5540_p11 }
  0x61   : > { %p5221_p7 = scmp.ne.s32.totalorder %s5538_s24, %s5220_s10  ;;  %s5225_s29 = scalar_lea.hbm %s7071_s0, 1024 }
  0x62   : > { %p5226_p1 = scmp.lt.u32.totalorder %s5538_s24, %s7071_s0  ;;  %p5227_p2 = scmp.lt.u32.totalorder %s5225_s29, %s5220_s10 }
  0x63   : > { %p5223_p12 = pnand %p5222_p9, %p5221_p7  ;;  %p5229_p8 = scmp.lt.u32.totalorder %s5220_s10, %s5538_s24 }
  0x64   : > { %p5228_p4 = por %p5227_p2, %p5226_p1 }
  0x65   : > { %p5224_p0 = pneg %p5223_p12 }
  0x66   : > { %p5230_p13 = por %p5229_p8, %p5228_p4 }
  0x68   : > { %p5231_p6 = pnand %p5230_p13, %p5224_p0 }
  0x6a   : > { %5234 = shalt.err (!%p5231_p6)
}
  0x6b   : > { %s5235_s20 = scalar_lea.vmem %s5544_s25, 512  ;;  %s5349_s6 = smov [#allocation3]  }
  0x6c   : > { %p5236_p10 = scmp.ne.s32.totalorder %s5544_s25, %s5235_s20  ;;  %s5240_s7 = sshll.u32 %s5349_s6, 4  ;;  %s5241_s7 = int_to_ptr.vmem [resolvable:$false] %s5240_s7 }
  0x6d   : > { %s5242_s8 = scalar_lea.vmem %s5241_s7, 1024  ;;  %p5243_p12 = scmp.lt.s32.totalorder %s5544_s25, %s5241_s7 }
  0x6e   : > { %p5238_p3 = pnand %p5236_p10, %p5222_p9  ;;  %p5244_p1 = scmp.lt.s32.totalorder %s5242_s8, %s5235_s20 }
  0x70   : > { %p5239_p7 = pneg %p5238_p3  ;;  %p5245_p2 = por %p5244_p1, %p5243_p12 }
  0x72   : > { %p5246_p4 = pnand %p5245_p2, %p5239_p7 }
  0x74   : > { %5249 = shalt.err (!%p5246_p4)
}
  0x75   : > { %4843 = dma.hbm_to_vmem [thread:$0]  (!%p5540_p11), %s5538_s24, 512, %s5544_s25, %s5546_s12, %s7117_s9, %s7117_s9, %s5345_s13  }
  0x76   : > { %p7121_p9 = scmp.ne.s32.totalorder %s7114_s23, 0 }
  0x78   : > { %217 = sbr.rel (%p7121_p9) target bundleno = 1036 (0x40c), region = 36 }
  0x7f   : > { %s5580_s10 = sand.u32 1, %s5324_s16   ;;  %p7122_p0 = scmp.ne.s32.totalorder %s7112_s21, 0 }
  0x80   : > { %s4038_s26 = sshll.u32 %s5580_s10, 5  ;;  %s220_s29 = scalar_lea.sflag [#allocation4], %s5580_s10 }
  0x81   : > { %s5584_s30 = scalar_lea.vmem [#allocation3], %s4038_s26 }
  0x82   : > { %5303 = dma.done.wait (%p7122_p0), %s220_s29, 512  }
  0x83   : > { %5305 = vsyncadd (%p7122_p0), %s220_s29, 4294966784  ;;  %p7123_p11 = scmp.eq.s32.totalorder %s5402_s19, 0 }
  0x85   : > { %5307 = dma.done.wait (%p7123_p11), [#allocation7], 64736   ;;  %p7124_p8 = pmov %p7123_p11 }
  0x87   : > { %5309 = vsyncadd (%p7124_p8), [#allocation7], 4294902560  ;;  %p7125_p13 = pmov %p7124_p8 }
  0x88   : > { %p7126_p6 = pmov %p7124_p8 }
  0x89   : > { %5311 = dma.done.wait (%p7125_p13), [#allocation10], 4608  }
  0x8a   : > { %5313 = vsyncadd (%p7126_p6), [#allocation10], 4294962688  ;;  %s4042_s23 = sshll.u32 %s5580_s10, 6  ;;  %vm261_vm0 = vcmask 519168   ;;  %v5350_v0 = vmov 0   ;;  %vm323_vm1 = vcmask 64512  }
  0x8b   : > { %262 = vst.msk [vmem:[#allocation2] sm:$0xf] %vm261_vm0, %v5350_v0  ;;  %263 = vst.msk [vmem:[#allocation2 + $0x4] sm:$0xf] %vm261_vm0, %v5350_v0  ;;  %v315_v1 = vld [vmem:[%s5584_s30] sm:$0xf] }
  0x8c   : > { %264 = vst.msk [vmem:[#allocation2 + $0x8] sm:$0xf] %vm261_vm0, %v5350_v0  ;;  %265 = vst.msk [vmem:[#allocation2 + $0x78] sm:$0xf] %vm261_vm0, %v5350_v0  ;;  %v316_v2 = vld [vmem:[%s5584_s30 + $0x4] sm:$0xf] }
  0x8d   : > { %266 = vst.msk [vmem:[#allocation2 + $0x7c] sm:$0xf] %vm261_vm0, %v5350_v0  ;;  %267 = vst.msk [vmem:[#allocation2 + $0x80] sm:$0xf] %vm261_vm0, %v5350_v0  ;;  %v317_v3 = vld [vmem:[%s5584_s30 + $0x8] sm:$0xf] }
  0x8e   : > { %269 = vst.msk [vmem:[#allocation2 + $0x6c] sm:$0xf] %vm261_vm0, %v5350_v0  ;;  %270 = vst.msk [vmem:[#allocation2 + $0x70] sm:$0xf] %vm261_vm0, %v5350_v0  ;;  %v326_v4 = vsel %vm323_vm1, %v315_v1, 0  ;;  %v329_v5 = vsel %vm323_vm1, %v316_v2, 0 }
  0x8f   : > { %271 = vst.msk [vmem:[#allocation2 + $0x74] sm:$0xf] %vm261_vm0, %v5350_v0  ;;  %272 = vst.msk [vmem:[#allocation2 + $0xe4] sm:$0xf] %vm261_vm0, %v5350_v0  ;;  %v332_v6 = vsel %vm323_vm1, %v317_v3, 0  ;;  %s5677_s21 = scalar_lea.vmem [#allocation11], %s4042_s23 }
  0x90   : > { %273 = vst.msk [vmem:[#allocation2 + $0xe8] sm:$0xf] %vm261_vm0, %v5350_v0  ;;  %274 = vst.msk [vmem:[#allocation2 + $0xec] sm:$0xf] %vm261_vm0, %v5350_v0  ;;  %v318_v7 = vld [vmem:[%s5584_s30 + $0xc] sm:$0xf] }
  0x91   : > { %276 = vst.msk [vmem:[#allocation2 + $0xc] sm:$0xf] %vm261_vm0, %v5350_v0  ;;  %277 = vst.msk [vmem:[#allocation2 + $0x18] sm:$0xf] %vm261_vm0, %v5350_v0  ;;  %v335_v8 = vsel %vm323_vm1, %v318_v7, 0  ;;  %s5679_s13 = smov 0  }
  0x92   : > { %278 = vst.msk [vmem:[#allocation2 + $0x24] sm:$0xf] %vm261_vm0, %v5350_v0  ;;  %279 = vst.msk [vmem:[#allocation2 + $0x30] sm:$0xf] %vm261_vm0, %v5350_v0  ;;  %v319_v9 = vld [vmem:[%s5584_s30 + $0x10] sm:$0xf] }
  0x93   : > { %280 = vst.msk [vmem:[#allocation2 + $0x3c] sm:$0xf] %vm261_vm0, %v5350_v0  ;;  %281 = vst.msk [vmem:[#allocation2 + $0x48] sm:$0xf] %vm261_vm0, %v5350_v0  ;;  %v320_v10 = vld [vmem:[%s5584_s30 + $0x14] sm:$0xf] }
  0x94   : > { %282 = vst.msk [vmem:[#allocation2 + $0x54] sm:$0xf] %vm261_vm0, %v5350_v0  ;;  %283 = vst.msk [vmem:[#allocation2 + $0x60] sm:$0xf] %vm261_vm0, %v5350_v0  ;;  %v338_v11 = vsel %vm323_vm1, %v319_v9, 0  ;;  %v341_v12 = vsel %vm323_vm1, %v320_v10, 0 }
  0x95   : > { %286 = vst.msk [vmem:[#allocation2 + $0x84] sm:$0xf] %vm261_vm0, %v5350_v0  ;;  %287 = vst.msk [vmem:[#allocation2 + $0x90] sm:$0xf] %vm261_vm0, %v5350_v0  ;;  %v321_v13 = vld [vmem:[%s5584_s30 + $0x18] sm:$0xf] }
  0x96   : > { %288 = vst.msk [vmem:[#allocation2 + $0x9c] sm:$0xf] %vm261_vm0, %v5350_v0  ;;  %289 = vst.msk [vmem:[#allocation2 + $0xa8] sm:$0xf] %vm261_vm0, %v5350_v0  ;;  %v322_v14 = vld [vmem:[%s5584_s30 + $0x1c] sm:$0xf] }
  0x97   : > { %290 = vst.msk [vmem:[#allocation2 + $0xb4] sm:$0xf] %vm261_vm0, %v5350_v0  ;;  %291 = vst.msk [vmem:[#allocation2 + $0xc0] sm:$0xf] %vm261_vm0, %v5350_v0  ;;  %v344_v15 = vsel %vm323_vm1, %v321_v13, 0  ;;  %v347_v16 = vsel %vm323_vm1, %v322_v14, 0 }
  0x98   : > { %292 = vst.msk [vmem:[#allocation2 + $0xcc] sm:$0xf] %vm261_vm0, %v5350_v0  ;;  %293 = vst.msk [vmem:[#allocation2 + $0xd8] sm:$0xf] %vm261_vm0, %v5350_v0  ;;  %s5681_s9 = smov 0  }
  0x99   : > { %296 = vst.msk [vmem:[#allocation2 + $0x14] sm:$0xf] %vm261_vm0, %v5350_v0  ;;  %297 = vst.msk [vmem:[#allocation2 + $0x20] sm:$0xf] %vm261_vm0, %v5350_v0 }
  0x9a   : > { %298 = vst.msk [vmem:[#allocation2 + $0x2c] sm:$0xf] %vm261_vm0, %v5350_v0  ;;  %299 = vst.msk [vmem:[#allocation2 + $0x38] sm:$0xf] %vm261_vm0, %v5350_v0 }
  0x9b   : > { %300 = vst.msk [vmem:[#allocation2 + $0x44] sm:$0xf] %vm261_vm0, %v5350_v0  ;;  %301 = vst.msk [vmem:[#allocation2 + $0x50] sm:$0xf] %vm261_vm0, %v5350_v0 }
  0x9c   : > { %302 = vst.msk [vmem:[#allocation2 + $0x5c] sm:$0xf] %vm261_vm0, %v5350_v0  ;;  %303 = vst.msk [vmem:[#allocation2 + $0x68] sm:$0xf] %vm261_vm0, %v5350_v0 }
  0x9d   : > { %306 = vst.msk [vmem:[#allocation2 + $0x8c] sm:$0xf] %vm261_vm0, %v5350_v0  ;;  %307 = vst.msk [vmem:[#allocation2 + $0x98] sm:$0xf] %vm261_vm0, %v5350_v0 }
  0x9e   : > { %308 = vst.msk [vmem:[#allocation2 + $0xa4] sm:$0xf] %vm261_vm0, %v5350_v0  ;;  %309 = vst.msk [vmem:[#allocation2 + $0xb0] sm:$0xf] %vm261_vm0, %v5350_v0 }
  0x9f   : > { %310 = vst.msk [vmem:[#allocation2 + $0xbc] sm:$0xf] %vm261_vm0, %v5350_v0  ;;  %311 = vst.msk [vmem:[#allocation2 + $0xc8] sm:$0xf] %vm261_vm0, %v5350_v0 }
  0xa0   : > { %312 = vst.msk [vmem:[#allocation2 + $0xd4] sm:$0xf] %vm261_vm0, %v5350_v0  ;;  %313 = vst.msk [vmem:[#allocation2 + $0xe0] sm:$0xf] %vm261_vm0, %v5350_v0 }
  0xa1   : > { %275 = vst.msk [vmem:[#allocation2] sm:$0xf] %vm261_vm0, %v5350_v0  ;;  %284 = vst.msk [vmem:[#allocation2 + $0x6c] sm:$0xf] %vm261_vm0, %v5350_v0 }
  0xa2   : > { %285 = vst.msk [vmem:[#allocation2 + $0x78] sm:$0xf] %vm261_vm0, %v5350_v0  ;;  %294 = vst.msk [vmem:[#allocation2 + $0xe4] sm:$0xf] %vm261_vm0, %v5350_v0 }
  0xa3   : > { %295 = vst.msk [vmem:[#allocation2 + $0x8] sm:$0xf] %vm261_vm0, %v5350_v0  ;;  %304 = vst.msk [vmem:[#allocation2 + $0x74] sm:$0xf] %vm261_vm0, %v5350_v0 }
  0xa4   : > { %305 = vst.msk [vmem:[#allocation2 + $0x80] sm:$0xf] %vm261_vm0, %v5350_v0  ;;  %314 = vst.msk [vmem:[#allocation2 + $0xec] sm:$0xf] %vm261_vm0, %v5350_v0 }
  0xa5   : > { %350 = vst.msk [vmem:[#allocation2 + $0x10] sm:$0xf] %vm261_vm0, %v326_v4  ;;  %351 = vst.msk [vmem:[#allocation2 + $0x1c] sm:$0xf] %vm261_vm0, %v329_v5 }
  0xa6   : > { %352 = vst.msk [vmem:[#allocation2 + $0x28] sm:$0xf] %vm261_vm0, %v332_v6  ;;  %353 = vst.msk [vmem:[#allocation2 + $0x34] sm:$0xf] %vm261_vm0, %v335_v8 }
  0xa7   : > { %354 = vst.msk [vmem:[#allocation2 + $0x40] sm:$0xf] %vm261_vm0, %v338_v11  ;;  %355 = vst.msk [vmem:[#allocation2 + $0x4c] sm:$0xf] %vm261_vm0, %v341_v12 }
  0xa8   : > { %356 = vst.msk [vmem:[#allocation2 + $0x58] sm:$0xf] %vm261_vm0, %v344_v15  ;;  %357 = vst.msk [vmem:[#allocation2 + $0x64] sm:$0xf] %vm261_vm0, %v347_v16 }
  0xa9 LB: >> { %s4578_s24 = smul.u32 120, %s5336_s13  ;;  %s5351_s12 = smov 64   ;;  %vm943_vm2 = vcmask 523264   ;;  %vm1200_vm3 = vsmask.f32 256  ;;  %s5340_s9 = sphi %s5681_s9, %s363_s9   ;;  %s5336_s13 = sphi %s5679_s13, %s7201_s13  }
  0xaa   : >> { %s4579_s28 = smul.u32 288, %s5340_s9  ;;  %vm1201_vm4 = vsmask.f32 4368  ;;  %s1590_s20 = scalar_lea.vmem [#allocation8], %s5340_s9 }
  0xab   : >> { %s5690_s25 = scalar_lea.vmem [#allocation2], %s4578_s24  ;;  %vm6166_vm5 = vmor %vm1200_vm3, %vm1201_vm4  ;;  %s365_s6 = ssub.s32 1, %s5336_s13  }
  0xac   : >> { %s5740_s5 = scalar_lea.vmem [#allocation6], %s4579_s28  ;;  %s4308_s7 = smul.u32 120, %s365_s6 }
  0xad   : >> { %v4948_v57 = vld [vmem:[%s5740_s5 + $0x40] sm:$0xff]   ;;  %s363_s9 = sadd.s32 1, %s5340_s9   ;;  %s7201_s13 = smov %s365_s6 }
  0xae   : >> { %4590 = vmatprep.subr.bf16.mxu0 %v4948_v57  ;;  %s6406_s8 = scalar_lea.vmem [#allocation2], %s4308_s7  ;;  %p360_p10 = scmp.ge.s32.totalorder %s363_s9, 14  }
  0xaf   : >> { %v4045_v17 = vld [vmem:[%s5690_s25 + $0xc] sm:$0x8]  ;;  %v5694_v18 = vld [vmem:[%s5690_s25 + $0x10] sm:$0xf]  ;;  %v4061_v20 = vld [vmem:[%s5690_s25 + $0x14] sm:$0x1] }
  0xb0   : >> { %v4118_v19 = vcombine.low %v4045_v17, %v5694_v18  ;;  %v4047_v21 = vld [vmem:[%s5690_s25 + $0x18] sm:$0x8]  ;;  %v5701_v22 = vld [vmem:[%s5690_s25 + $0x1c] sm:$0xf]  ;;  %v4134_v23 = vcombine.low %v5694_v18, %v4061_v20  ;;  %v5705_v24 = vld [vmem:[%s5690_s25 + $0x4] sm:$0xf] }
  0xb1   : >> { %v4062_v25 = vld [vmem:[%s5690_s25 + $0x20] sm:$0x1]  ;;  %v5709_v26 = vld [vmem:[%s5690_s25 + $0x10] sm:$0xf]  ;;  %v4119_v27 = vcombine.low %v4047_v21, %v5701_v22  ;;  %v4102_v28 = vcombine.low %v5705_v24, %v5705_v24  ;;  %v5719_v31 = vld [vmem:[%s5690_s25 + $0x28] sm:$0xf] }
  0xb2   : >> { %647 = vrot.lane.b32.xlu1 %v4118_v19, %s5351_s12  ;;  %v4135_v29 = vcombine.low %v5701_v22, %v4062_v25  ;;  %v4103_v30 = vcombine.low %v5709_v26, %v5709_v26  ;;  %v5722_v32 = vld [vmem:[%s5690_s25 + $0x1c] sm:$0xf]  ;;  %v5725_v33 = vld [vmem:[%s5690_s25 + $0x28] sm:$0xf]  ;;  %v759_v34 = vrot.slane %v4134_v23, 5  ;;  %v4151_v35 = vcombine.low %v5719_v31, %v5719_v31  ;;  %s5352_s26 = smov (%p360_p10), 64  }
  0xb3   : >> { %v4150_v36 = vcombine.low %v5722_v32, %v5722_v32  ;;  %v4105_v37 = vcombine.low %v5725_v33, %v5725_v33  ;;  %v496_v38 = vshrl.u32 %v4102_v28, 16  ;;  %v499_v39 = vshll.u32 %v4102_v28, 16  ;;  %v5736_v50 = vld [vmem:[%s5690_s25 + $0x1c] sm:$0xf]  ;;  %v5748_v3 = vld [vmem:[%s5690_s25 + $0x40] sm:$0xf] }
  0xb4   : >> { %v760_v40 = vrot.slane %v4135_v29, 5  ;;  %v504_v41 = vshrl.u32 %v4103_v30, 16  ;;  %767 = vrot.lane.b32.xlu0 %v759_v34, %s5351_s12  ;;  %v507_v42 = vshll.u32 %v4103_v30, 16  ;;  %v840_v43 = vshrl.u32 %v4151_v35, 16  ;;  %v4064_v5 = vld [vmem:[%s5690_s25 + $0x38] sm:$0x1] }
  0xb5   : >> { %v843_v44 = vshll.u32 %v4151_v35, 16  ;;  %v832_v45 = vshrl.u32 %v4150_v36, 16  ;;  %v498_v46 = vrot.slane %v496_v38, 4  ;;  %v501_v47 = vrot.slane %v499_v39, 5  ;;  %v5752_v6 = vld [vmem:[%s5690_s25 + $0x34] sm:$0xf] }
  0xb6   : >> { %649 = vrot.lane.b32.xlu1 %v4119_v27, %s5351_s12  ;;  %v506_v48 = vrot.slane %v504_v41, 4  ;;  %v835_v49 = vshll.u32 %v4150_v36, 16  ;;  %v509_v51 = vrot.slane %v507_v42, 5  ;;  %v842_v52 = vrot.slane %v840_v43, 4  ;;  %v5755_v7 = vld [vmem:[%s5690_s25 + $0x40] sm:$0xf] }
  0xb7   : >> { %v845_v53 = vrot.slane %v843_v44, 5  ;;  %v502_v54 = vor.u32 %v501_v47, %v498_v46  ;;  %v520_v55 = vshrl.u32 %v4105_v37, 16  ;;  %v523_v56 = vshll.u32 %v4105_v37, 16  ;;  %7127 = vst [vmem:[#allocation16_spill] sm:$0xff] %v5755_v7  ;;  %v4051_v12 = vld [vmem:[%s5690_s25 + $0x30] sm:$0x8] }
  0xb8   : >> { %v834_v58 = vrot.slane %v832_v45, 4  ;;  %v837_v59 = vrot.slane %v835_v49, 5  ;;  %v4104_v60 = vcombine.low %v5736_v50, %v5736_v50  ;;  %v510_v61 = vor.u32 %v509_v51, %v506_v48  ;;  %v5763_v13 = vld [vmem:[%s5690_s25 + $0x34] sm:$0xf]  ;;  %v4049_v17 = vld [vmem:[%s5690_s25 + $0x24] sm:$0x8] }
  0xb9   : >> { %559 = vrot.lane.b32.xlu0 %v502_v54, %s5351_s12  ;;  %v846_v62 = vor.u32 %v845_v53, %v842_v52  ;;  %v522_v63 = vrot.slane %v520_v55, 4  ;;  %v525_v0 = vrot.slane %v523_v56, 5  ;;  %v4153_v11 = vcombine.low %v5748_v3, %v5748_v3  ;;  %v5775_v21 = vld [vmem:[%s5690_s25 + $0x28] sm:$0xf]  ;;  %v4063_v23 = vld [vmem:[%s5690_s25 + $0x2c] sm:$0x1] }
  0xba   : >> { %769 = vrot.lane.b32.xlu1 %v760_v40, %s5351_s12  ;;  %v512_v1 = vshrl.u32 %v4104_v60, 16  ;;  %v515_v2 = vshll.u32 %v4104_v60, 16  ;;  %v838_v4 = vor.u32 %v837_v59, %v834_v58  ;;  %v4137_v14 = vcombine.low %v5763_v13, %v4064_v5  ;;  %v5779_v28 = vld [vmem:[%s5690_s25 + $0x34] sm:$0xf]  ;;  %v4949_v42 = vld [vmem:[%s5740_s5] sm:$0xff]   ;;  %v4950_v43 = vld [vmem:[%s5740_s5 + $0x48] sm:$0xff]  }
  0xbb   : >> { %v526_v8 = vor.u32 %v525_v0, %v522_v63  ;;  %v4152_v15 = vcombine.low %v5752_v6, %v5752_v6  ;;  %v4107_v16 = vcombine.low %v5755_v7, %v5755_v7  ;;  %v4121_v20 = vcombine.low %v4051_v12, %v5763_v13  ;;  %7128 = vst [vmem:[#allocation17_spill] sm:$0xff] %v5779_v28  ;;  %v5790_v48 = vld [vmem:[%s5690_s25 + $0x58] sm:$0xf]  ;;  %v4951_v54 = vld [vmem:[%s5740_s5 + $0xc0] sm:$0xff]   ;;  %v5796_v55 = vld [vmem:[%s5690_s25 + $0x4c] sm:$0xf] }
  0xbc   : >> { %v514_v9 = vrot.slane %v512_v1, 4  ;;  %v517_v10 = vrot.slane %v515_v2, 5  ;;  %v856_v25 = vshrl.u32 %v4153_v11, 16  ;;  %v859_v27 = vshll.u32 %v4153_v11, 16  ;;  %4591 = vmatpush3.bf16.msra.mxu0 %v4949_v42  ;;  %v4952_v56 = vld [vmem:[%s5740_s5 + $0x8] sm:$0xff]   ;;  %4630 = vmatprep.subr.bf16.mxu1 %v4951_v54  ;;  %v4953_v58 = vld [vmem:[%s5740_s5 + $0x80] sm:$0xff]  }
  0xbd   : >> { %561 = vrot.lane.b32.xlu0 %v510_v61, %s5351_s12  ;;  %v762_v29 = vrot.slane %v4137_v14, 5  ;;  %v848_v30 = vshrl.u32 %v4152_v15, 16  ;;  %v851_v34 = vshll.u32 %v4152_v15, 16  ;;  %v536_v35 = vshrl.u32 %v4107_v16, 16  ;;  %4592 = vmatprep.subr.bf16.mxu0 %v4950_v43  ;;  %v4066_v57 = vld [vmem:[%s5690_s25 + $0x50] sm:$0x1] }
  0xbe   : >> { %897 = vrot.lane.b32.xlu1 %v846_v62, %s5351_s12  ;;  %v518_v19 = vor.u32 %v517_v10, %v514_v9  ;;  %v4120_v36 = vcombine.low %v4049_v17, %v5775_v21  ;;  %v4136_v37 = vcombine.low %v5775_v21, %v4063_v23  ;;  %v858_v38 = vrot.slane %v856_v25, 4  ;;  %v4055_v60 = vld [vmem:[%s5690_s25 + $0x48] sm:$0x8]  ;;  %v5803_v61 = vld [vmem:[%s5690_s25 + $0x58] sm:$0xf]  ;;  %v4954_v2 = vld [vmem:[%s5740_s5 + $0x50] sm:$0xff]   ;;  %4631 = vmatpush3.bf16.msra.mxu1 %v4953_v58 }
  0xbf   : >> { %v861_v39 = vrot.slane %v859_v27, 5  ;;  %v539_v40 = vshll.u32 %v4107_v16, 16  ;;  %v4106_v41 = vcombine.low %v5779_v28, %v5779_v28  ;;  %v850_v45 = vrot.slane %v848_v30, 4  ;;  %7129 = vst [vmem:[#allocation18_spill] sm:$0xff] %v5803_v61  ;;  %v5812_v5 = vld [vmem:[%s5690_s25 + $0x4c] sm:$0xf] }
  0xc0   : >> { %v761_v44 = vrot.slane %v4136_v37, 5  ;;  %v853_v46 = vrot.slane %v851_v34, 5  ;;  %v538_v47 = vrot.slane %v536_v35, 4  ;;  %4593 = vmatpush3.bf16.msra.mxu0 %v4952_v56  ;;  %v4155_v1 = vcombine.low %v5790_v48, %v5790_v48  ;;  %v4065_v9 = vld [vmem:[%s5690_s25 + $0x44] sm:$0x1]  ;;  %v4957_v15 = vld [vmem:[%s5740_s5 + $0x10] sm:$0xff]  }
  0xc1   : >> { %895 = vrot.lane.b32.xlu0 %v838_v4, %s5351_s12  ;;  %v862_v49 = vor.u32 %v861_v39, %v858_v38  ;;  %v541_v51 = vrot.slane %v539_v40, 5  ;;  %v528_v52 = vshrl.u32 %v4106_v41, 16  ;;  %v531_v53 = vshll.u32 %v4106_v41, 16  ;;  %v4955_v4 = vld [vmem:[%s5740_s5 + $0xc8] sm:$0xff]   ;;  %4594 = vmatprep.subr.bf16.mxu0 %v4954_v2  ;;  %v4053_v25 = vld [vmem:[%s5690_s25 + $0x3c] sm:$0x8] }
  0xc2   : >> { %565 = vrot.lane.b32.xlu1 %v526_v8, %s5351_s12  ;;  %v854_v59 = vor.u32 %v853_v46, %v850_v45  ;;  %v5815_v8 = vld [vmem:[%s5690_s25 + $0x40] sm:$0xf]  ;;  %v4154_v10 = vcombine.low %v5796_v55, %v5796_v55  ;;  %v5821_v11 = vld [vmem:[%s5690_s25 + $0x4c] sm:$0xf]  ;;  %4632 = vmatprep.subr.bf16.mxu1 %v4955_v4  ;;  %v4139_v12 = vcombine.low %v5812_v5, %v4066_v57  ;;  %v4960_v34 = vld [vmem:[%s5740_s5 + $0x58] sm:$0xff]   ;;  %s4589_s29 = sshll.u32 (%p360_p10), %s5402_s19, 10 }
  0xc3   : >> { %v542_v62 = vor.u32 %v541_v51, %v538_v47  ;;  %v530_v63 = vrot.slane %v528_v52, 4  ;;  %v533_v0 = vrot.slane %v531_v53, 5  ;;  %7130 = vst [vmem:[#allocation19_spill] sm:$0xff] %v5821_v11  ;;  %v4109_v14 = vcombine.low %v5803_v61, %v5803_v61  ;;  %v4958_v23 = vld [vmem:[%s5740_s5 + $0x88] sm:$0xff]   ;;  %v4961_v38 = vld [vmem:[%s5740_s5 + $0xd0] sm:$0xff]   ;;  %v4963_v43 = vld [vmem:[%s5740_s5 + $0x18] sm:$0xff]   ;;  %s7019_s9 = scalar_lea.hbm (%p360_p10), %s7075_s4, %s4589_s29 }
  0xc4   : >> { %v4123_v17 = vcombine.low %v4055_v60, %v5812_v5  ;;  %v4138_v27 = vcombine.low %v5815_v8, %v4065_v9  ;;  %4595 = vmatpush3.bf16.msra.mxu0 %v4957_v15  ;;  %v4108_v30 = vcombine.low %v5821_v11, %v5821_v11  ;;  %4633 = vmatpush3.bf16.msra.mxu1 %v4958_v23  ;;  %v764_v35 = vrot.slane %v4139_v12, 5  ;;  %v4964_v45 = vld [vmem:[%s5740_s5 + $0x90] sm:$0xff]   ;;  %v4966_v51 = vld [vmem:[%s5740_s5 + $0x60] sm:$0xff]   ;;  %v4967_v58 = vld [vmem:[%s5740_s5 + $0xd8] sm:$0xff]   ;;  %s3891_s30 = sshll.u32 (%p360_p10), %s5677_s21, 4  ;;  %s3878_s19 = scalar_lea.sflag (%p360_p10), [#allocation5], %s5580_s10  ;;  %s7021_s30 = int_to_ptr.vmem [resolvable:$true] %s3891_s30 }
  0xc5   : >> { %563 = vrot.lane.b32.xlu0 %v518_v19, %s5351_s12  ;;  %v534_v16 = vor.u32 %v533_v0, %v530_v63  ;;  %v872_v19 = vshrl.u32 %v4155_v1, 16  ;;  %v552_v37 = vshrl.u32 %v4109_v14, 16  ;;  %v4122_v39 = vcombine.low %v4053_v25, %v5815_v8  ;;  %4596 = vmatprep.subr.bf16.mxu0 %v4960_v34  ;;  %v5844_v52 = vld [vmem:[%s5690_s25 + $0x70] sm:$0xf]  ;;  %v4969_v60 = vld [vmem:[%s5740_s5 + $0x20] sm:$0xff]   ;;  %v4970_v63 = vld [vmem:[%s5740_s5 + $0x98] sm:$0xff]  }
  0xc6   : >> { %653 = vrot.lane.b32.xlu1 %v4121_v20, %s5351_s12  ;;  %v875_v20 = vshll.u32 %v4155_v1, 16  ;;  %v555_v42 = vshll.u32 %v4109_v14, 16  ;;  %4634 = vmatprep.subr.bf16.mxu1 %v4961_v38  ;;  %v544_v47 = vshrl.u32 %v4108_v30, 16  ;;  %7131 = vst [vmem:[#allocation20_spill] sm:$0xff] %v5844_v52  ;;  %v4059_v1 = vld [vmem:[%s5690_s25 + $0x60] sm:$0x8]  ;;  %v4157_v12 = vcombine.low %v5844_v52, %v5844_v52 }
  0xc7   : >> { %v874_v40 = vrot.slane %v872_v19, 4  ;;  %v554_v56 = vrot.slane %v552_v37, 4  ;;  %v4972_v2 = vld [vmem:[%s5740_s5 + $0x68] sm:$0xff]   ;;  %v5862_v14 = vld [vmem:[%s5690_s25 + $0x64] sm:$0xf]  ;;  %s5250_s24 = scalar_lea.vmem (%p360_p10), %s7021_s30, 1024 }
  0xc8   : >> { %v877_v41 = vrot.slane %v875_v20, 5  ;;  %4597 = vmatpush3.bf16.msra.mxu0 %v4963_v43  ;;  %4635 = vmatpush3.bf16.msra.mxu1 %v4964_v45  ;;  %v557_v57 = vrot.slane %v555_v42, 5  ;;  %v546_v0 = vrot.slane %v544_v47, 4  ;;  %v4973_v15 = vld [vmem:[%s5740_s5 + $0xe0] sm:$0xff]   ;;  %v4975_v20 = vld [vmem:[%s5740_s5 + $0x28] sm:$0xff]   ;;  %v888_v34 = vshrl.u32 %v4157_v12, 16  ;;  %p5251_p3 = scmp.ne.s32.totalorder (%p360_p10), %s7021_s30, %s5250_s24 }
  0xc9   : >> { %651 = vrot.lane.b32.xlu0 %v4120_v36, %s5351_s12  ;;  %v867_v36 = vshll.u32 %v4154_v10, 16  ;;  %4598 = vmatprep.subr.bf16.mxu0 %v4966_v51  ;;  %v4067_v23 = vld [vmem:[%s5690_s25 + $0x5c] sm:$0x1]  ;;  %v4979_v38 = vld [vmem:[%s5740_s5 + $0xe8] sm:$0xff]  }
  0xca   : >> { %773 = vrot.lane.b32.xlu1 %v762_v29, %s5351_s12  ;;  %v864_v29 = vshrl.u32 %v4154_v10, 16  ;;  %v878_v53 = vor.u32 %v877_v41, %v874_v40  ;;  %4636 = vmatprep.subr.bf16.mxu1 %v4967_v58  ;;  %v558_v9 = vor.u32 %v557_v57, %v554_v56  ;;  %v4981_v41 = vld [vmem:[%s5740_s5 + $0x30] sm:$0xff]   ;;  %v890_v43 = vrot.slane %v888_v34, 4  ;;  %v4984_v47 = vld [vmem:[%s5740_s5 + $0x78] sm:$0xff]   ;;  %p5252_p7 = pnand (%p360_p10), %p5251_p3, %p5529_p5 }
  0xcb   : >> { %v869_v54 = vrot.slane %v867_v36, 5  ;;  %v4978_v36 = vld [vmem:[%s5740_s5 + $0x70] sm:$0xff]   ;;  %v4987_v57 = vld [vmem:[%s5740_s5 + $0x38] sm:$0xff]  }
  0xcc   : >> { %v866_v46 = vrot.slane %v864_v29, 4  ;;  %4599 = vmatpush3.bf16.msra.mxu0 %v4969_v60  ;;  %4637 = vmatpush3.bf16.msra.mxu1 %v4970_v63  ;;  %v4988_v58 = vld [vmem:[%s5740_s5 + $0xb0] sm:$0xff]   ;;  %v4992_v63 = vld [vmem:[%s5740_s5 + $0xb8] sm:$0xff]   ;;  %p5253_p12 = pneg (%p360_p10), %p5252_p7 }
  0xcd   : >> { %771 = vrot.lane.b32.xlu0 %v761_v44, %s5351_s12  ;;  %v763_v44 = vrot.slane %v4138_v27, 5  ;;  %4600 = vmatprep.subr.bf16.mxu0 %v4972_v2  ;;  %v4976_v27 = vld [vmem:[%s5740_s5 + $0xa0] sm:$0xff]   ;;  %v4127_v2 = vcombine.low %v5701_v22, %v5701_v22  ;;  %v4130_v22 = vcombine.low %v5815_v8, %v5815_v8 }
  0xce   : >> { %901 = vrot.lane.b32.xlu1 %v862_v49, %s5351_s12  ;;  %v547_v49 = vshll.u32 %v4108_v30, 16  ;;  %v870_v4 = vor.u32 %v869_v54, %v866_v46  ;;  %4638 = vmatprep.subr.bf16.mxu1 %v4973_v15  ;;  %v4125_v30 = vcombine.low %v4059_v1, %v5862_v14  ;;  %v4982_v46 = vld [vmem:[%s5740_s5 + $0xa8] sm:$0xff]   ;;  %v4126_v1 = vcombine.low %v5694_v18, %v5694_v18 }
  0xcf   : >> { %v4131_v18 = vcombine.low %v5812_v5, %v5812_v5 }
  0xd0   : >> { %v549_v10 = vrot.slane %v547_v49, 5  ;;  %4601 = vmatpush3.bf16.msra.mxu0 %v4975_v20  ;;  %4639 = vmatpush3.bf16.msra.mxu1 %v4976_v27  ;;  %v4985_v49 = vld [vmem:[%s5740_s5 + $0xf0] sm:$0xff]  }
  0xd1   : >> { %899 = vrot.lane.b32.xlu0 %v854_v59, %s5351_s12  ;;  %v4068_v59 = vld [vmem:[%s5690_s25 + $0x68] sm:$0x1]  ;;  %4602 = vmatprep.subr.bf16.mxu0 %v4978_v36 }
  0xd2   : >> { %569 = vrot.lane.b32.xlu1 %v542_v62, %s5351_s12  ;;  %v5852_v62 = vld [vmem:[%s5690_s25 + $0x64] sm:$0xf]  ;;  %v4141_v19 = vcombine.low %v5862_v14, %v4068_v59  ;;  %v550_v29 = vor.u32 %v549_v10, %v546_v0  ;;  %4640 = vmatprep.subr.bf16.mxu1 %v4979_v38  ;;  %v4990_v59 = vld [vmem:[%s5740_s5 + $0xf8] sm:$0xff]   ;;  %v672_v10 = vshrl.u32 %v4126_v1, 16 }
  0xd3   : >> { %7132 = vst [vmem:[#allocation21_spill] sm:$0xff] %v5852_v62  ;;  %v4156_v25 = vcombine.low %v5852_v62, %v5852_v62  ;;  %v5897_v0 = vld [vmem:[%s5740_s5 + $0x100] sm:$0xff]  }
  0xd4   : >> { %v766_v37 = vrot.slane %v4141_v19, 5  ;;  %4603 = vmatpush3.bf16.msra.mxu0 %v4981_v41  ;;  %4641 = vmatpush3.bf16.msra.mxu1 %v4982_v46  ;;  %v680_v19 = vshrl.u32 %v4127_v2, 16  ;;  %v5918_v27 = vrot.slane %v672_v10, 4  ;;  %v707_v41 = vshll.u32 %v4130_v22, 16  ;;  %v5972_v10 = vld [vmem:[%s5690_s25 + $0x18] sm:$0x8] }
  0xd5   : >> { %567 = vrot.lane.b32.xlu0 %v534_v16, %s5351_s12  ;;  %v4057_v16 = vld [vmem:[%s5690_s25 + $0x54] sm:$0x8]  ;;  %v880_v40 = vshrl.u32 %v4156_v25, 16  ;;  %v883_v45 = vshll.u32 %v4156_v25, 16  ;;  %4604 = vmatprep.subr.bf16.mxu0 %v4984_v47  ;;  %v4128_v25 = vcombine.low %v5775_v21, %v5775_v21  ;;  %v388_v47 = vld [vmem:[%s5690_s25 + $0x2c] sm:$0x1] }
  0xd6   : >> { %657 = vrot.lane.b32.xlu1 %v4123_v17, %s5351_s12  ;;  %v5867_v17 = vld [vmem:[%s5690_s25 + $0x58] sm:$0xf]  ;;  %4642 = vmatprep.subr.bf16.mxu1 %v4985_v49  ;;  %v5926_v21 = vrot.slane %v680_v19, 4  ;;  %v387_v49 = vld [vmem:[%s5690_s25 + $0x20] sm:$0x1] }
  0xd7   : >> { %v4140_v42 = vcombine.low %v5867_v17, %v4067_v23  ;;  %v882_v54 = vrot.slane %v880_v40, 4  ;;  %v885_v56 = vrot.slane %v883_v45, 5  ;;  %v683_v23 = vshll.u32 %v4127_v2, 16 }
  0xd8   : >> { %4605 = vmatpush3.bf16.msra.mxu0 %v4987_v57  ;;  %4643 = vmatpush3.bf16.msra.mxu1 %v4988_v58  ;;  %v4132_v5 = vcombine.low %v5867_v17, %v5867_v17  ;;  %v691_v38 = vshll.u32 %v4128_v25, 16  ;;  %v704_v40 = vshrl.u32 %v4130_v22, 16  ;;  %v5951_v57 = vld [vmem:[%s5690_s25 + $0x24] sm:$0x8]  ;;  %v5954_v58 = vld [vmem:[%s5690_s25 + $0x18] sm:$0x8] }
  0xd9   : >> { %655 = vrot.lane.b32.xlu0 %v4122_v39, %s5351_s12  ;;  %v4124_v39 = vcombine.low %v4057_v16, %v5867_v17  ;;  %v765_v51 = vrot.slane %v4140_v42, 5  ;;  %v886_v60 = vor.u32 %v885_v56, %v882_v54  ;;  %4644 = vmatprep.subr.bf16.mxu1 %v4990_v59  ;;  %v675_v16 = vshll.u32 %v4126_v1, 16  ;;  %v5935_v42 = vld [vmem:[%s5690_s25] sm:$0x8]  ;;  %v390_v22 = vld [vmem:[%s5690_s25 + $0x44] sm:$0x1] }
  0xda   : >> { %777 = vrot.lane.b32.xlu1 %v764_v35, %s5351_s12  ;;  %v891_v35 = vshll.u32 %v4157_v12, 16  ;;  %4766 = vmatprep.subr.bf16.mxu0 %v5897_v0  ;;  %v4129_v12 = vcombine.low %v5763_v13, %v5763_v13  ;;  %v5932_v36 = vrot.slane %v683_v23, 5  ;;  %v6025_v54 = vld [vmem:[%s5690_s25 + $0x30] sm:$0x8]  ;;  %v6050_v23 = vld [vmem:[%s5690_s25 + $0x48] sm:$0x8] }
  0xdb   : >> { %7142 = vst [vmem:[#allocation31_spill] sm:$0xff] %v6050_v23 }
  0xdc   : >> { %4645 = vmatpush3.bf16.msra.mxu1 %v4992_v63  ;;  %v696_v13 = vshrl.u32 %v4129_v12, 16  ;;  %v5961_v63 = vld [vmem:[%s5690_s25 + $0x24] sm:$0x8] }
  0xdd   : >> { %775 = vrot.lane.b32.xlu0 %v763_v44, %s5351_s12  ;;  %v893_v44 = vrot.slane %v891_v35, 5  ;;  %4798 = vmatprep.subr.bf16.mxu1 %v5897_v0  ;;  %v5924_v35 = vrot.slane %v675_v16, 5 }
  0xde   : >> { %905 = vrot.lane.b32.xlu1 %v878_v53, %s5351_s12 }
  0xdf   : >> { %v894_v53 = vor.u32 %v893_v44, %v890_v43  ;;  %v5938_v43 = vld [vmem:[%s5690_s25 + $0xc] sm:$0x8]  ;;  %v5940_v44 = vrot.slane %v696_v13, 4 }
  0xe1   : >> { %903 = vrot.lane.b32.xlu0 %v870_v4, %s5351_s12  ;;  %v385_v4 = vld [vmem:[%s5690_s25 + $0x8] sm:$0x1] }
  0xe2   : >> { %573 = vrot.lane.b32.xlu1 %v558_v9, %s5351_s12  ;;  %v386_v9 = vld [vmem:[%s5690_s25 + $0x14] sm:$0x1]  ;;  %v4110_v15 = vcombine.low %v5705_v24, %v385_v4  ;;  %v5967_v4 = vrot.slane %v704_v40, 4  ;;  %v4087_v40 = vld [vmem:[%s5690_s25 + $0x2c] sm:$0x1] }
  0xe3   : >> { %v4111_v20 = vcombine.low %v5709_v26, %v386_v9  ;;  %v5969_v9 = vrot.slane %v707_v41, 5 }
  0xe4   : >> { %v5922_v34 = vrot.slane %v4110_v15, 5  ;;  %7135 = vst [vmem:[#allocation24_spill] sm:$0xff] %v5967_v4  ;;  %v4112_v15 = vcombine.low %v5736_v50, %v387_v49  ;;  %v392_v49 = vld [vmem:[%s5690_s25 + $0x5c] sm:$0x1] }
  0xe5   : >> { %571 = vrot.lane.b32.xlu0 %v550_v29, %s5351_s12  ;;  %v699_v29 = vshll.u32 %v4129_v12, 16  ;;  %v5930_v8 = vrot.slane %v4111_v20, 5  ;;  %7136 = vst [vmem:[#allocation25_spill] sm:$0xff] %v5969_v9  ;;  %v4113_v12 = vcombine.low %v5725_v33, %v388_v47  ;;  %v4086_v20 = vld [vmem:[%s5690_s25 + $0x20] sm:$0x1]  ;;  %v4117_v4 = vcombine.low %v5803_v61, %v392_v49 }
  0xe6   : >> { %661 = vrot.lane.b32.xlu1 %v4125_v30, %s5351_s12  ;;  %v4133_v30 = vcombine.low %v5862_v14, %v5862_v14  ;;  %v715_v14 = vshll.u32 %v4131_v18, 16  ;;  %v4088_v47 = vld [vmem:[%s5690_s25 + $0x38] sm:$0x1] }
  0xe7   : >> { %v5942_v17 = vrot.slane %v699_v29, 5  ;;  %v6020_v41 = vrot.slane %v4113_v12, 5 }
  0xe8   : >> { %v728_v45 = vshrl.u32 %v4133_v30, 16  ;;  %v731_v46 = vshll.u32 %v4133_v30, 16  ;;  %v5965_v2 = vrot.slane %v715_v14, 5  ;;  %v389_v14 = vld [vmem:[%s5690_s25 + $0x38] sm:$0x1] }
  0xe9   : >> { %659 = vrot.lane.b32.xlu0 %v4124_v39, %s5351_s12  ;;  %v712_v39 = vshrl.u32 %v4131_v18, 16  ;;  %v5986_v18 = vld [vmem:[%s5690_s25 + $0x3c] sm:$0x8]  ;;  %v6033_v30 = vld [vmem:[%s5690_s25 + $0x54] sm:$0x8] }
  0xea   : >> { %781 = vrot.lane.b32.xlu1 %v766_v37, %s5351_s12  ;;  %v688_v37 = vshrl.u32 %v4128_v25, 16  ;;  %7134 = vst [vmem:[#allocation23_spill] sm:$0xff] %v5965_v2  ;;  %v5976_v16 = vrot.slane %v728_v45, 4  ;;  %v5978_v19 = vrot.slane %v731_v46, 5  ;;  %v6009_v45 = vld [vmem:[%s5690_s25 + $0x3c] sm:$0x8]  ;;  %v4115_v46 = vcombine.low %v5755_v7, %v390_v22 }
  0xeb   : >> { %v5963_v1 = vrot.slane %v712_v39, 4  ;;  %v6002_v39 = vld [vmem:[%s5690_s25 + $0x30] sm:$0x8]  ;;  %v6036_v25 = vld [vmem:[%s5690_s25 + $0x48] sm:$0x8]  ;;  %v4160_v22 = vcombine.low %v5752_v6, %v4088_v47 }
  0xec   : >> { %v5956_v59 = vrot.slane %v688_v37, 4  ;;  %7137 = vst [vmem:[#allocation26_spill] sm:$0xff] %v5976_v16  ;;  %7138 = vst [vmem:[#allocation27_spill] sm:$0xff] %v5978_v19  ;;  %v4089_v37 = vld [vmem:[%s5690_s25 + $0x44] sm:$0x1]  ;;  %v6063_v49 = vrot.slane %v4115_v46, 5 }
  0xed   : >> { %779 = vrot.lane.b32.xlu0 %v765_v51, %s5351_s12  ;;  %v720_v51 = vshrl.u32 %v4132_v5, 16  ;;  %7133 = vst [vmem:[#allocation22_spill] sm:$0xff] %v5963_v1  ;;  %7141 = vst [vmem:[#allocation30_spill] sm:$0xff] %v6036_v25  ;;  %v4090_v16 = vld [vmem:[%s5690_s25 + $0x50] sm:$0x1]  ;;  %v4161_v12 = vcombine.low %v5748_v3, %v4089_v37 }
  0xee   : >> { %909 = vrot.lane.b32.xlu1 %v894_v53, %s5351_s12  ;;  %v723_v53 = vshll.u32 %v4132_v5, 16  ;;  %v6022_v5 = vrot.slane %v4112_v15, 5  ;;  %v4159_v15 = vcombine.low %v5719_v31, %v4087_v40  ;;  %v4091_v19 = vld [vmem:[%s5690_s25 + $0x5c] sm:$0x1]  ;;  %v6070_v40 = vld [vmem:[%s5690_s25 + $0x6c] sm:$0x8]  ;;  %v4162_v25 = vcombine.low %v5796_v55, %v4090_v16 }
  0xef   : >> { %v5989_v13 = vrot.slane %v720_v51, 4  ;;  %v391_v51 = vld [vmem:[%s5690_s25 + $0x50] sm:$0x1]  ;;  %7143 = vst [vmem:[#allocation32_spill] sm:$0xff] %v6070_v40  ;;  %v6080_v46 = vld [vmem:[%s5690_s25 + $0x60] sm:$0x8]  ;;  %v4163_v37 = vcombine.low %v5790_v48, %v4091_v19 }
  0xf0   : >> { %v5991_v29 = vrot.slane %v723_v53, 5  ;;  %v4158_v53 = vcombine.low %v5722_v32, %v4086_v20  ;;  %v4114_v20 = vcombine.low %v5779_v28, %v389_v14  ;;  %v6047_v14 = vld [vmem:[%s5690_s25 + $0x54] sm:$0x8]  ;;  %v4116_v9 = vcombine.low %v5821_v11, %v391_v51  ;;  %7144 = vst [vmem:[#allocation33_spill] sm:$0xff] %v6080_v46  ;;  %v6083_v28 = vld [vmem:[%s5690_s25 + $0x68] sm:$0x1] }
  0xf1   : >> { %907 = vrot.lane.b32.xlu0 %v886_v60, %s5351_s12  ;;  %v5958_v60 = vrot.slane %v691_v38, 5  ;;  %7139 = vst [vmem:[#allocation28_spill] sm:$0xff] %v5989_v13  ;;  %7145 = vst [vmem:[#allocation34_spill] sm:$0xff] %v6083_v28  ;;  %v6085_v51 = vrot.slane %v4117_v4, 5  ;;  %v6098_v11 = vrot.slane %v4160_v22, 5  ;;  %v6118_v16 = vrot.slane %v4162_v25, 5 }
  0xf2   : >> { %7140 = vst [vmem:[#allocation29_spill] sm:$0xff] %v5991_v29  ;;  %v935_v56 = vrot.slane %v4158_v53, 5  ;;  %v6073_v13 = vrot.slane %v4114_v20, 5  ;;  %v936_v29 = vrot.slane %v4159_v15, 5  ;;  %v6087_v7 = vrot.slane %v4116_v9, 5 }
  0xf3   : >> { %v6092_v20 = vld [vmem:[%s5690_s25 + $0x74] sm:$0x1]  ;;  %v4180_v46 = vcombine.low %v6098_v11, %v6098_v11  ;;  %v6120_v40 = vrot.slane %v4163_v37, 5  ;;  %v7149_v37 = vcombine.low %v5938_v43, %v5709_v26  ;;  %s5353_s25 = smov (%p360_p10), [#allocation11]  }
  0xf4   : >> { %7146 = vst [vmem:[#allocation35_spill] sm:$0xff] %v6087_v7  ;;  %7147 = vst [vmem:[#allocation36_spill] sm:$0xff] %v6092_v20  ;;  %v4168_v61 = vcombine.low %v935_v56, %v935_v56  ;;  %v6096_v53 = vcombine.high %v935_v56, %v935_v56  ;;  %v4174_v9 = vcombine.low %v936_v29, %v936_v29  ;;  %v6102_v7 = vrot.slane %v4161_v12, 5  ;;  %s5254_s28 = sshll.u32 (%p360_p10), %s5353_s25, 4  ;;  %s5255_s28 = int_to_ptr.vmem [resolvable:$false] %s5254_s28 }
  0xf5   : >> { %v7148_v56 = vcombine.low %v5935_v42, %v5705_v24  ;;  %v6112_v47 = vcombine.high %v936_v29, %v936_v29  ;;  %v6128_v29 = vcombine.high %v6098_v11, %v6098_v11  ;;  %v7150_v11 = vcombine.low %v5951_v57, %v5719_v31  ;;  %s5256_s12 = scalar_lea.vmem (%p360_p10), %s5255_s28, 2048  ;;  %p5257_p1 = scmp.lt.s32.totalorder (%p360_p10), %s7021_s30, %s5255_s28 }
  0xf6   : >> { %v1235_v24 = vshrl.u32 %v6096_v53, 16  ;;  %v6130_v20 = vshrl.u32 %v4174_v9, 16  ;;  %v7151_v9 = vor.u32 %v5932_v36, %v5926_v21  ;;  %v7152_v31 = vor.u32 %v5924_v35, %v5918_v27  ;;  %p5258_p2 = scmp.lt.s32.totalorder (%p360_p10), %s5256_s12, %s5250_s24 }
  0xf8   : > { %p5259_p4 = por (%p360_p10), %p5258_p2, %p5257_p1 }
  0xfa   : > { %p5260_p9 = pnand (%p360_p10), %p5259_p4, %p5253_p12 }
 0x124   : >> { %v648_v38 = vpop.permute.xlu1 %647 }
 0x125   : >> { %v970_v19 = vsel %vm943_vm2, %v5922_v34, %v648_v38  ;;  %v6122_v34 = vshrl.u32 %v4168_v61, 16 }
 0x126   : >> { %v6054_v1 = vpop.permute.xlu0 %767 }
 0x127   : >> { %v994_v57 = vsel %vm943_vm2, %v7152_v31, %v6054_v1  ;;  %v4216_v1 = vrot.slane %v6122_v34, 11 }
 0x128   : >> { %v650_v2 = vpop.permute.xlu1 %649 }
 0x129   : >> { %v973_v61 = vsel %vm943_vm2, %v5930_v8, %v650_v2 }
 0x12b   : >> { %v560_v15 = vpop.permute.xlu0 %559 }
 0x12c   : >> { %v770_v23 = vpop.permute.xlu1 %769  ;;  %v946_v22 = vsel %vm943_vm2, %v7148_v56, %v560_v15 }
 0x12d   : >> { %v4169_v12 = vcombine.high %v946_v22, %v970_v19  ;;  %v4166_v38 = vcombine.low %v946_v22, %v970_v19  ;;  %v997_v25 = vsel %vm943_vm2, %v7151_v9, %v770_v23 }
 0x12f   : >> { %v1209_v15 = vshrl.u32 %v4169_v12, 16  ;;  %v562_v56 = vpop.permute.xlu0 %561  ;;  %v1204_v21 = vshrl.u32 %v4166_v38, 16  ;;  %v1212_v36 = vshll.u32 %v4169_v12, 16  ;;  %v1237_v12 = vrot.slane %v1235_v24, 7 }
 0x130   : >> { %v898_v4 = vpop.permute.xlu1 %897  ;;  %v949_v42 = vsel %vm943_vm2, %v7149_v37, %v562_v56  ;;  %v6152_v56 = vcombine.high %v6102_v7, %v6102_v7 }
 0x131   : >> { %v1021_v19 = vsel %vm943_vm2, %v7150_v11, %v898_v4  ;;  %v4172_v52 = vcombine.low %v949_v42, %v973_v61  ;;  %v4175_v28 = vcombine.high %v949_v42, %v973_v61  ;;  %v1211_v2 = vrot.slane %v1209_v15, 7 }
 0x132   : >> { %v4173_v26 = vcombine.low %v997_v25, %v1021_v19  ;;  %v4176_v43 = vcombine.high %v997_v25, %v1021_v19  ;;  %v7153_v25 = vcombine.low %v5954_v58, %v5722_v32  ;;  %v4214_v38 = vrot.slane %v1204_v21, 11 }
 0x133   : >> { %v1248_v23 = vshrl.u32 %v4175_v28, 16  ;;  %v896_v4 = vpop.permute.xlu0 %895  ;;  %v1243_v61 = vshrl.u32 %v4172_v52, 16  ;;  %v1251_v37 = vshll.u32 %v4175_v28, 16  ;;  %v1214_v35 = vor.u32 %v1212_v36, %v1211_v2 }
 0x134   : >> { %v566_v42 = vpop.permute.xlu1 %565  ;;  %v1261_v15 = vshrl.u32 %v4176_v43, 16  ;;  %v1018_v11 = vsel %vm943_vm2, %v7153_v25, %v896_v4  ;;  %v1256_v9 = vshrl.u32 %v4173_v26, 16  ;;  %v1264_v31 = vshll.u32 %v4176_v43, 16 }
 0x135   : >> { %v1250_v19 = vrot.slane %v1248_v23, 7  ;;  %v4167_v8 = vcombine.low %v994_v57, %v1018_v11  ;;  %v4170_v22 = vcombine.high %v994_v57, %v1018_v11  ;;  %v4217_v26 = vrot.slane %v1243_v61, 11 }
 0x136   : >> { %v1263_v27 = vrot.slane %v1261_v15, 7  ;;  %v7156_v2 = vcombine.low %v5961_v63, %v5725_v33  ;;  %v4218_v43 = vrot.slane %v1256_v9, 11  ;;  %v6176_v4 = vshrl.u32 %v4180_v46, 16 }
 0x137   : >> { %v1222_v62 = vshrl.u32 %v4170_v22, 16  ;;  %v564_v52 = vpop.permute.xlu0 %563  ;;  %v1253_v58 = vor.u32 %v1251_v37, %v1250_v19  ;;  %v1217_v23 = vshrl.u32 %v4167_v8, 16  ;;  %v1225_v15 = vshll.u32 %v4170_v22, 16 }
 0x138   : >> { %v654_v28 = vpop.permute.xlu1 %653  ;;  %v955_v57 = vsel %vm943_vm2, %v7156_v2, %v566_v42  ;;  %v1215_v37 = vsel %vm6166_vm5, %v4214_v38, %v1214_v35  ;;  %v1266_v61 = vor.u32 %v1264_v31, %v1263_v27  ;;  %v7157_v33 = vcombine.low %v5972_v10, %v5736_v50 }
 0x139   : >> { %v979_v24 = vsel %vm943_vm2, %v6020_v41, %v654_v28  ;;  %v1224_v21 = vrot.slane %v1222_v62, 7  ;;  %v1254_v8 = vsel %vm6166_vm5, %v4217_v26, %v1253_v58  ;;  %v4215_v11 = vrot.slane %v1217_v23, 11  ;;  %v6189_v28 = vld [vmem:[%s5740_s5 + $0x108] sm:$0xff]  }
 0x13a   : >> { %v4187_v36 = vcombine.high %v955_v57, %v979_v24  ;;  %v952_v63 = vsel %vm943_vm2, %v7157_v33, %v564_v52  ;;  %v4184_v41 = vcombine.low %v955_v57, %v979_v24  ;;  %v4240_v25 = vcombine.low %v1215_v37, %v1254_v8 }
 0x13b   : >> { %v652_v62 = vpop.permute.xlu0 %651  ;;  %v4241_v19 = vcombine.high %v1215_v37, %v1254_v8  ;;  %v1227_v9 = vor.u32 %v1225_v15, %v1224_v21  ;;  %v4219_v27 = vrot.slane %v6130_v20, 11  ;;  %v1313_v50 = vshrl.u32 %v6128_v29, 16  ;;  %v7171_v20 = vld [vmem:[#allocation22_spill] sm:$0xff] }
 0x13c   : >> { %v1326_v42 = vshrl.u32 %v4187_v36, 16  ;;  %v774_v46 = vpop.permute.xlu1 %773  ;;  %v976_v22 = vsel %vm943_vm2, %v6022_v5, %v652_v62  ;;  %v1267_v52 = vsel %vm6166_vm5, %v4218_v43, %v1266_v61  ;;  %v7158_v5 = vshrl.u32 %v6112_v47, 16 }
 0x13d   : >> { %v4178_v35 = vcombine.low %v952_v63, %v976_v22  ;;  %v4181_v38 = vcombine.high %v952_v63, %v976_v22  ;;  %1934 = vmatprep.mubr.bf16.mxu0 %v4241_v19  ;;  %v1228_v31 = vsel %vm6166_vm5, %v4215_v11, %v1227_v9  ;;  %v1321_v26 = vshrl.u32 %v4184_v41, 16 }
 0x13e   : >> { %v1328_v10 = vrot.slane %v1326_v42, 7  ;;  %v1276_v58 = vrot.slane %v7158_v5, 7  ;;  %v1329_v23 = vshll.u32 %v4187_v36, 16  ;;  %v7159_v57 = vor.u32 %v5942_v17, %v5940_v44  ;;  %1935 = vmatmul.mubr.bf16.vlgmr.msra.gmra.mrb[0].mxu0 %v4240_v25  ;;  %v6210_v44 = vld [vmem:[%s5740_s5 + $0x110] sm:$0xff]  }
 0x13f   : >> { %v1287_v2 = vshrl.u32 %v4181_v38, 16  ;;  %v772_v21 = vpop.permute.xlu0 %771  ;;  %v1282_v37 = vshrl.u32 %v4178_v35, 16  ;;  %v4242_v8 = vcombine.low %v1228_v31, %v1267_v52  ;;  %v4243_v33 = vcombine.high %v1228_v31, %v1267_v52  ;;  %4767 = vmatpush3.bf16.msra.mxu0 %v5897_v0 }
 0x140   : >> { %v1003_v24 = vsel %vm943_vm2, %v7159_v57, %v774_v46  ;;  %v902_v15 = vpop.permute.xlu1 %901  ;;  %v7160_v43 = vcombine.low %v5986_v18, %v5748_v3  ;;  %v1290_v63 = vshll.u32 %v4181_v38, 16  ;;  %4768 = vmatprep.subr.bf16.mxu0 %v6189_v28  ;;  %v1316_v17 = vshll.u32 %v6128_v29, 16 }
 0x141   : >> { %v1289_v36 = vrot.slane %v1287_v2, 7  ;;  %v1331_v42 = vor.u32 %v1329_v23, %v1328_v10  ;;  %1999 = vmatprep.mubr.bf16.mxu1 %v4243_v33  ;;  %v7161_v62 = vshll.u32 %v6096_v53, 16  ;;  %v4222_v3 = vrot.slane %v6176_v4, 11 }
 0x142   : >> { %v1027_v61 = vsel %vm943_vm2, %v7160_v43, %v902_v15  ;;  %v7162_v18 = vcombine.low %v6102_v7, %v6102_v7  ;;  %2000 = vmatmul.mubr.bf16.vlgmr.msra.gmra.mrb[0].mxu1 %v4242_v8  ;;  %v1315_v38 = vrot.slane %v1313_v50, 7  ;;  %v4223_v29 = vrot.slane %v1321_v26, 11 }
 0x143   : >> { %v4188_v41 = vcombine.high %v1003_v24, %v1027_v61  ;;  %v1240_v25 = vor.u32 %v7161_v62, %v1237_v12  ;;  %v1292_v11 = vor.u32 %v1290_v63, %v1289_v36  ;;  %v4185_v22 = vcombine.low %v1003_v24, %v1027_v61  ;;  %v900_v9 = vpop.permute.xlu0 %899  ;;  %4802 = vmatpush3.bf16.msra.mxu1 %v5897_v0 }
 0x144   : >> { %v6219_v46 = vshrl.u32 %v7162_v18, 16  ;;  %v570_v35 = vpop.permute.xlu1 %569  ;;  %v4220_v10 = vrot.slane %v1282_v37, 11  ;;  %v7163_v53 = vor.u32 %v5958_v60, %v5956_v59  ;;  %v7164_v7 = vcombine.low %v6002_v39, %v5752_v6  ;;  %4769 = vmatpush3.bf16.msra.mxu0 %v6189_v28  ;;  %4799 = vmatprep.subr.bf16.mxu1 %v6189_v28  ;;  %v5015_v39 = vld [vmem:[%s5740_s5 + $0x118] sm:$0xff]  }
 0x145   : >> { %v1339_v19 = vshrl.u32 %v4188_v41, 16  ;;  %4770 = vmatprep.subr.bf16.mxu0 %v6210_v44  ;;  %v7165_v50 = vshll.u32 %v6112_v47, 16  ;;  %v1352_v60 = vshrl.u32 %v6152_v56, 16  ;;  %v1332_v0 = vsel %vm6166_vm5, %v4223_v29, %v1331_v42 }
 0x146   : >> { %v1000_v12 = vsel %vm943_vm2, %v7163_v53, %v772_v21  ;;  %v1024_v31 = vsel %vm943_vm2, %v7164_v7, %v900_v9  ;;  %v1293_v6 = vsel %vm6166_vm5, %v4220_v10, %v1292_v11  ;;  %v4225_v23 = vrot.slane %v6219_v46, 11  ;;  %v7166_v21 = vld [vmem:[#allocation16_spill] sm:$0xff]  ;;  %v7168_v10 = vld [vmem:[#allocation17_spill] sm:$0xff] }
 0x147   : >> { %v4179_v52 = vcombine.low %v1000_v12, %v1024_v31  ;;  %v4182_v5 = vcombine.high %v1000_v12, %v1024_v31  ;;  %v1279_v59 = vor.u32 %v7165_v50, %v1276_v58  ;;  %v1341_v26 = vrot.slane %v1339_v19, 7  ;;  %v568_v58 = vpop.permute.xlu0 %567  ;;  %4803 = vmatpush3.bf16.msra.mxu1 %v6189_v28 }
 0x148   : >> { %v1334_v2 = vshrl.u32 %v4185_v22, 16  ;;  %v1342_v57 = vshll.u32 %v4188_v41, 16  ;;  %v7167_v15 = vcombine.low %v6009_v45, %v7166_v21  ;;  %v658_v37 = vpop.permute.xlu1 %657  ;;  %v4246_v33 = vcombine.high %v1293_v6, %v1332_v0  ;;  %4800 = vmatprep.subr.bf16.mxu1 %v6210_v44  ;;  %4771 = vmatpush3.bf16.msra.mxu0 %v6210_v44 }
 0x149   : >> { %v1300_v24 = vshrl.u32 %v4182_v5, 16  ;;  %v1295_v8 = vshrl.u32 %v4179_v52, 16  ;;  %v985_v43 = vsel %vm943_vm2, %v6063_v49, %v658_v37  ;;  %v4245_v61 = vcombine.low %v1293_v6, %v1332_v0  ;;  %4772 = vmatprep.subr.bf16.mxu0 %v5015_v39 }
 0x14a   : >> { %v961_v47 = vsel %vm943_vm2, %v7167_v15, %v570_v35  ;;  %v1303_v63 = vshll.u32 %v4182_v5, 16  ;;  %v4192_v45 = vcombine.low %v6118_v16, %v6118_v16  ;;  %v1344_v41 = vor.u32 %v1342_v57, %v1341_v26  ;;  %1942 = vmatprep.mubr.bf16.mxu0 %v4246_v33  ;;  %v7170_v5 = vld [vmem:[#allocation23_spill] sm:$0xff] }
 0x14b   : >> { %v1302_v36 = vrot.slane %v1300_v24, 7  ;;  %v4199_v42 = vcombine.high %v961_v47, %v985_v43  ;;  %v6257_v49 = vsel %vm6166_vm5, %v4216_v1, %v1240_v25  ;;  %v6259_v28 = vor.u32 %v1316_v17, %v1315_v38  ;;  %1943 = vmatmul.mubr.bf16.gmra.mrb[4].mxu0 %v4245_v61  ;;  %v656_v19 = vpop.permute.xlu0 %655  ;;  %4804 = vmatpush3.bf16.msra.mxu1 %v6210_v44 }
 0x14c   : >> { %v1355_v62 = vshll.u32 %v6152_v56, 16  ;;  %v4196_v11 = vcombine.low %v961_v47, %v985_v43  ;;  %v778_v9 = vpop.permute.xlu1 %777  ;;  %v6264_v35 = vcombine.high %v6118_v16, %v6118_v16  ;;  %v4224_v29 = vrot.slane %v1334_v2, 11  ;;  %4773 = vmatpush3.bf16.msra.mxu0 %v5015_v39  ;;  %4801 = vmatprep.subr.bf16.mxu1 %v5015_v39 }
 0x14d   : >> { %v1305_v18 = vor.u32 %v1303_v63, %v1302_v36  ;;  %v1404_v22 = vshrl.u32 %v4199_v42, 16  ;;  %v4221_v34 = vrot.slane %v1295_v8, 11  ;;  %v7169_v1 = vcombine.low %v6025_v54, %v7168_v10 }
 0x14e   : >> { %v982_v56 = vsel %vm943_vm2, %v6073_v13, %v656_v19  ;;  %v6277_v16 = vsel %vm6166_vm5, %v4219_v27, %v1279_v59  ;;  %v1354_v53 = vrot.slane %v1352_v60, 7  ;;  %v1345_v13 = vsel %vm6166_vm5, %v4224_v29, %v1344_v41  ;;  %v7175_v41 = vld [vmem:[#allocation24_spill] sm:$0xff] }
 0x14f   : >> { %v958_v17 = vsel %vm943_vm2, %v7169_v1, %v568_v58  ;;  %v1406_v12 = vrot.slane %v1404_v22, 7  ;;  %v1306_v54 = vsel %vm6166_vm5, %v4221_v34, %v1305_v18  ;;  %v4198_v44 = vcombine.low %v6120_v40, %v6120_v40  ;;  %v776_v59 = vpop.permute.xlu0 %775  ;;  %4805 = vmatpush3.bf16.msra.mxu1 %v5015_v39 }
 0x150   : >> { %v4190_v25 = vcombine.low %v958_v17, %v982_v56  ;;  %v4193_v38 = vcombine.high %v958_v17, %v982_v56  ;;  %v1399_v7 = vshrl.u32 %v4196_v11, 16  ;;  %v1407_v31 = vshll.u32 %v4199_v42, 16  ;;  %v906_v60 = vpop.permute.xlu1 %905  ;;  %v7177_v11 = vld [vmem:[#allocation30_spill] sm:$0xff] }
 0x151   : >> { %v7172_v50 = vor.u32 %v7170_v5, %v7171_v20  ;;  %v4248_v6 = vcombine.high %v1306_v54, %v1345_v13  ;;  %v7173_v0 = vcombine.low %v6033_v30, %v5790_v48  ;;  %v4247_v57 = vcombine.low %v1306_v54, %v1345_v13 }
 0x152   : >> { %v1365_v52 = vshrl.u32 %v4193_v38, 16  ;;  %v1360_v26 = vshrl.u32 %v4190_v25, 16  ;;  %v1368_v21 = vshll.u32 %v4193_v38, 16  ;;  %v6293_v47 = vshrl.u32 %v4192_v45, 16  ;;  %v7174_v45 = vld [vmem:[#allocation25_spill] sm:$0xff] }
 0x153   : >> { %v1009_v27 = vsel %vm943_vm2, %v7172_v50, %v778_v9  ;;  %v1033_v2 = vsel %vm943_vm2, %v7173_v0, %v906_v60  ;;  %v1409_v58 = vor.u32 %v1407_v31, %v1406_v12  ;;  %2007 = vmatprep.mubr.bf16.mxu1 %v4248_v6  ;;  %v4244_v37 = vcombine.low %v6257_v49, %v6277_v16  ;;  %v904_v39 = vpop.permute.xlu0 %903  ;;  %v7182_v6 = vld [vmem:[#allocation34_spill] sm:$0xff] }
 0x154   : >> { %v1367_v24 = vrot.slane %v1365_v52, 7  ;;  %v4200_v15 = vcombine.high %v1009_v27, %v1033_v2  ;;  %v6297_v8 = vor.u32 %v1355_v62, %v1354_v53  ;;  %v6301_v33 = vcombine.high %v6120_v40, %v6120_v40  ;;  %2008 = vmatmul.mubr.bf16.gmra.mrb[4].mxu1 %v4247_v57  ;;  %v574_v61 = vpop.permute.xlu1 %573  ;;  %v7179_v53 = vld [vmem:[#allocation18_spill] sm:$0xff] }
 0x155   : >> { %v4197_v30 = vcombine.low %v1009_v27, %v1033_v2  ;;  %v1391_v36 = vshrl.u32 %v6264_v35, 16  ;;  %v4229_v63 = vrot.slane %v1399_v7, 11  ;;  %v4226_v42 = vrot.slane %v1360_v26, 11  ;;  %v7181_v26 = vld [vmem:[#allocation21_spill] sm:$0xff] }
 0x156   : >> { %v1370_v48 = vor.u32 %v1368_v21, %v1367_v24  ;;  %v1417_v43 = vshrl.u32 %v4200_v15, 16  ;;  %v7176_v18 = vor.u32 %v7174_v45, %v7175_v41  ;;  %v7178_v22 = vcombine.low %v7177_v11, %v5796_v55 }
 0x157   : >> { %v4228_v29 = vrot.slane %v6293_v47, 11  ;;  %v1394_v34 = vshll.u32 %v6264_v35, 16  ;;  %v1410_v17 = vsel %vm6166_vm5, %v4229_v63, %v1409_v58  ;;  %v6318_v56 = vshrl.u32 %v4198_v44, 16  ;;  %v572_v13 = vpop.permute.xlu0 %571 }
 0x158   : >> { %v1006_v62 = vsel %vm943_vm2, %v7176_v18, %v776_v59  ;;  %v1030_v40 = vsel %vm943_vm2, %v7178_v22, %v904_v39  ;;  %v1419_v10 = vrot.slane %v1417_v43, 7  ;;  %v1371_v1 = vsel %vm6166_vm5, %v4226_v42, %v1370_v48  ;;  %v662_v7 = vpop.permute.xlu1 %661  ;;  %v7184_v43 = vld [vmem:[#allocation31_spill] sm:$0xff]  ;;  %v7188_v18 = vld [vmem:[#allocation20_spill] sm:$0xff] }
 0x159   : >> { %v4191_v19 = vcombine.low %v1006_v62, %v1030_v40  ;;  %v4194_v9 = vcombine.high %v1006_v62, %v1030_v40  ;;  %v1412_v25 = vshrl.u32 %v4197_v30, 16  ;;  %v1420_v38 = vshll.u32 %v4200_v15, 16  ;;  %v7185_v39 = vld [vmem:[#allocation19_spill] sm:$0xff]  ;;  %v7189_v62 = vld [vmem:[#allocation36_spill] sm:$0xff] }
 0x15a   : >> { %v7180_v12 = vcombine.low %v6047_v14, %v7179_v53  ;;  %v4251_v31 = vcombine.high %v1371_v1, %v1410_v17  ;;  %v991_v52 = vsel %vm943_vm2, %v6085_v51, %v662_v7  ;;  %v4250_v5 = vcombine.low %v1371_v1, %v1410_v17 }
 0x15b   : >> { %v1378_v55 = vshrl.u32 %v4194_v9, 16  ;;  %v1373_v35 = vshrl.u32 %v4191_v19, 16  ;;  %v1381_v50 = vshll.u32 %v4194_v9, 16  ;;  %v1430_v27 = vshrl.u32 %v6301_v33, 16  ;;  %v660_v51 = vpop.permute.xlu0 %659 }
 0x15c   : >> { %v967_v54 = vsel %vm943_vm2, %v7180_v12, %v574_v61  ;;  %v1422_v59 = vor.u32 %v1420_v38, %v1419_v10  ;;  %1950 = vmatprep.mubr.bf16.mxu0 %v4251_v31  ;;  %v1393_v60 = vrot.slane %v1391_v36, 7  ;;  %v1433_v14 = vshll.u32 %v6301_v33, 16  ;;  %v782_v15 = vpop.permute.xlu1 %781  ;;  %v7187_v36 = vld [vmem:[#allocation35_spill] sm:$0xff]  ;;  %v7192_v38 = vld [vmem:[#allocation26_spill] sm:$0xff] }
 0x15d   : >> { %v1380_v20 = vrot.slane %v1378_v55, 7  ;;  %v4211_v44 = vcombine.high %v967_v54, %v991_v52  ;;  %v7183_v0 = vcombine.low %v7181_v26, %v7182_v6  ;;  %v4208_v24 = vcombine.low %v967_v54, %v991_v52  ;;  %1951 = vmatmul.mubr.bf16.gmra.mrb[8].mxu0 %v4250_v5 }
 0x15e   : >> { %v4231_v58 = vrot.slane %v6318_v56, 11  ;;  %v4230_v48 = vrot.slane %v1412_v25, 11  ;;  %v4227_v30 = vrot.slane %v1373_v35, 11  ;;  %v7186_v61 = vcombine.low %v7184_v43, %v7185_v39  ;;  %v7191_v25 = vld [vmem:[#allocation27_spill] sm:$0xff]  ;;  %v7194_v35 = vld [vmem:[#allocation32_spill] sm:$0xff] }
 0x15f   : >> { %v6331_v2 = vrot.slane %v7183_v0, 5  ;;  %v1383_v57 = vor.u32 %v1381_v50, %v1380_v20  ;;  %v1482_v21 = vshrl.u32 %v4211_v44, 16  ;;  %v988_v63 = vsel %vm943_vm2, %v7187_v36, %v660_v51  ;;  %v780_v12 = vpop.permute.xlu0 %779  ;;  %v7197_v43 = vld [vmem:[#allocation28_spill] sm:$0xff] }
 0x160   : >> { %v964_v33 = vsel %vm943_vm2, %v7186_v61, %v572_v13  ;;  %v1432_v41 = vrot.slane %v1430_v27, 7  ;;  %v7190_v11 = vcombine.low %v7188_v18, %v7189_v62  ;;  %v1423_v9 = vsel %vm6166_vm5, %v4230_v48, %v1422_v59  ;;  %v910_v54 = vpop.permute.xlu1 %909 }
 0x161   : >> { %v4202_v42 = vcombine.low %v964_v33, %v988_v63  ;;  %v4205_v45 = vcombine.high %v964_v33, %v988_v63  ;;  %v1484_v40 = vrot.slane %v1482_v21, 7  ;;  %v1384_v19 = vsel %vm6166_vm5, %v4227_v30, %v1383_v57  ;;  %v7196_v30 = vld [vmem:[#allocation29_spill] sm:$0xff] }
 0x162   : >> { %v942_v22 = vrot.slane %v7190_v11, 5  ;;  %v1396_v10 = vor.u32 %v1394_v34, %v1393_v60  ;;  %v1477_v1 = vshrl.u32 %v4208_v24, 16  ;;  %v1485_v17 = vshll.u32 %v4211_v44, 16  ;;  %v7199_v33 = vld [vmem:[#allocation33_spill] sm:$0xff] }
 0x163   : >> { %v1443_v56 = vshrl.u32 %v4205_v45, 16  ;;  %v7193_v55 = vor.u32 %v7191_v25, %v7192_v38  ;;  %v1438_v13 = vshrl.u32 %v4202_v42, 16  ;;  %v4253_v7 = vcombine.high %v1384_v19, %v1423_v9  ;;  %v908_v21 = vpop.permute.xlu0 %907 }
 0x164   : >> { %v7195_v31 = vcombine.low %v7194_v35, %v7188_v18  ;;  %v4252_v5 = vcombine.low %v1384_v19, %v1423_v9  ;;  %v1446_v34 = vshll.u32 %v4205_v45, 16  ;;  %v4204_v44 = vcombine.low %v6331_v2, %v6331_v2 }
 0x165   : >> { %v1015_v53 = vsel %vm943_vm2, %v7193_v55, %v782_v15  ;;  %v1445_v20 = vrot.slane %v1443_v56, 7  ;;  %v1487_v27 = vor.u32 %v1485_v17, %v1484_v40  ;;  %2015 = vmatprep.mubr.bf16.mxu1 %v4253_v7  ;;  %v1435_v59 = vor.u32 %v1433_v14, %v1432_v41 }
 0x166   : >> { %v1039_v52 = vsel %vm943_vm2, %v7195_v31, %v910_v54  ;;  %v4207_v60 = vcombine.high %v6331_v2, %v6331_v2  ;;  %v4213_v6 = vcombine.high %v942_v22, %v942_v22  ;;  %2016 = vmatmul.mubr.bf16.gmra.mrb[8].mxu1 %v4252_v5  ;;  %v4210_v51 = vcombine.low %v942_v22, %v942_v22 }
 0x167   : >> { %v4212_v50 = vcombine.high %v1015_v53, %v1039_v52  ;;  %v1448_v0 = vor.u32 %v1446_v34, %v1445_v20  ;;  %v4209_v57 = vcombine.low %v1015_v53, %v1039_v52  ;;  %v4235_v15 = vrot.slane %v1477_v1, 11 }
 0x168   : >> { %v4232_v48 = vrot.slane %v1438_v13, 11  ;;  %v7198_v39 = vor.u32 %v7196_v30, %v7197_v43  ;;  %v7200_v14 = vcombine.low %v7199_v33, %v7181_v26  ;;  %v1397_v45 = vsel %vm6166_vm5, %v4228_v29, %v1396_v10 }
 0x169   : >> { %v1495_v24 = vshrl.u32 %v4212_v50, 16  ;;  %v1488_v18 = vsel %vm6166_vm5, %v4235_v15, %v1487_v27  ;;  %v1469_v62 = vshrl.u32 %v4207_v60, 16  ;;  %v1508_v11 = vshrl.u32 %v4213_v6, 16 }
 0x16a   : >> { %v1012_v61 = vsel %vm943_vm2, %v7198_v39, %v780_v12  ;;  %v1036_v36 = vsel %vm943_vm2, %v7200_v14, %v908_v21  ;;  %v1449_v41 = vsel %vm6166_vm5, %v4232_v48, %v1448_v0  ;;  %v1490_v22 = vshrl.u32 %v4209_v57, 16 }
 0x16b   : >> { %v1497_v2 = vrot.slane %v1495_v24, 7  ;;  %v4203_v63 = vcombine.low %v1012_v61, %v1036_v36  ;;  %v4206_v42 = vcombine.high %v1012_v61, %v1036_v36  ;;  %v1498_v26 = vshll.u32 %v4212_v50, 16 }
 0x16c   : >> { %v4256_v9 = vcombine.high %v1449_v41, %v1488_v18  ;;  %v4255_v1 = vcombine.low %v1449_v41, %v1488_v18  ;;  %v1436_v47 = vsel %vm6166_vm5, %v4231_v58, %v1435_v59  ;;  %v1464_v17 = vshrl.u32 %v4204_v44, 16  ;;  %v4239_v59 = vld [vmem:[%s1590_s20] ss:$0 sm:$0xff] }
 0x16d   : >> { %v1451_v40 = vshrl.u32 %v4203_v63, 16  ;;  %v1456_v19 = vshrl.u32 %v4206_v42, 16  ;;  %v1500_v56 = vor.u32 %v1498_v26, %v1497_v2  ;;  %v1459_v10 = vshll.u32 %v4206_v42, 16 }
 0x16e   : >> { %v1503_v25 = vshrl.u32 %v4210_v51, 16  ;;  %1958 = vmatprep.mubr.bf16.mxu0 %v4256_v9  ;;  %v1471_v38 = vrot.slane %v1469_v62, 7  ;;  %v1472_v55 = vshll.u32 %v4207_v60, 16  ;;  %v1510_v53 = vrot.slane %v1508_v11, 7 }
 0x16f   : >> { %v1458_v29 = vrot.slane %v1456_v19, 7  ;;  %v1511_v12 = vshll.u32 %v4213_v6, 16  ;;  %v4236_v54 = vrot.slane %v1490_v22, 11  ;;  %v4233_v13 = vrot.slane %v1451_v40, 11  ;;  %1959 = vmatmul.mubr.bf16.gmra.mrb[12].mxu0 %v4255_v1 }
 0x170   : >> { %4774 = vmatprep.mubr.msk.bf16.mxu0 %vm943_vm2, %v4244_v37  ;;  %v1319_v58 = vsel %vm6166_vm5, %v4222_v3, %v6259_v28  ;;  %v1358_v35 = vsel %vm6166_vm5, %v4225_v23, %v6297_v8  ;;  %v4254_v31 = vcombine.low %v1397_v45, %v1436_v47  ;;  %v4234_v16 = vrot.slane %v1464_v17, 11 }
 0x171   : >> { %v1461_v7 = vor.u32 %v1459_v10, %v1458_v29  ;;  %v1501_v49 = vsel %vm6166_vm5, %v4236_v54, %v1500_v56  ;;  %v4237_v37 = vrot.slane %v1503_v25, 11  ;;  %v1474_v20 = vor.u32 %v1472_v55, %v1471_v38 }
 0x172   : >> { %v1513_v3 = vor.u32 %v1511_v12, %v1510_v53  ;;  %v4249_v28 = vcombine.low %v1319_v58, %v1358_v35 }
 0x173   : >> { %v1462_v52 = vsel %vm6166_vm5, %v4233_v13, %v1461_v7  ;;  %v1475_v46 = vsel %vm6166_vm5, %v4234_v16, %v1474_v20 }
 0x174   : >> { %v4258_v5 = vcombine.high %v1462_v52, %v1501_v49  ;;  %v4257_v4 = vcombine.low %v1462_v52, %v1501_v49  ;;  %v1514_v23 = vsel %vm6166_vm5, %v4237_v37, %v1513_v3 }
 0x175   : >> { %v4259_v8 = vcombine.low %v1475_v46, %v1514_v23 }
 0x176   : >> { %2023 = vmatprep.mubr.bf16.mxu1 %v4258_v5 }
 0x177   : >> { %2024 = vmatmul.mubr.bf16.gmra.mrb[12].mxu1 %v4257_v4  ;;  %4775 = vmatmul.mubr.msk.bf16.vlgmr.msra.gmra.mrb[16].mxu0 %vm943_vm2, %v4249_v28 }
 0x178   : >> { %4778 = vmatprep.mubr.msk.bf16.mxu1 %vm943_vm2, %v4254_v31 }
 0x17f   : >> { %4779 = vmatmul.mubr.msk.bf16.vlgmr.msra.gmra.mrb[16].mxu1 %vm943_vm2, %v4259_v8 }
 0x211   : >> { %v4606_v34 = vpop.f32.mrb[0].mxu0 }
 0x212   : >> { %v4607_v50 = vpop.f32.mrb[1].mxu0 }
 0x213   : >> { %v4608_v44 = vadd.f32 %v4607_v50, %v4606_v34  ;;  %v4609_v27 = vpop.f32.mrb[2].mxu0 }
 0x214   : >> { %v4610_v60 = vpop.f32.mrb[3].mxu0 }
 0x215   : >> { %v4611_v6 = vadd.f32 %v4610_v60, %v4609_v27  ;;  %v4646_v0 = vpop.f32.mrb[0].mxu1  ;;  %v1937_v24 = vadd.f32 %v4608_v44, %v4239_v59 }
 0x216   : >> { %v4647_v57 = vpop.f32.mrb[1].mxu1 }
 0x217   : >> { %v4648_v21 = vadd.f32 %v4647_v57, %v4646_v0  ;;  %v4649_v51 = vpop.f32.mrb[2].mxu1  ;;  %v1940_v48 = vadd.f32 %v4611_v6, %v4239_v59 }
 0x218   : >> { %v4650_v15 = vpop.f32.mrb[3].mxu1 }
 0x219   : >> { %v4651_v30 = vadd.f32 %v4650_v15, %v4649_v51  ;;  %v2002_v43 = vadd.f32 %v4648_v21, %v1937_v24 }
 0x21b   : >> { %v2005_v39 = vadd.f32 %v4651_v30, %v1940_v48 }
 0x21e   : >> { %v4612_v61 = vpop.f32.mrb[4].mxu0 }
 0x21f   : >> { %v4613_v33 = vpop.f32.mrb[5].mxu0 }
 0x220   : >> { %v4614_v14 = vadd.f32 %v4613_v33, %v4612_v61  ;;  %v4615_v36 = vpop.f32.mrb[6].mxu0 }
 0x221   : >> { %v4616_v2 = vpop.f32.mrb[7].mxu0 }
 0x222   : >> { %v4617_v63 = vadd.f32 %v4616_v2, %v4615_v36  ;;  %v1945_v41 = vadd.f32 %v4614_v14, %v4239_v59 }
 0x224   : >> { %v1948_v22 = vadd.f32 %v4617_v63, %v4239_v59 }
 0x227   : >> { %v4652_v42 = vpop.f32.mrb[4].mxu1 }
 0x228   : >> { %v4653_v45 = vpop.f32.mrb[5].mxu1 }
 0x229   : >> { %v4654_v18 = vadd.f32 %v4653_v45, %v4652_v42  ;;  %v4655_v62 = vpop.f32.mrb[6].mxu1 }
 0x22a   : >> { %v4656_v11 = vpop.f32.mrb[7].mxu1 }
 0x22b   : >> { %v4657_v26 = vadd.f32 %v4656_v11, %v4655_v62  ;;  %v2010_v40 = vadd.f32 %v4654_v18, %v1945_v41 }
 0x22d   : >> { %v2013_v19 = vadd.f32 %v4657_v26, %v1948_v22 }
 0x230   : >> { %v4618_v9 = vpop.f32.mrb[8].mxu0 }
 0x231   : >> { %v4619_v1 = vpop.f32.mrb[9].mxu0 }
 0x232   : >> { %v4620_v47 = vadd.f32 %v4619_v1, %v4618_v9  ;;  %v4621_v17 = vpop.f32.mrb[10].mxu0  ;;  %v4319_v1 = vld [vmem:[%s6406_s8 + $0xc] sm:$0x8] (%p360_p10) }
 0x233   : >> { %v4622_v56 = vpop.f32.mrb[11].mxu0 }
 0x234   : >> { %v4623_v29 = vadd.f32 %v4622_v56, %v4621_v17  ;;  %v1953_v38 = vadd.f32 %v4620_v47, %v4239_v59  ;;  %v5061_v17 = vld [vmem:[#allocation9 + $0x40] sm:$0xff] (%p360_p10)  }
 0x235   : > { %4678 = vmatprep.subr.bf16.mxu0 (%p360_p10), %v5061_v17  ;;  %v4323_v17 = vld [vmem:[%s6406_s8 + $0x24] sm:$0x8] (%p360_p10) }
 0x236   : >> { %v1956_v54 = vadd.f32 %v4623_v29, %v4239_v59  ;;  %v4335_v29 = vld [vmem:[%s6406_s8 + $0x14] sm:$0x1] (%p360_p10) }
 0x239   : >> { %v4658_v10 = vpop.f32.mrb[8].mxu1 }
 0x23a   : >> { %v4659_v25 = vpop.f32.mrb[9].mxu1 }
 0x23b   : >> { %v4660_v55 = vadd.f32 %v4659_v25, %v4658_v10  ;;  %v4661_v53 = vpop.f32.mrb[10].mxu1  ;;  %v4321_v10 = vld [vmem:[%s6406_s8 + $0x18] sm:$0x8] (%p360_p10) }
 0x23c   : >> { %v4662_v12 = vpop.f32.mrb[11].mxu1 }
 0x23d   : >> { %v4663_v13 = vadd.f32 %v4662_v12, %v4661_v53  ;;  %v2018_v7 = vadd.f32 %v4660_v55, %v1953_v38  ;;  %v6443_v55 = vld [vmem:[%s6406_s8 + $0x4] sm:$0xf] (%p360_p10)  ;;  %v4336_v53 = vld [vmem:[%s6406_s8 + $0x20] sm:$0x1] (%p360_p10) }
 0x23f   : >> { %v2021_v58 = vadd.f32 %v4663_v13, %v1956_v54  ;;  %v4376_v13 = vcombine.low (%p360_p10), %v6443_v55, %v6443_v55 }
 0x242   : >> { %v4624_v35 = vpop.f32.mrb[12].mxu0 }
 0x243   : >> { %v4625_v31 = vpop.f32.mrb[13].mxu0 }
 0x244   : >> { %v4626_v52 = vadd.f32 %v4625_v31, %v4624_v35  ;;  %v4627_v49 = vpop.f32.mrb[14].mxu0 }
 0x245   : >> { %v4628_v16 = vpop.f32.mrb[15].mxu0 }
 0x246   : >> { %v4629_v37 = vadd.f32 %v4628_v16, %v4627_v49  ;;  %v1961_v20 = vadd.f32 %v4626_v52, %v4239_v59 }
 0x248   : >> { %v1964_v50 = vadd.f32 %v4629_v37, %v4239_v59 }
 0x24a   : >> { %v4664_v5 = vpop.f32.mrb[12].mxu1  ;;  %v4776_v3 = vpop.f32.mrb[16].mxu0 }
 0x24b   : >> { %v4665_v4 = vpop.f32.mrb[13].mxu1  ;;  %v2075_v23 = vadd.f32 %v4776_v3, %v2010_v40  ;;  %v2066_v8 = vpop.f32.mrb[17].mxu0  ;;  %v2282_v3 = vshll.u32 (%p360_p10), %v4376_v13, 16 }
 0x24c   : >> { %v4666_v28 = vadd.f32 %v4665_v4, %v4664_v5  ;;  %v4667_v46 = vpop.f32.mrb[14].mxu1  ;;  %v2067_v44 = vadd.f32 %v2066_v8, %v2002_v43  ;;  %v4777_v27 = vpop.f32.mrb[18].mxu0  ;;  %v5062_v4 = vld [vmem:[#allocation9] sm:$0xff] (%p360_p10)  }
 0x24d   : >> { %v4668_v34 = vpop.f32.mrb[15].mxu1  ;;  %v2099_v0 = vmax.f32 %v2075_v23, 0.0  ;;  %v2078_v57 = vadd.f32 %v4777_v27, %v2013_v19  ;;  %v2069_v24 = vpop.f32.mrb[19].mxu0  ;;  %4679 = vmatpush3.bf16.msra.mxu0 (%p360_p10), %v5062_v4  ;;  %v2284_v27 = vrot.slane (%p360_p10), %v2282_v3, 5 }
 0x24e   : >> { %v4669_v60 = vadd.f32 %v4668_v34, %v4667_v46  ;;  %v2026_v6 = vadd.f32 %v4666_v28, %v1961_v20  ;;  %v2097_v21 = vmax.f32 %v2067_v44, 0.0  ;;  %v2070_v51 = vadd.f32 %v2069_v24, %v2005_v39 }
 0x24f   : >> { %v4582_v48 = vpack.c.bf16 %v2099_v0, %v2099_v0  ;;  %v2100_v30 = vmax.f32 %v2078_v57, 0.0  ;;  %v2279_v20 = vshrl.u32 (%p360_p10), %v4376_v13, 16 }
 0x250   : >> { %v2029_v15 = vadd.f32 %v4669_v60, %v1964_v50  ;;  %v4580_v61 = vpack.c.bf16 %v2097_v21, %v2097_v21  ;;  %v2098_v33 = vmax.f32 %v2070_v51, 0.0 }
 0x251   : >> { %4311 = vst.msk [vmem:[%s6406_s8 + $0x28] sm:$0xf] %vm261_vm0, %v4582_v48  ;;  %v4583_v59 = vpack.c.bf16 %v2100_v30, %v2100_v30  ;;  %v2281_v44 = vrot.slane (%p360_p10), %v2279_v20, 4  ;;  %v5063_v30 = vld [vmem:[#allocation9 + $0x48] sm:$0xff] (%p360_p10)   ;;  %v5067_v20 = vld [vmem:[#allocation9 + $0x50] sm:$0xff] (%p360_p10)  }
 0x252   : >> { %v4780_v14 = vpop.f32.mrb[16].mxu1  ;;  %4309 = vst.msk [vmem:[%s6406_s8 + $0x10] sm:$0xf] %vm261_vm0, %v4580_v61  ;;  %v4581_v39 = vpack.c.bf16 %v2098_v33, %v2098_v33  ;;  %4680 = vmatprep.subr.bf16.mxu0 (%p360_p10), %v5063_v30 }
 0x253   : >> { %v2091_v43 = vadd.f32 %v4780_v14, %v2026_v6  ;;  %v2082_v36 = vpop.f32.mrb[17].mxu1  ;;  %4312 = vst.msk [vmem:[%s6406_s8 + $0x34] sm:$0xf] %vm261_vm0, %v4583_v59  ;;  %v2285_v51 = vor.u32 (%p360_p10), %v2284_v27, %v2281_v44 }
 0x254   : >> { %v2083_v2 = vadd.f32 %v2082_v36, %v2018_v7  ;;  %v4781_v63 = vpop.f32.mrb[18].mxu1  ;;  %4310 = vst.msk [vmem:[%s6406_s8 + $0x1c] sm:$0xf] %vm261_vm0, %v4581_v39 }
 0x255   : >> { %v2103_v42 = vmax.f32 %v2091_v43, 0.0  ;;  %v2094_v45 = vadd.f32 %v4781_v63, %v2029_v15  ;;  %v2085_v41 = vpop.f32.mrb[19].mxu1 }
 0x256   : >> { %v2101_v18 = vmax.f32 %v2083_v2, 0.0  ;;  %v2086_v62 = vadd.f32 %v2085_v41, %v2021_v58  ;;  %362 = sbr.rel (!%p360_p10) target bundleno = 169 (0xa9), region = 111  ;;  %v4338_v41 = vld [vmem:[%s6406_s8 + $0x38] sm:$0x1] (%p360_p10) }
 0x257   : >> { %v4586_v11 = vpack.c.bf16 %v2103_v42, %v2103_v42  ;;  %v2104_v22 = vmax.f32 %v2094_v45, 0.0 }
 0x258   : >> { %v4584_v26 = vpack.c.bf16 %v2101_v18, %v2101_v18  ;;  %v2102_v40 = vmax.f32 %v2086_v62, 0.0  ;;  %v6457_v35 = vld [vmem:[%s6406_s8 + $0x28] sm:$0xf] (%p360_p10) }
 0x259   : >> { %4315 = vst.msk [vmem:[%s6406_s8 + $0x58] sm:$0xf] %vm261_vm0, %v4586_v11  ;;  %v4587_v19 = vpack.c.bf16 %v2104_v22, %v2104_v22  ;;  %v6433_v47 = vld [vmem:[%s6406_s8 + $0x10] sm:$0xf] (%p360_p10)  ;;  %v6463_v52 = vld [vmem:[%s6406_s8 + $0x28] sm:$0xf] (%p360_p10)  ;;  %v4425_v16 = vcombine.low (%p360_p10), %v6457_v35, %v6457_v35 }
 0x25a   : >> { %4313 = vst.msk [vmem:[%s6406_s8 + $0x40] sm:$0xf] %vm261_vm0, %v4584_v26  ;;  %v4585_v9 = vpack.c.bf16 %v2102_v40, %v2102_v40  ;;  %v4392_v56 = vcombine.low (%p360_p10), %v4319_v1, %v6433_v47  ;;  %v4408_v38 = vcombine.low (%p360_p10), %v6433_v47, %v4335_v29  ;;  %v6447_v12 = vld [vmem:[%s6406_s8 + $0x10] sm:$0xf] (%p360_p10)  ;;  %v4379_v5 = vcombine.low (%p360_p10), %v6463_v52, %v6463_v52  ;;  %v6489_v26 = vld [vmem:[%s6406_s8 + $0x34] sm:$0xf] (%p360_p10) }
 0x25b   : >> { %4316 = vst.msk [vmem:[%s6406_s8 + $0x64] sm:$0xf] %vm261_vm0, %v4587_v19  ;;  %v6439_v25 = vld [vmem:[%s6406_s8 + $0x1c] sm:$0xf] (%p360_p10)  ;;  %v4377_v58 = vcombine.low (%p360_p10), %v6447_v12, %v6447_v12  ;;  %v2623_v8 = vshrl.u32 (%p360_p10), %v4425_v16, 16  ;;  %v2626_v34 = vshll.u32 (%p360_p10), %v4425_v16, 16 }
 0x25c   : >> { %4314 = vst.msk [vmem:[%s6406_s8 + $0x4c] sm:$0xf] %vm261_vm0, %v4585_v9  ;;  %2430 = vrot.lane.b32.xlu1 (%p360_p10), %v4392_v56, %s5352_s26  ;;  %v4393_v54 = vcombine.low (%p360_p10), %v4321_v10, %v6439_v25  ;;  %v4409_v7 = vcombine.low (%p360_p10), %v6439_v25, %v4336_v53  ;;  %v6460_v31 = vld [vmem:[%s6406_s8 + $0x1c] sm:$0xf] (%p360_p10)  ;;  %v2542_v49 = vrot.slane (%p360_p10), %v4408_v38, 5  ;;  %v2303_v15 = vshrl.u32 (%p360_p10), %v4379_v5, 16 }
 0x25d   : > { %v4424_v37 = vcombine.low %v6460_v31, %v6460_v31  ;;  %v2287_v46 = vshrl.u32 %v4377_v58, 16  ;;  %v2290_v23 = vshll.u32 %v4377_v58, 16  ;;  %v6474_v0 = vld [vmem:[%s6406_s8 + $0x1c] sm:$0xf]  ;;  %v2625_v24 = vrot.slane %v2623_v8, 4 }
 0x25e   : > { %v2543_v28 = vrot.slane %v4409_v7, 5  ;;  %2550 = vrot.lane.b32.xlu0 %v2542_v49, %s5352_s26  ;;  %v2628_v21 = vrot.slane %v2626_v34, 5  ;;  %v2306_v48 = vshll.u32 %v4379_v5, 16  ;;  %v4378_v14 = vcombine.low %v6474_v0, %v6474_v0  ;;  %v4325_v19 = vld [vmem:[%s6406_s8 + $0x30] sm:$0x8]  ;;  %v5064_v1 = vld [vmem:[#allocation9 + $0xc0] sm:$0xff]  }
 0x25f   : > { %v2615_v50 = vshrl.u32 %v4424_v37, 16  ;;  %v2289_v60 = vrot.slane %v2287_v46, 4  ;;  %v2618_v6 = vshll.u32 %v4424_v37, 16  ;;  %v2292_v57 = vrot.slane %v2290_v23, 5  ;;  %v6496_v9 = vld [vmem:[%s6406_s8 + $0x34] sm:$0xf]  ;;  %4718 = vmatprep.subr.bf16.mxu1 %v5064_v1 }
 0x260   : > { %2432 = vrot.lane.b32.xlu1 %v4393_v54, %s5352_s26  ;;  %v2629_v43 = vor.u32 %v2628_v21, %v2625_v24  ;;  %v2305_v36 = vrot.slane %v2303_v15, 4  ;;  %v2308_v39 = vrot.slane %v2306_v48, 5  ;;  %v2295_v2 = vshrl.u32 %v4378_v14, 16  ;;  %v6500_v56 = vld [vmem:[%s6406_s8 + $0x28] sm:$0xf]  ;;  %v5066_v37 = vld [vmem:[#allocation9 + $0x80] sm:$0xff]  }
 0x261   : > { %v2617_v61 = vrot.slane %v2615_v50, 4  ;;  %v2620_v33 = vrot.slane %v2618_v6, 5  ;;  %v2293_v59 = vor.u32 %v2292_v57, %v2289_v60  ;;  %v2298_v63 = vshll.u32 %v4378_v14, 16  ;;  %v6481_v42 = vld [vmem:[%s6406_s8 + $0x40] sm:$0xf]  ;;  %v5065_v49 = vld [vmem:[#allocation9 + $0x8] sm:$0xff]   ;;  %4719 = vmatpush3.bf16.msra.mxu1 %v5066_v37 }
 0x262   : > { %2342 = vrot.lane.b32.xlu0 %v2285_v51, %s5352_s26  ;;  %v2309_v18 = vor.u32 %v2308_v39, %v2305_v36  ;;  %v2297_v62 = vrot.slane %v2295_v2, 4  ;;  %v4427_v22 = vcombine.low %v6481_v42, %v6481_v42  ;;  %v6492_v40 = vld [vmem:[%s6406_s8 + $0x40] sm:$0xf]  ;;  %v4411_v29 = vcombine.low %v6496_v9, %v4338_v41  ;;  %v4337_v10 = vld [vmem:[%s6406_s8 + $0x2c] sm:$0x1]  ;;  %4681 = vmatpush3.bf16.msra.mxu0 %v5065_v49  ;;  %v5070_v51 = vld [vmem:[#allocation9 + $0x10] sm:$0xff]  }
 0x263   : > { %v2621_v45 = vor.u32 %v2620_v33, %v2617_v61  ;;  %v2300_v11 = vrot.slane %v2298_v63, 5  ;;  %v4426_v38 = vcombine.low %v6489_v26, %v6489_v26  ;;  %v4381_v53 = vcombine.low %v6492_v40, %v6492_v40  ;;  %v6512_v16 = vld [vmem:[%s6406_s8 + $0x34] sm:$0xf]  ;;  %4682 = vmatprep.subr.bf16.mxu0 %v5067_v20  ;;  %v6521_v60 = vld [vmem:[%s6406_s8 + $0x58] sm:$0xf]  ;;  %v5068_v6 = vld [vmem:[#allocation9 + $0xc8] sm:$0xff]  }
 0x264   : > { %2552 = vrot.lane.b32.xlu1 %v2543_v28, %s5352_s26  ;;  %v4395_v13 = vcombine.low %v4325_v19, %v6496_v9  ;;  %v2639_v7 = vshrl.u32 %v4427_v22, 16  ;;  %v2642_v58 = vshll.u32 %v4427_v22, 16  ;;  %v4394_v5 = vcombine.low %v4323_v17, %v6500_v56  ;;  %v5071_v33 = vld [vmem:[#allocation9 + $0x88] sm:$0xff]   ;;  %4720 = vmatprep.subr.bf16.mxu1 %v5068_v6  ;;  %v4339_v36 = vld [vmem:[%s6406_s8 + $0x44] sm:$0x1] }
 0x265   : > { %v2301_v54 = vor.u32 %v2300_v11, %v2297_v62  ;;  %v4410_v4 = vcombine.low %v6500_v56, %v4337_v10  ;;  %v2545_v3 = vrot.slane %v4411_v29, 5  ;;  %v2631_v28 = vshrl.u32 %v4426_v38, 16  ;;  %v6526_v14 = vld [vmem:[%s6406_s8 + $0x4c] sm:$0xf]  ;;  %4721 = vmatpush3.bf16.msra.mxu1 %v5071_v33  ;;  %v4329_v2 = vld [vmem:[%s6406_s8 + $0x48] sm:$0x8] }
 0x266   : > { %2344 = vrot.lane.b32.xlu0 %v2293_v59, %s5352_s26  ;;  %v2634_v46 = vshll.u32 %v4426_v38, 16  ;;  %v2319_v23 = vshrl.u32 %v4381_v53, 16  ;;  %v2641_v8 = vrot.slane %v2639_v7, 4  ;;  %v2644_v34 = vrot.slane %v2642_v58, 5  ;;  %7202 = vst [vmem:[#allocation37_spill] sm:$0xff] %v6526_v14  ;;  %4683 = vmatpush3.bf16.msra.mxu0 %v5070_v51  ;;  %v5072_v59 = vld [vmem:[#allocation9 + $0x58] sm:$0xff]  }
 0x267   : > { %v2322_v50 = vshll.u32 %v4381_v53, 16  ;;  %v4380_v44 = vcombine.low %v6512_v16, %v6512_v16  ;;  %v2544_v27 = vrot.slane %v4410_v4, 5  ;;  %v2633_v57 = vrot.slane %v2631_v28, 4  ;;  %4684 = vmatprep.subr.bf16.mxu0 %v5072_v59  ;;  %v6541_v22 = vld [vmem:[%s6406_s8 + $0x4c] sm:$0xf] }
 0x268   : > { %2680 = vrot.lane.b32.xlu1 %v2629_v43, %s5352_s26  ;;  %v2636_v24 = vrot.slane %v2634_v46, 5  ;;  %v2321_v21 = vrot.slane %v2319_v23, 4  ;;  %v2645_v15 = vor.u32 %v2644_v34, %v2641_v8  ;;  %v4340_v43 = vld [vmem:[%s6406_s8 + $0x50] sm:$0x1]  ;;  %v4429_v63 = vcombine.low %v6521_v60, %v6521_v60  ;;  %v6544_v19 = vld [vmem:[%s6406_s8 + $0x40] sm:$0xf] }
 0x269   : > { %v2324_v48 = vrot.slane %v2322_v50, 5  ;;  %v2311_v30 = vshrl.u32 %v4380_v44, 16  ;;  %v2314_v61 = vshll.u32 %v4380_v44, 16  ;;  %v4428_v11 = vcombine.low %v6526_v14, %v6526_v14  ;;  %v4327_v17 = vld [vmem:[%s6406_s8 + $0x3c] sm:$0x8]  ;;  %v5073_v28 = vld [vmem:[#allocation9 + $0xd0] sm:$0xff]  }
 0x26a   : > { %2678 = vrot.lane.b32.xlu0 %v2621_v45, %s5352_s26  ;;  %v2637_v39 = vor.u32 %v2636_v24, %v2633_v57  ;;  %v6534_v45 = vld [vmem:[%s6406_s8 + $0x58] sm:$0xf]  ;;  %v4413_v29 = vcombine.low %v6541_v22, %v4340_v43  ;;  %v4412_v10 = vcombine.low %v6544_v19, %v4339_v36  ;;  %v2655_v38 = vshrl.u32 %v4429_v63, 16  ;;  %4722 = vmatprep.subr.bf16.mxu1 %v5073_v28  ;;  %v5076_v44 = vld [vmem:[#allocation9 + $0x90] sm:$0xff]   ;;  %v4342_v33 = vld [vmem:[%s6406_s8 + $0x68] sm:$0x1] }
 0x26b   : > { %v2325_v41 = vor.u32 %v2324_v48, %v2321_v21  ;;  %v2316_v62 = vrot.slane %v2314_v61, 5  ;;  %v4383_v1 = vcombine.low %v6534_v45, %v6534_v45  ;;  %v2658_v53 = vshll.u32 %v4429_v63, 16  ;;  %v5075_v34 = vld [vmem:[#allocation9 + $0x18] sm:$0xff]   ;;  %v6563_v24 = vld [vmem:[%s6406_s8 + $0x70] sm:$0xf]  ;;  %v5078_v21 = vld [vmem:[#allocation9 + $0x60] sm:$0xff]   ;;  %4723 = vmatpush3.bf16.msra.mxu1 %v5076_v44 }
 0x26c   : > { %2348 = vrot.lane.b32.xlu1 %v2309_v18, %s5352_s26  ;;  %v2313_v18 = vrot.slane %v2311_v30, 4  ;;  %v4397_v7 = vcombine.low %v4329_v2, %v6541_v22  ;;  %v2647_v58 = vshrl.u32 %v4428_v11, 16  ;;  %v2650_v49 = vshll.u32 %v4428_v11, 16  ;;  %4685 = vmatpush3.bf16.msra.mxu0 %v5075_v34  ;;  %v5079_v30 = vld [vmem:[#allocation9 + $0xd8] sm:$0xff]   ;;  %v5081_v61 = vld [vmem:[#allocation9 + $0x20] sm:$0xff]   ;;  %v5084_v63 = vld [vmem:[#allocation9 + $0x68] sm:$0xff]  }
 0x26d   : > { %v2335_v37 = vshrl.u32 %v4383_v1, 16  ;;  %v2547_v4 = vrot.slane %v4413_v29, 5  ;;  %v2546_v20 = vrot.slane %v4412_v10, 5  ;;  %v4396_v46 = vcombine.low %v4327_v17, %v6544_v19  ;;  %4686 = vmatprep.subr.bf16.mxu0 %v5078_v21  ;;  %v6569_v59 = vld [vmem:[%s6406_s8 + $0x64] sm:$0xf]  ;;  %4724 = vmatprep.subr.bf16.mxu1 %v5079_v30  ;;  %v5082_v43 = vld [vmem:[#allocation9 + $0x98] sm:$0xff]  }
 0x26e   : > { %2346 = vrot.lane.b32.xlu0 %v2301_v54, %s5352_s26  ;;  %v6552_v54 = vld [vmem:[%s6406_s8 + $0x4c] sm:$0xf]  ;;  %v2660_v23 = vrot.slane %v2658_v53, 5  ;;  %v2649_v50 = vrot.slane %v2647_v58, 4  ;;  %v4333_v36 = vld [vmem:[%s6406_s8 + $0x60] sm:$0x8]  ;;  %v4431_v2 = vcombine.low %v6563_v24, %v6563_v24 }
 0x26f   : > { %v4382_v8 = vcombine.low %v6552_v54, %v6552_v54  ;;  %v2337_v6 = vrot.slane %v2335_v37, 4  ;;  %4725 = vmatpush3.bf16.msra.mxu1 %v5082_v43  ;;  %v5087_v17 = vld [vmem:[#allocation9 + $0x28] sm:$0xff]   ;;  %v5088_v10 = vld [vmem:[#allocation9 + $0xa0] sm:$0xff]   ;;  %v6582_v53 = vld [vmem:[%s6406_s8 + $0x58] sm:$0xf] }
 0x270   : > { %2436 = vrot.lane.b32.xlu1 %v4395_v13, %s5352_s26  ;;  %v2317_v13 = vor.u32 %v2316_v62, %v2313_v18  ;;  %4687 = vmatpush3.bf16.msra.mxu0 %v5081_v61  ;;  %v2674_v37 = vshll.u32 %v4431_v2, 16  ;;  %v5093_v28 = vld [vmem:[#allocation9 + $0x30] sm:$0xff]   ;;  %v5094_v34 = vld [vmem:[#allocation9 + $0xa8] sm:$0xff]   ;;  %v4363_v21 = vld [vmem:[%s6406_s8 + $0x44] sm:$0x1] }
 0x271   : > { %v2330_v48 = vshll.u32 %v4382_v8, 16  ;;  %4688 = vmatprep.subr.bf16.mxu0 %v5084_v63  ;;  %v5100_v43 = vld [vmem:[#allocation9 + $0xb0] sm:$0xff]   ;;  %v5104_v63 = vld [vmem:[#allocation9 + $0xb8] sm:$0xff]  }
 0x272   : > { %2434 = vrot.lane.b32.xlu0 %v4394_v5, %s5352_s26  ;;  %v2338_v5 = vshll.u32 %v4383_v1, 16  ;;  %v5085_v1 = vld [vmem:[#allocation9 + $0xe0] sm:$0xff]  }
 0x273   : > { %v2332_v11 = vrot.slane %v2330_v48, 5  ;;  %4726 = vmatprep.subr.bf16.mxu1 %v5085_v1 }
 0x274   : > { %2556 = vrot.lane.b32.xlu1 %v2545_v3, %s5352_s26  ;;  %v2657_v3 = vrot.slane %v2655_v38, 4  ;;  %v2340_v57 = vrot.slane %v2338_v5, 5  ;;  %v4331_v38 = vld [vmem:[%s6406_s8 + $0x54] sm:$0x8]  ;;  %4689 = vmatpush3.bf16.msra.mxu0 %v5087_v17  ;;  %v5090_v5 = vld [vmem:[#allocation9 + $0x70] sm:$0xff]  }
 0x275   : > { %4727 = vmatpush3.bf16.msra.mxu1 %v5088_v10  ;;  %4690 = vmatprep.subr.bf16.mxu0 %v5090_v5  ;;  %v4364_v5 = vld [vmem:[%s6406_s8 + $0x50] sm:$0x1] }
 0x276   : > { %2554 = vrot.lane.b32.xlu0 %v2544_v27, %s5352_s26  ;;  %v2652_v27 = vrot.slane %v2650_v49, 5  ;;  %v2661_v51 = vor.u32 %v2660_v23, %v2657_v3  ;;  %v2341_v18 = vor.u32 %v2340_v57, %v2337_v6  ;;  %v5096_v6 = vld [vmem:[#allocation9 + $0x78] sm:$0xff]   ;;  %v5097_v57 = vld [vmem:[#allocation9 + $0xf0] sm:$0xff]  }
 0x278   : > { %2684 = vrot.lane.b32.xlu1 %v2645_v15, %s5352_s26  ;;  %v2327_v15 = vshrl.u32 %v4382_v8, 16  ;;  %4691 = vmatpush3.bf16.msra.mxu0 %v5093_v28 }
 0x279   : > { %4692 = vmatprep.subr.bf16.mxu0 %v5096_v6 }
 0x27a   : > { %2682 = vrot.lane.b32.xlu0 %v2637_v39, %s5352_s26  ;;  %v6573_v39 = vld [vmem:[%s6406_s8 + $0x64] sm:$0xf]  ;;  %v2329_v62 = vrot.slane %v2327_v15, 4  ;;  %v5099_v15 = vld [vmem:[#allocation9 + $0x38] sm:$0xff]  }
 0x27b   : > { %v4415_v29 = vcombine.low %v6573_v39, %v4342_v33  ;;  %v4399_v49 = vcombine.low %v4333_v36, %v6573_v39  ;;  %v5102_v36 = vld [vmem:[#allocation9 + $0xf8] sm:$0xff]  }
 0x27c   : > { %2352 = vrot.lane.b32.xlu1 %v2325_v41, %s5352_s26  ;;  %v2653_v41 = vor.u32 %v2652_v27, %v2649_v50  ;;  %v2333_v58 = vor.u32 %v2332_v11, %v2329_v62  ;;  %v4398_v50 = vcombine.low %v4331_v38, %v6582_v53  ;;  %v2676_v27 = vrot.slane %v2674_v37, 5  ;;  %4693 = vmatpush3.bf16.msra.mxu0 %v5099_v15  ;;  %v6602_v62 = vld [vmem:[#allocation9 + $0x100] sm:$0xff]  }
 0x27d   : > { %v2549_v3 = vrot.slane %v4415_v29, 5  ;;  %4782 = vmatprep.subr.bf16.mxu0 %v6602_v62  ;;  %v4366_v29 = vld [vmem:[%s6406_s8 + $0x68] sm:$0x1] }
 0x27e   : > { %2350 = vrot.lane.b32.xlu0 %v2317_v13, %s5352_s26  ;;  %v2671_v13 = vshrl.u32 %v4431_v2, 16 }
 0x280   : > { %2440 = vrot.lane.b32.xlu1 %v4397_v7, %s5352_s26  ;;  %v4430_v7 = vcombine.low %v6569_v59, %v6569_v59 }
 0x282   : > { %2438 = vrot.lane.b32.xlu0 %v4396_v46, %s5352_s26  ;;  %v2673_v46 = vrot.slane %v2671_v13, 4  ;;  %v2663_v23 = vshrl.u32 %v4430_v7, 16  ;;  %v2666_v8 = vshll.u32 %v4430_v7, 16  ;;  %v4438_v7 = vcombine.low %v6569_v59, %v4366_v29 }
 0x284   : > { %2560 = vrot.lane.b32.xlu1 %v2547_v4, %s5352_s26  ;;  %v4341_v4 = vld [vmem:[%s6406_s8 + $0x5c] sm:$0x1]  ;;  %v2677_v30 = vor.u32 %v2676_v27, %v2673_v46  ;;  %v2665_v61 = vrot.slane %v2663_v23, 4  ;;  %v2668_v33 = vrot.slane %v2666_v8, 5  ;;  %v2724_v8 = vrot.slane %v4438_v7, 5 }
 0x285   : > { %v4414_v44 = vcombine.low %v6582_v53, %v4341_v4  ;;  %v4365_v4 = vld [vmem:[%s6406_s8 + $0x5c] sm:$0x1] }
 0x286   : > { %2558 = vrot.lane.b32.xlu0 %v2546_v20, %s5352_s26  ;;  %v5091_v20 = vld [vmem:[#allocation9 + $0xe8] sm:$0xff]   ;;  %v4437_v59 = vcombine.low %v6521_v60, %v4365_v4  ;;  %v4478_v15 = vcombine.low %v2724_v8, %v2724_v8 }
 0x287   : > { %4728 = vmatprep.subr.bf16.mxu1 %v5091_v20  ;;  %v2548_v48 = vrot.slane %v4414_v44, 5 }
 0x288   : > { %2688 = vrot.lane.b32.xlu1 %v2661_v51, %s5352_s26  ;;  %4729 = vmatpush3.bf16.msra.mxu1 %v5094_v34  ;;  %v4362_v51 = vld [vmem:[%s6406_s8 + $0x38] sm:$0x1] }
 0x289   : > { %4730 = vmatprep.subr.bf16.mxu1 %v5097_v57  ;;  %v4434_v2 = vcombine.low %v6489_v26, %v4362_v51 }
 0x28a   : > { %2686 = vrot.lane.b32.xlu0 %v2653_v41, %s5352_s26  ;;  %v4435_v41 = vcombine.low %v6481_v42, %v4363_v21 }
 0x28b   : > { %v2720_v11 = vrot.slane %v4434_v2, 5 }
 0x28c   : > { %2356 = vrot.lane.b32.xlu1 %v2341_v18, %s5352_s26  ;;  %4731 = vmatpush3.bf16.msra.mxu1 %v5100_v43  ;;  %v2669_v18 = vor.u32 %v2668_v33, %v2665_v61  ;;  %v2721_v1 = vrot.slane %v4435_v41, 5 }
 0x28d   : > { %4732 = vmatprep.subr.bf16.mxu1 %v5102_v36  ;;  %v4454_v17 = vcombine.low %v2720_v11, %v2720_v11  ;;  %v4457_v10 = vcombine.high %v2720_v11, %v2720_v11  ;;  %v3247_v11 = vshrl.u32 %v4478_v15, 16 }
 0x28e   : > { %2354 = vrot.lane.b32.xlu0 %v2333_v58, %s5352_s26  ;;  %v4460_v38 = vcombine.low %v2721_v1, %v2721_v1  ;;  %v4463_v13 = vcombine.high %v2721_v1, %v2721_v1  ;;  %v4367_v58 = vld [vmem:[%s6406_s8 + $0x74] sm:$0x1] }
 0x28f   : > { %v3096_v37 = vshrl.u32 %v4457_v10, 16  ;;  %v3099_v20 = vshll.u32 %v4457_v10, 16  ;;  %v4439_v23 = vcombine.low %v6563_v24, %v4367_v58 }
 0x290   : > { %2444 = vrot.lane.b32.xlu1 %v4399_v49, %s5352_s26  ;;  %4733 = vmatpush3.bf16.msra.mxu1 %v5104_v63  ;;  %v3091_v49 = vshrl.u32 %v4454_v17, 16  ;;  %v3135_v28 = vshrl.u32 %v4463_v13, 16  ;;  %v3138_v46 = vshll.u32 %v4463_v13, 16 }
 0x291   : > { %4806 = vmatprep.subr.bf16.mxu1 %v6602_v62  ;;  %v3098_v34 = vrot.slane %v3096_v37, 7  ;;  %v2725_v61 = vrot.slane %v4439_v23, 5 }
 0x292   : > { %2442 = vrot.lane.b32.xlu0 %v4398_v50, %s5352_s26  ;;  %v4436_v50 = vcombine.low %v6526_v14, %v4364_v5  ;;  %v4496_v44 = vrot.slane %v3091_v49, 11  ;;  %v3137_v6 = vrot.slane %v3135_v28, 7 }
 0x293   : > { %v3101_v57 = vor.u32 %v3099_v20, %v3098_v34  ;;  %v4484_v41 = vcombine.low %v2725_v61, %v2725_v61  ;;  %v4487_v17 = vcombine.high %v2725_v61, %v2725_v61  ;;  %v4400_v61 = vcombine.low %v6433_v47, %v6433_v47 }
 0x294   : > { %2564 = vrot.lane.b32.xlu1 %v2549_v3, %s5352_s26  ;;  %v3130_v3 = vshrl.u32 %v4460_v38, 16  ;;  %v3140_v21 = vor.u32 %v3138_v46, %v3137_v6  ;;  %v2722_v51 = vrot.slane %v4436_v50, 5 }
 0x295   : > { %v6617_v33 = vsel %vm6166_vm5, %v4496_v44, %v3101_v57  ;;  %v3286_v23 = vshrl.u32 %v4484_v41, 16  ;;  %v3294_v34 = vshll.u32 %v4487_v17, 16  ;;  %v2455_v41 = vshrl.u32 %v4400_v61, 16 }
 0x296   : > { %2562 = vrot.lane.b32.xlu0 %v2548_v48, %s5352_s26  ;;  %v4499_v27 = vrot.slane %v3130_v3, 11  ;;  %v4481_v48 = vcombine.high %v2724_v8, %v2724_v8  ;;  %7203 = vst [vmem:[#allocation38_spill] sm:$0xff] %v6617_v33  ;;  %v4466_v36 = vcombine.low %v2722_v51, %v2722_v51  ;;  %v4469_v2 = vcombine.high %v2722_v51, %v2722_v51 }
 0x297   : > { %v4508_v3 = vrot.slane %v3247_v11, 11  ;;  %v3291_v8 = vshrl.u32 %v4487_v17, 16  ;;  %v4511_v6 = vrot.slane %v3286_v23, 11 }
 0x298   : > { %2692 = vrot.lane.b32.xlu1 %v2677_v30, %s5352_s26  ;;  %v2723_v30 = vrot.slane %v4437_v59, 5  ;;  %v6621_v24 = vsel %vm6166_vm5, %v4499_v27, %v3140_v21  ;;  %v3252_v1 = vshrl.u32 %v4481_v48, 16  ;;  %v3169_v29 = vshrl.u32 %v4466_v36, 16  ;;  %v2168_v36 = vld [vmem:[%s6406_s8 + $0x8] sm:$0x1] }
 0x299   : > { %7204 = vst [vmem:[#allocation39_spill] sm:$0xff] %v6621_v24  ;;  %v3174_v10 = vshrl.u32 %v4469_v2, 16  ;;  %v3177_v38 = vshll.u32 %v4469_v2, 16  ;;  %v3255_v28 = vshll.u32 %v4481_v48, 16  ;;  %v3293_v59 = vrot.slane %v3291_v8, 7 }
 0x29a   : > { %2690 = vrot.lane.b32.xlu0 %v2669_v18, %s5352_s26  ;;  %v4472_v63 = vcombine.low %v2723_v30, %v2723_v30  ;;  %v4475_v18 = vcombine.high %v2723_v30, %v2723_v30  ;;  %v4502_v49 = vrot.slane %v3169_v29, 11  ;;  %v3254_v5 = vrot.slane %v3252_v1, 7  ;;  %v2169_v2 = vld [vmem:[%s6406_s8 + $0x14] sm:$0x1] }
 0x29b   : > { %v3176_v37 = vrot.slane %v3174_v10, 7  ;;  %v3296_v15 = vor.u32 %v3294_v34, %v3293_v59  ;;  %v4384_v11 = vcombine.low %v6443_v55, %v2168_v36  ;;  %v4403_v1 = vcombine.low %v6496_v9, %v6496_v9  ;;  %v6676_v34 = vld [vmem:[%s6406_s8 + $0xc] sm:$0x8] }
 0x29c   : > { %v3208_v13 = vshrl.u32 %v4472_v63, 16  ;;  %v3213_v7 = vshrl.u32 %v4475_v18, 16  ;;  %v3216_v58 = vshll.u32 %v4475_v18, 16  ;;  %v3257_v44 = vor.u32 %v3255_v28, %v3254_v5 }
 0x29d   : > { %v3179_v46 = vor.u32 %v3177_v38, %v3176_v37  ;;  %v6641_v48 = vsel %vm6166_vm5, %v4511_v6, %v3296_v15  ;;  %v4401_v63 = vcombine.low %v6439_v25, %v6439_v25  ;;  %v2458_v18 = vshll.u32 %v4400_v61, 16  ;;  %v2170_v6 = vld [vmem:[%s6406_s8 + $0x20] sm:$0x1]  ;;  %v6687_v15 = vld [vmem:[%s6406_s8 + $0x18] sm:$0x8] }
 0x29e   : > { %v4505_v4 = vrot.slane %v3208_v13, 11  ;;  %v3215_v20 = vrot.slane %v3213_v7, 7  ;;  %v6637_v51 = vsel %vm6166_vm5, %v4508_v3, %v3257_v44  ;;  %7208 = vst [vmem:[#allocation43_spill] sm:$0xff] %v6641_v48  ;;  %v4385_v17 = vcombine.low %v6447_v12, %v2169_v2  ;;  %v6690_v61 = vld [vmem:[%s6406_s8 + $0x24] sm:$0x8] }
 0x29f   : > { %v6627_v27 = vsel %vm6166_vm5, %v4502_v49, %v3179_v46  ;;  %7207 = vst [vmem:[#allocation42_spill] sm:$0xff] %v6637_v51  ;;  %v4402_v29 = vcombine.low %v6500_v56, %v6500_v56  ;;  %v2463_v47 = vshrl.u32 %v4401_v63, 16  ;;  %v2466_v10 = vshll.u32 %v4401_v63, 16  ;;  %v2152_v56 = vld [vmem:[%s6406_s8] sm:$0x8] }
 0x2a0   : > { %v3218_v50 = vor.u32 %v3216_v58, %v3215_v20  ;;  %7205 = vst [vmem:[#allocation40_spill] sm:$0xff] %v6627_v27  ;;  %v4405_v38 = vcombine.low %v6541_v22, %v6541_v22  ;;  %v6659_v13 = vrot.slane %v2455_v41, 4  ;;  %v6661_v25 = vrot.slane %v2458_v18, 5  ;;  %v2171_v58 = vld [vmem:[%s6406_s8 + $0x2c] sm:$0x1] }
 0x2a1   : > { %v2382_v7 = vrot.slane %v4384_v11, 5  ;;  %v2479_v49 = vshrl.u32 %v4403_v1, 16  ;;  %v2482_v9 = vshll.u32 %v4403_v1, 16  ;;  %v6664_v5 = vrot.slane %v4385_v17, 5  ;;  %v2173_v1 = vld [vmem:[%s6406_s8 + $0x44] sm:$0x1] }
 0x2a2   : > { %v6631_v57 = vsel %vm6166_vm5, %v4505_v4, %v3218_v50  ;;  %v2471_v4 = vshrl.u32 %v4402_v29, 16  ;;  %v2474_v20 = vshll.u32 %v4402_v29, 16  ;;  %v4404_v22 = vcombine.low %v6544_v19, %v6544_v19  ;;  %v6679_v50 = vld [vmem:[%s6406_s8 + $0x24] sm:$0x8]  ;;  %v6706_v29 = vld [vmem:[%s6406_s8 + $0x18] sm:$0x8] }
 0x2a3   : > { %7206 = vst [vmem:[#allocation41_spill] sm:$0xff] %v6631_v57  ;;  %v6669_v3 = vrot.slane %v2463_v47, 4  ;;  %v6671_v28 = vrot.slane %v2466_v10, 5  ;;  %v2495_v46 = vshrl.u32 %v4405_v38, 16  ;;  %v2498_v23 = vshll.u32 %v4405_v38, 16 }
 0x2a4   : > { %v4387_v44 = vcombine.low %v6463_v52, %v2171_v58  ;;  %v4368_v19 = vcombine.low %v2152_v56, %v6443_v55  ;;  %v6692_v36 = vrot.slane %v2479_v49, 4  ;;  %v6694_v2 = vrot.slane %v2482_v9, 5  ;;  %v6786_v48 = vld [vmem:[%s6406_s8 + $0x48] sm:$0x8] }
 0x2a5   : > { %v6698_v63 = vcombine.low %v6573_v39, %v6573_v39  ;;  %v6700_v18 = vrot.slane %v2471_v4, 4  ;;  %v6702_v11 = vrot.slane %v2474_v20, 5  ;;  %v2487_v55 = vshrl.u32 %v4404_v22, 16  ;;  %v6726_v4 = vld [vmem:[%s6406_s8 + $0x3c] sm:$0x8]  ;;  %7210 = vst [vmem:[#allocation45_spill] sm:$0xff] %v6786_v48 }
 0x2a6   : > { %v2490_v17 = vshll.u32 %v4404_v22, 16  ;;  %v4386_v47 = vcombine.low %v6474_v0, %v2170_v6  ;;  %v6709_v10 = vrot.slane %v2495_v46, 4  ;;  %v6711_v39 = vrot.slane %v2498_v23, 5  ;;  %v6763_v22 = vld [vmem:[%s6406_s8 + $0x48] sm:$0x8] }
 0x2a7   : > { %v6715_v38 = vcombine.low %v6582_v53, %v6582_v53  ;;  %v2469_v58 = vor.u32 %v6671_v28, %v6669_v3  ;;  %v4369_v49 = vcombine.low %v6676_v34, %v6447_v12  ;;  %v4417_v9 = vcombine.low %v6679_v50, %v6457_v35  ;;  %v6735_v3 = vld [vmem:[%s6406_s8 + $0x30] sm:$0x8]  ;;  %v6738_v12 = vld [vmem:[%s6406_s8 + $0x3c] sm:$0x8]  ;;  %v2172_v28 = vld [vmem:[%s6406_s8 + $0x38] sm:$0x1] }
 0x2a8   : > { %v6723_v56 = vrot.slane %v4387_v44, 5  ;;  %v4416_v20 = vcombine.low %v6687_v15, %v6460_v31  ;;  %v4389_v35 = vcombine.low %v6492_v40, %v2173_v1  ;;  %v6747_v50 = vld [vmem:[%s6406_s8 + $0x30] sm:$0x8]  ;;  %v6749_v44 = vrot.slane %v2487_v55, 4  ;;  %v6754_v15 = vld [vmem:[%s6406_s8 + $0x54] sm:$0x8] }
 0x2a9   : > { %v6751_v6 = vrot.slane %v2490_v17, 5  ;;  %v6758_v21 = vrot.slane %v4386_v47, 5 }
 0x2ce   : > { %v2431_v37 = vpop.permute.xlu1 %2430 }
 0x2cf   : > { %v2753_v1 = vsel %vm943_vm2, %v2382_v7, %v2431_v37  ;;  %v4388_v7 = vcombine.low %v6512_v16, %v2172_v28  ;;  %v6771_v37 = vld [vmem:[%s6406_s8 + $0x54] sm:$0x8] }
 0x2d0   : > { %v6683_v59 = vpop.permute.xlu0 %2550  ;;  %7209 = vst [vmem:[#allocation44_spill] sm:$0xff] %v6771_v37 }
 0x2d1   : > { %v6798_v17 = vrot.slane %v4388_v7, 5  ;;  %v6810_v7 = vld [vmem:[%s6406_s8 + $0x50] sm:$0x1] }
 0x2d2   : > { %v2433_v41 = vpop.permute.xlu1 %2432 }
 0x2d4   : > { %v2343_v46 = vpop.permute.xlu0 %2342 }
 0x2d5   : > { %v2729_v30 = vsel %vm943_vm2, %v4368_v19, %v2343_v46  ;;  %v6777_v46 = vrot.slane %v4389_v35, 5  ;;  %v6789_v19 = vld [vmem:[%s6406_s8 + $0x5c] sm:$0x1]  ;;  %v2756_v35 = vsel %vm943_vm2, %v6664_v5, %v2433_v41 }
 0x2d6   : > { %v2553_v23 = vpop.permute.xlu1 %2552  ;;  %v4443_v34 = vcombine.high %v2729_v30, %v2753_v1  ;;  %v4440_v31 = vcombine.low %v2729_v30, %v2753_v1 }
 0x2d7   : > { %v2780_v28 = vsel %vm943_vm2, %v2469_v58, %v2553_v23 }
 0x2d8   : > { %v2992_v55 = vshrl.u32 %v4443_v34, 16  ;;  %v2345_v53 = vpop.permute.xlu0 %2344  ;;  %v2995_v58 = vshll.u32 %v4443_v34, 16 }
 0x2d9   : > { %v2732_v47 = vsel %vm943_vm2, %v4369_v49, %v2345_v53  ;;  %v2987_v49 = vshrl.u32 %v4440_v31, 16 }
 0x2da   : > { %v2681_v8 = vpop.permute.xlu1 %2680  ;;  %v4446_v43 = vcombine.low %v2732_v47, %v2756_v35  ;;  %v4449_v51 = vcombine.high %v2732_v47, %v2756_v35  ;;  %v2994_v57 = vrot.slane %v2992_v55, 7 }
 0x2db   : > { %v2804_v30 = vsel %vm943_vm2, %v4417_v9, %v2681_v8  ;;  %v7211_v8 = vor.u32 %v6661_v25, %v6659_v13  ;;  %v4390_v13 = vcombine.low %v6552_v54, %v6810_v7  ;;  %v2511_v25 = vshrl.u32 %v6698_v63, 16 }
 0x2dc   : > { %v4450_v27 = vcombine.high %v2780_v28, %v2804_v30  ;;  %v3031_v9 = vshrl.u32 %v4449_v51, 16  ;;  %v2679_v53 = vpop.permute.xlu0 %2678  ;;  %v3026_v55 = vshrl.u32 %v4446_v43, 16  ;;  %v4447_v47 = vcombine.low %v2780_v28, %v2804_v30 }
 0x2dd   : > { %v2777_v41 = vsel %vm943_vm2, %v7211_v8, %v6683_v59  ;;  %v2801_v24 = vsel %vm943_vm2, %v4416_v20, %v2679_v53  ;;  %v3034_v5 = vshll.u32 %v4449_v51, 16  ;;  %v2997_v37 = vor.u32 %v2995_v58, %v2994_v57 }
 0x2de   : > { %v2349_v23 = vpop.permute.xlu1 %2348  ;;  %v3044_v35 = vshrl.u32 %v4450_v27, 16  ;;  %v3033_v1 = vrot.slane %v3031_v9, 7  ;;  %v4441_v33 = vcombine.low %v2777_v41, %v2801_v24  ;;  %v4444_v48 = vcombine.high %v2777_v41, %v2801_v24 }
 0x2df   : > { %v4488_v31 = vrot.slane %v2987_v49, 11  ;;  %v4491_v14 = vrot.slane %v3026_v55, 11  ;;  %v7212_v51 = vcombine.low %v6690_v61, %v6463_v52  ;;  %v3039_v41 = vshrl.u32 %v4447_v47, 16 }
 0x2e0   : > { %v3046_v34 = vrot.slane %v3044_v35, 7  ;;  %v3005_v8 = vshrl.u32 %v4444_v48, 16  ;;  %v2347_v43 = vpop.permute.xlu0 %2346  ;;  %v3036_v30 = vor.u32 %v3034_v5, %v3033_v1  ;;  %v3000_v20 = vshrl.u32 %v4441_v33, 16 }
 0x2e1   : > { %v2738_v24 = vsel %vm943_vm2, %v7212_v51, %v2349_v23  ;;  %v3047_v58 = vshll.u32 %v4450_v27, 16  ;;  %v3008_v49 = vshll.u32 %v4444_v48, 16  ;;  %v2998_v59 = vsel %vm6166_vm5, %v4488_v31, %v2997_v37 }
 0x2e2   : > { %v2437_v28 = vpop.permute.xlu1 %2436  ;;  %v3007_v9 = vrot.slane %v3005_v8, 7  ;;  %v3037_v33 = vsel %vm6166_vm5, %v4491_v14, %v3036_v30  ;;  %v7213_v52 = vcombine.low %v6706_v29, %v6474_v0  ;;  %v4489_v55 = vrot.slane %v3000_v20, 11  ;;  %v6833_v30 = vld [vmem:[#allocation9 + $0x108] sm:$0xff]   ;;  %v4360_v20 = vld [vmem:[%s6406_s8 + $0x20] sm:$0x1] }
 0x2e3   : > { %v2762_v57 = vsel %vm943_vm2, %v6723_v56, %v2437_v28  ;;  %v4512_v56 = vcombine.low %v2998_v59, %v3037_v33  ;;  %v3049_v27 = vor.u32 %v3047_v58, %v3046_v34  ;;  %v4513_v47 = vcombine.high %v2998_v59, %v3037_v33 }
 0x2e4   : > { %v4461_v53 = vcombine.high %v2738_v24, %v2762_v57  ;;  %v4458_v35 = vcombine.low %v2738_v24, %v2762_v57  ;;  %v2735_v61 = vsel %vm943_vm2, %v7213_v52, %v2347_v43  ;;  %v2435_v5 = vpop.permute.xlu0 %2434  ;;  %v3010_v37 = vor.u32 %v3008_v49, %v3007_v9 }
 0x2e5   : > { %v2759_v48 = vsel %vm943_vm2, %v6758_v21, %v2435_v5  ;;  %v4492_v31 = vrot.slane %v3039_v41, 11  ;;  %3706 = vmatprep.mubr.bf16.mxu0 %v4513_v47  ;;  %v2503_v34 = vshrl.u32 %v6715_v38, 16  ;;  %v7214_v59 = vor.u32 %v6694_v2, %v6692_v36  ;;  %v4361_v36 = vld [vmem:[%s6406_s8 + $0x2c] sm:$0x1]  ;;  %v5132_v5 = vld [vmem:[%s6406_s8 + $0x1c] sm:$0xf] }
 0x2e6   : > { %v3109_v1 = vshrl.u32 %v4461_v53, 16  ;;  %v2557_v23 = vpop.permute.xlu1 %2556  ;;  %v4452_v14 = vcombine.low %v2735_v61, %v2759_v48  ;;  %v4455_v28 = vcombine.high %v2735_v61, %v2759_v48  ;;  %v3104_v0 = vshrl.u32 %v4458_v35, 16  ;;  %3707 = vmatmul.mubr.bf16.vlgmr.msra.gmra.mrb[0].mxu0 %v4512_v56 }
 0x2e7   : > { %v3112_v29 = vshll.u32 %v4461_v53, 16  ;;  %v3011_v43 = vsel %vm6166_vm5, %v4489_v55, %v3010_v37  ;;  %v2786_v24 = vsel %vm943_vm2, %v7214_v59, %v2557_v23  ;;  %v3050_v41 = vsel %vm6166_vm5, %v4492_v31, %v3049_v27  ;;  %4783 = vmatpush3.bf16.msra.mxu0 %v6602_v62 }
 0x2e8   : > { %v3111_v8 = vrot.slane %v3109_v1, 7  ;;  %v3065_v51 = vshrl.u32 %v4452_v14, 16  ;;  %v3070_v21 = vshrl.u32 %v4455_v28, 16  ;;  %v2555_v57 = vpop.permute.xlu0 %2554  ;;  %v4514_v53 = vcombine.low %v3011_v43, %v3050_v41  ;;  %4784 = vmatprep.subr.bf16.mxu0 %v6833_v30  ;;  %v6852_v1 = vld [vmem:[#allocation9 + $0x110] sm:$0xff]  }
 0x2e9   : > { %v4515_v49 = vcombine.high %v3011_v43, %v3050_v41  ;;  %v7215_v35 = vcombine.low %v6726_v4, %v6481_v42  ;;  %v3073_v52 = vshll.u32 %v4455_v28, 16  ;;  %v4432_v56 = vcombine.low %v5132_v5, %v4360_v20  ;;  %v5133_v28 = vld [vmem:[%s6406_s8 + $0x28] sm:$0xf] }
 0x2ea   : > { %v2685_v58 = vpop.permute.xlu1 %2684  ;;  %v3114_v9 = vor.u32 %v3112_v29, %v3111_v8  ;;  %v3072_v2 = vrot.slane %v3070_v21, 7  ;;  %v4497_v23 = vrot.slane %v3104_v0, 11  ;;  %v7216_v42 = vcombine.low %v6534_v45, %v6789_v19 }
 0x2eb   : > { %v2810_v33 = vsel %vm943_vm2, %v7215_v35, %v2685_v58  ;;  %3771 = vmatprep.mubr.bf16.mxu1 %v4515_v49  ;;  %v2506_v55 = vshll.u32 %v6715_v38, 16  ;;  %v4494_v48 = vrot.slane %v3065_v51, 11  ;;  %v7217_v37 = vor.u32 %v6702_v11, %v6700_v18  ;;  %4785 = vmatpush3.bf16.msra.mxu0 %v6833_v30  ;;  %v5127_v35 = vld [vmem:[#allocation9 + $0x118] sm:$0xff]  }
 0x2ec   : > { %v4459_v61 = vcombine.low %v2786_v24, %v2810_v33  ;;  %v4462_v27 = vcombine.high %v2786_v24, %v2810_v33  ;;  %v6858_v4 = vrot.slane %v7216_v42, 5  ;;  %v3075_v47 = vor.u32 %v3073_v52, %v3072_v2  ;;  %3772 = vmatmul.mubr.bf16.vlgmr.msra.gmra.mrb[0].mxu1 %v4514_v53  ;;  %v2683_v8 = vpop.permute.xlu0 %2682  ;;  %4786 = vmatprep.subr.bf16.mxu0 %v6852_v1 }
 0x2ed   : > { %v2783_v31 = vsel %vm943_vm2, %v7217_v37, %v2555_v57  ;;  %v4433_v0 = vcombine.low %v5133_v28, %v4361_v36  ;;  %v3115_v29 = vsel %vm6166_vm5, %v4497_v23, %v3114_v9  ;;  %v7218_v20 = vcombine.low %v6735_v3, %v6489_v26  ;;  %4810 = vmatpush3.bf16.msra.mxu1 %v6602_v62 }
 0x2ee   : > { %v2353_v14 = vpop.permute.xlu1 %2352  ;;  %v3117_v19 = vshrl.u32 %v4459_v61, 16  ;;  %v3122_v43 = vshrl.u32 %v4462_v27, 16  ;;  %v3076_v18 = vsel %vm6166_vm5, %v4494_v48, %v3075_v47  ;;  %4807 = vmatprep.subr.bf16.mxu1 %v6833_v30  ;;  %v2718_v59 = vrot.slane %v4432_v56, 5 }
 0x2ef   : > { %v2807_v51 = vsel %vm943_vm2, %v7218_v20, %v2683_v8  ;;  %v3125_v57 = vshll.u32 %v4462_v27, 16  ;;  %v4518_v41 = vcombine.high %v3076_v18, %v3115_v29  ;;  %v4517_v26 = vcombine.low %v3076_v18, %v3115_v29  ;;  %4787 = vmatpush3.bf16.msra.mxu0 %v6852_v1 }
 0x2f0   : > { %v4453_v11 = vcombine.low %v2783_v31, %v2807_v51  ;;  %v4456_v21 = vcombine.high %v2783_v31, %v2807_v51  ;;  %v3124_v24 = vrot.slane %v3122_v43, 7  ;;  %v2351_v9 = vpop.permute.xlu0 %2350  ;;  %v6881_v53 = vrot.slane %v4390_v13, 5  ;;  %4788 = vmatprep.subr.bf16.mxu0 %v5127_v35 }
 0x2f1   : > { %v6885_v49 = vrot.slane %v2511_v25, 4  ;;  %v4498_v33 = vrot.slane %v3117_v19, 11  ;;  %v7219_v2 = vcombine.low %v6738_v12, %v6492_v40  ;;  %3714 = vmatprep.mubr.bf16.mxu0 %v4518_v41  ;;  %4811 = vmatpush3.bf16.msra.mxu1 %v6833_v30  ;;  %v2719_v25 = vrot.slane %v4433_v0, 5 }
 0x2f2   : > { %v3078_v3 = vshrl.u32 %v4453_v11, 16  ;;  %v3083_v58 = vshrl.u32 %v4456_v21, 16  ;;  %v2441_v62 = vpop.permute.xlu1 %2440  ;;  %v3127_v36 = vor.u32 %v3125_v57, %v3124_v24  ;;  %v3086_v13 = vshll.u32 %v4456_v21, 16  ;;  %3715 = vmatmul.mubr.bf16.gmra.mrb[4].mxu0 %v4517_v26  ;;  %4808 = vmatprep.subr.bf16.mxu1 %v6852_v1 }
 0x2f3   : > { %v2744_v52 = vsel %vm943_vm2, %v7219_v2, %v2353_v14  ;;  %v2768_v61 = vsel %vm943_vm2, %v6777_v46, %v2441_v62  ;;  %v7220_v40 = vshll.u32 %v6698_v63, 16  ;;  %v4442_v23 = vcombine.low %v2718_v59, %v2718_v59  ;;  %4789 = vmatpush3.bf16.msra.mxu0 %v5127_v35 }
 0x2f4   : > { %v3085_v7 = vrot.slane %v3083_v58, 7  ;;  %v4473_v5 = vcombine.high %v2744_v52, %v2768_v61  ;;  %v3128_v56 = vsel %vm6166_vm5, %v4498_v33, %v3127_v36  ;;  %v6902_v46 = vcombine.high %v2718_v59, %v2718_v59  ;;  %v2439_v47 = vpop.permute.xlu0 %2438 }
 0x2f5   : > { %v6899_v12 = vrot.slane %v7220_v40, 5  ;;  %v4495_v30 = vrot.slane %v3078_v3, 11  ;;  %v4470_v42 = vcombine.low %v2744_v52, %v2768_v61  ;;  %v7221_v31 = vcombine.low %v6747_v50, %v6512_v16  ;;  %4812 = vmatpush3.bf16.msra.mxu1 %v6852_v1 }
 0x2f6   : > { %v3088_v27 = vor.u32 %v3086_v13, %v3085_v7  ;;  %v3187_v48 = vshrl.u32 %v4473_v5, 16  ;;  %v2561_v37 = vpop.permute.xlu1 %2560  ;;  %v2765_v63 = vsel %vm943_vm2, %v6798_v17, %v2439_v47  ;;  %v6912_v14 = vrot.slane %v2503_v34, 4  ;;  %4809 = vmatprep.subr.bf16.mxu1 %v5127_v35 }
 0x2f7   : > { %v2741_v8 = vsel %vm943_vm2, %v7221_v31, %v2351_v9  ;;  %v6914_v28 = vrot.slane %v2506_v55, 5  ;;  %v4448_v19 = vcombine.low %v2719_v25, %v2719_v25  ;;  %v6919_v16 = vcombine.high %v2719_v25, %v2719_v25  ;;  %v7225_v25 = vld [vmem:[#allocation37_spill] sm:$0xff] }
 0x2f8   : > { %v3089_v0 = vsel %vm6166_vm5, %v4495_v30, %v3088_v27  ;;  %v4464_v29 = vcombine.low %v2741_v8, %v2765_v63  ;;  %v3189_v50 = vrot.slane %v3187_v48, 7  ;;  %v4467_v43 = vcombine.high %v2741_v8, %v2765_v63  ;;  %v2559_v51 = vpop.permute.xlu0 %2558 }
 0x2f9   : > { %v4520_v20 = vcombine.high %v3089_v0, %v3128_v56  ;;  %v4519_v17 = vcombine.low %v3089_v0, %v3128_v56  ;;  %v3182_v38 = vshrl.u32 %v4470_v42, 16  ;;  %v3190_v34 = vshll.u32 %v4473_v5, 16  ;;  %4813 = vmatpush3.bf16.msra.mxu1 %v5127_v35  ;;  %v4358_v0 = vld [vmem:[%s6406_s8 + $0x6c] sm:$0x8] }
 0x2fa   : > { %v2689_v55 = vpop.permute.xlu1 %2688  ;;  %v6921_v18 = vshrl.u32 %v4442_v23, 16  ;;  %v3018_v1 = vshrl.u32 %v6902_v46, 16  ;;  %v3143_v11 = vshrl.u32 %v4464_v29, 16  ;;  %v3148_v21 = vshrl.u32 %v4467_v43, 16  ;;  %v7227_v29 = vld [vmem:[#allocation44_spill] sm:$0xff] }
 0x2fb   : > { %v7222_v59 = vor.u32 %v6711_v39, %v6709_v10  ;;  %3779 = vmatprep.mubr.bf16.mxu1 %v4520_v20  ;;  %v7223_v57 = vcombine.low %v6754_v15, %v6521_v60  ;;  %v3021_v58 = vshll.u32 %v6902_v46, 16  ;;  %v6933_v9 = vshrl.u32 %v4448_v19, 16 }
 0x2fc   : > { %3780 = vmatmul.mubr.bf16.gmra.mrb[4].mxu1 %v4519_v17  ;;  %v3192_v62 = vor.u32 %v3190_v34, %v3189_v50  ;;  %v3150_v33 = vrot.slane %v3148_v21, 7  ;;  %v3151_v36 = vshll.u32 %v4467_v43, 16  ;;  %v3057_v10 = vshrl.u32 %v6919_v16, 16  ;;  %v2687_v61 = vpop.permute.xlu0 %2686 }
 0x2fd   : > { %v2792_v24 = vsel %vm943_vm2, %v7222_v59, %v2561_v37  ;;  %v2816_v41 = vsel %vm943_vm2, %v7223_v57, %v2689_v55  ;;  %v4503_v39 = vrot.slane %v3182_v38, 11  ;;  %v3060_v15 = vshll.u32 %v6919_v16, 16 }
 0x2fe   : > { %v4471_v26 = vcombine.low %v2792_v24, %v2816_v41  ;;  %v4474_v3 = vcombine.high %v2792_v24, %v2816_v41  ;;  %v2357_v60 = vpop.permute.xlu1 %2356  ;;  %v4500_v35 = vrot.slane %v3143_v11, 11  ;;  %v3153_v7 = vor.u32 %v3151_v36, %v3150_v33 }
 0x2ff   : > { %v7224_v13 = vor.u32 %v6751_v6, %v6749_v44  ;;  %v7226_v56 = vcombine.low %v6763_v22, %v7225_v25  ;;  %v3193_v42 = vsel %vm6166_vm5, %v4503_v39, %v3192_v62  ;;  %v3020_v47 = vrot.slane %v3018_v1, 7 }
 0x300   : > { %v3195_v2 = vshrl.u32 %v4471_v26, 16  ;;  %v3200_v52 = vshrl.u32 %v4474_v3, 16  ;;  %v3203_v46 = vshll.u32 %v4474_v3, 16  ;;  %v3154_v48 = vsel %vm6166_vm5, %v4500_v35, %v3153_v7  ;;  %v2355_v8 = vpop.permute.xlu0 %2354  ;;  %v7229_v3 = vld [vmem:[#allocation45_spill] sm:$0xff] }
 0x301   : > { %v2789_v5 = vsel %vm943_vm2, %v7224_v13, %v2559_v51  ;;  %v2813_v40 = vsel %vm943_vm2, %v7226_v56, %v2687_v61  ;;  %v3059_v44 = vrot.slane %v3057_v10, 7  ;;  %v7228_v19 = vcombine.low %v7227_v29, %v6534_v45  ;;  %v5134_v45 = vld [vmem:[%s6406_s8 + $0x70] sm:$0xf] }
 0x302   : > { %v3202_v23 = vrot.slane %v3200_v52, 7  ;;  %v4465_v30 = vcombine.low %v2789_v5, %v2813_v40  ;;  %v4468_v27 = vcombine.high %v2789_v5, %v2813_v40  ;;  %v4504_v6 = vrot.slane %v3195_v2, 11  ;;  %v2445_v63 = vpop.permute.xlu1 %2444  ;;  %v5135_v5 = vld [vmem:[%s6406_s8 + $0x64] sm:$0xf] }
 0x303   : > { %v2750_v16 = vsel %vm943_vm2, %v7228_v19, %v2357_v60  ;;  %v4523_v50 = vcombine.high %v3154_v48, %v3193_v42  ;;  %v2774_v43 = vsel %vm943_vm2, %v6858_v4, %v2445_v63  ;;  %v4522_v20 = vcombine.low %v3154_v48, %v3193_v42 }
 0x304   : > { %v3205_v37 = vor.u32 %v3203_v46, %v3202_v23  ;;  %v3156_v31 = vshrl.u32 %v4465_v30, 16  ;;  %v3161_v22 = vshrl.u32 %v4468_v27, 16  ;;  %v3164_v34 = vshll.u32 %v4468_v27, 16  ;;  %v2443_v4 = vpop.permute.xlu0 %2442 }
 0x305   : > { %v4482_v51 = vcombine.low %v2750_v16, %v2774_v43  ;;  %3722 = vmatprep.mubr.bf16.mxu0 %v4523_v50  ;;  %v4485_v55 = vcombine.high %v2750_v16, %v2774_v43  ;;  %v2517_v1 = vor.u32 %v6899_v12, %v6885_v49  ;;  %v4423_v11 = vcombine.low %v4358_v0, %v5134_v45  ;;  %v4356_v12 = vld [vmem:[%s6406_s8 + $0x60] sm:$0x8] }
 0x306   : > { %v3206_v17 = vsel %vm6166_vm5, %v4504_v6, %v3205_v37  ;;  %v3163_v38 = vrot.slane %v3161_v22, 7  ;;  %v4490_v21 = vrot.slane %v6921_v18, 11  ;;  %v4501_v59 = vrot.slane %v3156_v31, 11  ;;  %3723 = vmatmul.mubr.bf16.gmra.mrb[8].mxu0 %v4522_v20  ;;  %v2565_v57 = vpop.permute.xlu1 %2564 }
 0x307   : > { %v3023_v41 = vor.u32 %v3021_v58, %v3020_v47  ;;  %v4493_v26 = vrot.slane %v6933_v9, 11  ;;  %v7230_v62 = vcombine.low %v7229_v3, %v6552_v54  ;;  %v3265_v36 = vshrl.u32 %v4485_v55, 16  ;;  %v7234_v3 = vld [vmem:[#allocation40_spill] sm:$0xff] }
 0x308   : > { %v3166_v24 = vor.u32 %v3164_v34, %v3163_v38  ;;  %v2771_v49 = vsel %vm943_vm2, %v6881_v53, %v2443_v4  ;;  %v3062_v18 = vor.u32 %v3060_v15, %v3059_v44  ;;  %v3260_v39 = vshrl.u32 %v4482_v51, 16  ;;  %v2563_v7 = vpop.permute.xlu0 %2562 }
 0x309   : > { %v2747_v33 = vsel %vm943_vm2, %v7230_v62, %v2355_v8  ;;  %v3267_v52 = vrot.slane %v3265_v36, 7  ;;  %v3268_v9 = vshll.u32 %v4485_v55, 16  ;;  %v4422_v25 = vcombine.low %v4356_v12, %v5135_v5  ;;  %v7235_v62 = vld [vmem:[#allocation41_spill] sm:$0xff]  ;;  %v7237_v36 = vld [vmem:[#allocation42_spill] sm:$0xff] }
 0x30a   : > { %v3167_v10 = vsel %vm6166_vm5, %v4501_v59, %v3166_v24  ;;  %v4476_v2 = vcombine.low %v2747_v33, %v2771_v49  ;;  %v4479_v58 = vcombine.high %v2747_v33, %v2771_v49  ;;  %v2693_v13 = vpop.permute.xlu1 %2692  ;;  %v2798_v53 = vsel %vm943_vm2, %v2517_v1, %v2565_v57  ;;  %v7231_v57 = vld [vmem:[#allocation38_spill] sm:$0xff]  ;;  %v7238_v49 = vld [vmem:[#allocation43_spill] sm:$0xff] }
 0x30b   : > { %v4525_v61 = vcombine.high %v3167_v10, %v3206_v17  ;;  %v4524_v60 = vcombine.low %v3167_v10, %v3206_v17  ;;  %v3270_v56 = vor.u32 %v3268_v9, %v3267_v52  ;;  %v2509_v15 = vor.u32 %v6914_v28, %v6912_v14 }
 0x30c   : > { %v3221_v54 = vshrl.u32 %v4476_v2, 16  ;;  %v3226_v35 = vshrl.u32 %v4479_v58, 16  ;;  %v2822_v40 = vsel %vm943_vm2, %v4423_v11, %v2693_v13  ;;  %v3229_v46 = vshll.u32 %v4479_v58, 16  ;;  %v2691_v14 = vpop.permute.xlu0 %2690 }
 0x30d   : > { %3787 = vmatprep.mubr.bf16.mxu1 %v4525_v61  ;;  %v4483_v30 = vcombine.low %v2798_v53, %v2822_v40  ;;  %v4486_v27 = vcombine.high %v2798_v53, %v2822_v40  ;;  %v4509_v42 = vrot.slane %v3260_v39, 11  ;;  %v3024_v48 = vsel %vm6166_vm5, %v4490_v21, %v3023_v41  ;;  %v7232_v41 = vld [vmem:[#allocation39_spill] sm:$0xff] }
 0x30e   : > { %v3228_v23 = vrot.slane %v3226_v35, 7  ;;  %3788 = vmatmul.mubr.bf16.gmra.mrb[8].mxu1 %v4524_v60  ;;  %v3063_v47 = vsel %vm6166_vm5, %v4493_v26, %v3062_v18  ;;  %v4506_v44 = vrot.slane %v3221_v54, 11  ;;  %v2795_v22 = vsel %vm943_vm2, %v2509_v15, %v2563_v7 }
 0x30f   : > { %v3273_v37 = vshrl.u32 %v4483_v30, 16  ;;  %v3278_v31 = vshrl.u32 %v4486_v27, 16  ;;  %v3271_v28 = vsel %vm6166_vm5, %v4509_v42, %v3270_v56  ;;  %v2819_v8 = vsel %vm943_vm2, %v4422_v25, %v2691_v14 }
 0x310   : > { %v3231_v6 = vor.u32 %v3229_v46, %v3228_v23  ;;  %v3281_v29 = vshll.u32 %v4486_v27, 16  ;;  %v4477_v19 = vcombine.low %v2795_v22, %v2819_v8  ;;  %v4480_v16 = vcombine.high %v2795_v22, %v2819_v8 }
 0x311   : > { %v3280_v0 = vrot.slane %v3278_v31, 7  ;;  %v4516_v20 = vcombine.low %v3024_v48, %v3063_v47  ;;  %v4510_v17 = vrot.slane %v3273_v37, 11  ;;  %v7233_v26 = vcombine.low %v7231_v57, %v7232_v41 }
 0x312   : > { %v3232_v63 = vsel %vm6166_vm5, %v4506_v44, %v3231_v6  ;;  %v3234_v34 = vshrl.u32 %v4477_v19, 16  ;;  %v3239_v51 = vshrl.u32 %v4480_v16, 16  ;;  %v3242_v45 = vshll.u32 %v4480_v16, 16 }
 0x313   : > { %v4528_v50 = vcombine.high %v3232_v63, %v3271_v28  ;;  %v4527_v43 = vcombine.low %v3232_v63, %v3271_v28  ;;  %v3283_v38 = vor.u32 %v3281_v29, %v3280_v0  ;;  %v7236_v33 = vcombine.low %v7234_v3, %v7235_v62 }
 0x314   : > { %v3241_v1 = vrot.slane %v3239_v51, 7  ;;  %v4507_v11 = vrot.slane %v3234_v34, 11  ;;  %v7239_v12 = vcombine.low %v7237_v36, %v7238_v49 }
 0x315   : > { %3730 = vmatprep.mubr.bf16.mxu0 %v4528_v50  ;;  %v3284_v55 = vsel %vm6166_vm5, %v4510_v17, %v3283_v38 }
 0x316   : > { %3731 = vmatmul.mubr.bf16.gmra.mrb[12].mxu0 %v4527_v43  ;;  %v3244_v21 = vor.u32 %v3242_v45, %v3241_v1 }
 0x317   : > { %4790 = vmatprep.mubr.msk.bf16.mxu0 %vm943_vm2, %v4516_v20 }
 0x318   : > { %v3245_v59 = vsel %vm6166_vm5, %v4507_v11, %v3244_v21 }
 0x319   : > { %v4530_v24 = vcombine.high %v3245_v59, %v3284_v55  ;;  %v4529_v4 = vcombine.low %v3245_v59, %v3284_v55 }
 0x31b   : > { %3795 = vmatprep.mubr.bf16.mxu1 %v4530_v24 }
 0x31c   : > { %3796 = vmatmul.mubr.bf16.gmra.mrb[12].mxu1 %v4529_v4 }
 0x31d   : > { %4794 = vmatprep.mubr.msk.bf16.mxu1 %vm943_vm2, %v7236_v33 }
 0x31e   : > { %4791 = vmatmul.mubr.msk.bf16.vlgmr.msra.gmra.mrb[16].mxu0 %vm943_vm2, %v7233_v26 }
 0x324   : > { %4795 = vmatmul.mubr.msk.bf16.vlgmr.msra.gmra.mrb[16].mxu1 %vm943_vm2, %v7239_v12 }
 0x3b9   : > { %v4694_v32 = vpop.f32.mrb[0].mxu0 }
 0x3ba   : > { %v4695_v18 = vpop.f32.mrb[1].mxu0 }
 0x3bb   : > { %v4696_v10 = vadd.f32 %v4695_v18, %v4694_v32  ;;  %v4697_v39 = vpop.f32.mrb[2].mxu0 }
 0x3bc   : > { %v4698_v2 = vpop.f32.mrb[3].mxu0 }
 0x3bd   : > { %v4699_v58 = vadd.f32 %v4698_v2, %v4697_v39 }
 0x3bf   : > { %v4734_v52 = vpop.f32.mrb[0].mxu1 }
 0x3c0   : > { %v4735_v9 = vpop.f32.mrb[1].mxu1 }
 0x3c1   : > { %v4736_v61 = vadd.f32 %v4735_v9, %v4734_v52  ;;  %v4737_v60 = vpop.f32.mrb[2].mxu1 }
 0x3c2   : > { %v4738_v54 = vpop.f32.mrb[3].mxu1 }
 0x3c3   : > { %v4739_v35 = vadd.f32 %v4738_v54, %v4737_v60  ;;  %v3774_v7 = vadd.f32 %v4736_v61, %v4696_v10 }
 0x3c5   : > { %v4700_v13 = vpop.f32.mrb[4].mxu0  ;;  %v3777_v5 = vadd.f32 %v4739_v35, %v4699_v58 }
 0x3c6   : > { %v4701_v25 = vpop.f32.mrb[5].mxu0 }
 0x3c7   : > { %v4702_v56 = vadd.f32 %v4701_v25, %v4700_v13  ;;  %v4703_v53 = vpop.f32.mrb[6].mxu0 }
 0x3c8   : > { %v4704_v15 = vpop.f32.mrb[7].mxu0 }
 0x3c9   : > { %v4705_v40 = vadd.f32 %v4704_v15, %v4703_v53 }
 0x3cf   : > { %v4740_v23 = vpop.f32.mrb[4].mxu1 }
 0x3d0   : > { %v4741_v46 = vpop.f32.mrb[5].mxu1 }
 0x3d1   : > { %v4742_v30 = vadd.f32 %v4741_v46, %v4740_v23  ;;  %v4743_v27 = vpop.f32.mrb[6].mxu1 }
 0x3d2   : > { %v4744_v42 = vpop.f32.mrb[7].mxu1 }
 0x3d3   : > { %v4745_v48 = vadd.f32 %v4744_v42, %v4743_v27  ;;  %v3782_v47 = vadd.f32 %v4742_v30, %v4702_v56 }
 0x3d5   : > { %v3785_v44 = vadd.f32 %v4745_v48, %v4705_v40 }
 0x3d9   : > { %v4706_v6 = vpop.f32.mrb[8].mxu0 }
 0x3da   : > { %v4707_v37 = vpop.f32.mrb[9].mxu0 }
 0x3db   : > { %v4708_v31 = vadd.f32 %v4707_v37, %v4706_v6  ;;  %v4709_v14 = vpop.f32.mrb[10].mxu0 }
 0x3dc   : > { %v4710_v28 = vpop.f32.mrb[11].mxu0 }
 0x3dd   : > { %v4711_v22 = vadd.f32 %v4710_v28, %v4709_v14 }
 0x3e1   : > { %v4746_v8 = vpop.f32.mrb[8].mxu1 }
 0x3e2   : > { %v4747_v63 = vpop.f32.mrb[9].mxu1 }
 0x3e3   : > { %v4748_v0 = vadd.f32 %v4747_v63, %v4746_v8  ;;  %v4749_v29 = vpop.f32.mrb[10].mxu1 }
 0x3e4   : > { %v4750_v19 = vpop.f32.mrb[11].mxu1 }
 0x3e5   : > { %v4751_v16 = vadd.f32 %v4750_v19, %v4749_v29  ;;  %v3790_v50 = vadd.f32 %v4748_v0, %v4708_v31 }
 0x3e7   : > { %v3793_v43 = vadd.f32 %v4751_v16, %v4711_v22 }
 0x3e9   : > { %v4712_v20 = vpop.f32.mrb[12].mxu0 }
 0x3ea   : > { %v4713_v17 = vpop.f32.mrb[13].mxu0 }
 0x3eb   : > { %v4714_v38 = vadd.f32 %v4713_v17, %v4712_v20  ;;  %v4715_v34 = vpop.f32.mrb[14].mxu0 }
 0x3ec   : > { %v4716_v51 = vpop.f32.mrb[15].mxu0 }
 0x3ed   : > { %v4717_v55 = vadd.f32 %v4716_v51, %v4715_v34 }
 0x3ef   : > { %v4752_v45 = vpop.f32.mrb[12].mxu1 }
 0x3f0   : > { %v4753_v59 = vpop.f32.mrb[13].mxu1 }
 0x3f1   : > { %v4792_v1 = vpop.f32.mrb[16].mxu0  ;;  %v4754_v57 = vadd.f32 %v4753_v59, %v4752_v45  ;;  %v4755_v41 = vpop.f32.mrb[14].mxu1 }
 0x3f2   : > { %v3847_v11 = vadd.f32 %v4792_v1, %v3782_v47  ;;  %v3838_v21 = vpop.f32.mrb[17].mxu0  ;;  %v4756_v62 = vpop.f32.mrb[15].mxu1 }
 0x3f3   : > { %v3839_v24 = vadd.f32 %v3838_v21, %v3774_v7  ;;  %v4793_v4 = vpop.f32.mrb[18].mxu0  ;;  %v4757_v36 = vadd.f32 %v4756_v62, %v4755_v41  ;;  %v3798_v49 = vadd.f32 %v4754_v57, %v4714_v38 }
 0x3f4   : > { %3871 = vst.msk [vmem:[%s5677_s21 + $0x10] sm:$0xff] %vm323_vm1, %v3847_v11  ;;  %v3850_v26 = vadd.f32 %v4793_v4, %v3785_v44  ;;  %v3841_v3 = vpop.f32.mrb[19].mxu0 }
 0x3f5   : > { %3869 = vst.msk [vmem:[%s5677_s21] sm:$0xff] %vm323_vm1, %v3839_v24  ;;  %v3842_v33 = vadd.f32 %v3841_v3, %v3777_v5  ;;  %v3801_v12 = vadd.f32 %v4757_v36, %v4717_v55 }
 0x3f6   : > { %3872 = vst.msk [vmem:[%s5677_s21 + $0x18] sm:$0xff] %vm323_vm1, %v3850_v26 }
 0x3f7   : > { %3870 = vst.msk [vmem:[%s5677_s21 + $0x8] sm:$0xff] %vm323_vm1, %v3842_v33  ;;  %v4796_v32 = vpop.f32.mrb[16].mxu1 }
 0x3f8   : > { %v3863_v18 = vadd.f32 %v4796_v32, %v3798_v49  ;;  %v3854_v10 = vpop.f32.mrb[17].mxu1 }
 0x3f9   : > { %v3855_v39 = vadd.f32 %v3854_v10, %v3790_v50  ;;  %v4797_v2 = vpop.f32.mrb[18].mxu1 }
 0x3fa   : > { %3875 = vst.msk [vmem:[%s5677_s21 + $0x30] sm:$0xff] %vm323_vm1, %v3863_v18  ;;  %v3866_v58 = vadd.f32 %v4797_v2, %v3801_v12  ;;  %v3857_v52 = vpop.f32.mrb[19].mxu1 }
 0x3fb   : > { %3873 = vst.msk [vmem:[%s5677_s21 + $0x20] sm:$0xff] %vm323_vm1, %v3855_v39  ;;  %v3858_v9 = vadd.f32 %v3857_v52, %v3793_v43 }
 0x3fc   : > { %3876 = vst.msk [vmem:[%s5677_s21 + $0x38] sm:$0xff] %vm323_vm1, %v3866_v58 }
 0x3fd   : > { %3874 = vst.msk [vmem:[%s5677_s21 + $0x28] sm:$0xff] %vm323_vm1, %v3858_v9 }
 0x3fe   : > { %5263 = shalt.err (!%p5260_p9)
}
 0x3ff   : > { %s5264_s21 = scalar_lea.hbm %s7019_s9, 1024  ;;  %s5268_s6 = scalar_lea.hbm %s7075_s4, 2048 }
 0x400   : > { %p5265_p0 = scmp.ne.s32.totalorder %s7019_s9, %s5264_s21  ;;  %p5269_p13 = scmp.lt.u32.totalorder %s7019_s9, %s7075_s4 }
 0x401   : > { %p5270_p6 = scmp.lt.u32.totalorder %s5268_s6, %s5264_s21  ;;  %p5272_p3 = scmp.lt.u32.totalorder %s5264_s21, %s7019_s9 }
 0x402   : > { %p5266_p11 = pnand %p5265_p0, %p5529_p5 }
 0x403   : > { %p5271_p10 = por %p5270_p6, %p5269_p13 }
 0x404   : > { %p5267_p8 = pneg %p5266_p11 }
 0x405   : > { %p5273_p7 = por %p5272_p3, %p5271_p10 }
 0x407   : > { %p5274_p12 = pnand %p5273_p7, %p5267_p8 }
 0x409   : > { %5277 = shalt.err (!%p5274_p12)
}
 0x40a   : > { %s5354_s26 = smov 128   ;;  %s5355_s29 = smov 8  }
 0x40b   : > { %4828 = dma.vmem_to_hbm [thread:$0]  (%p5529_p5), %s7021_s30, 1024, %s7019_s9, %s3878_s19, %s5354_s26, %s5354_s26, %s5355_s29  }
 0x40c PF: > { %s3906_s23 = sand.u32 1, %s5320_s15   ;;  %p7240_p1 = scmp.ne.s32.totalorder %s7113_s22, 0 }
 0x40d   : > { %p7241_p2 = scmp.ge.s32.totalorder %s5332_s18, 2  ;;  %s3907_s13 = scalar_lea.sflag [#allocation5], %s3906_s23 }
 0x40f   : > { %p4845_p4 = pnand %p7241_p2, %p7240_p1 }
 0x411   : > { %5315 = dma.done.wait (!%p4845_p4), %s3907_s13, 1024  }
 0x412   : > { %5317 = vsyncadd (!%p4845_p4), %s3907_s13, 4294966272  ;;  %p19_p9 = scmp.ge.s32.totalorder %s5494_s27, 4   ;;  %s7242_s15 = smov %s5324_s16 }
 0x413   : > { %s7243_s16 = smov %s5328_s17  ;;  %s7244_s17 = smov %s5525_s11 }
 0x414   : > { %s7245_s18 = smov %s5494_s27  ;;  %21 = sbr.rel (!%p19_p9) target bundleno = 7 (0x7), region = 122 }
 0x41b   :  { %3912 = vsyncpa [#allocation4], 1 }
 0x41c   :  { %3914 = vsyncpa [#allocation4 + $0x1], 1 }
 0x41d   :  { %3915 = vsyncpa [#allocation7], 1 }
 0x41e   :  { %3916 = vsyncpa [#allocation10], 1 }
 0x41f   :  { %3917 = vsyncpa [#allocation5], 1 }
 0x420   :  { %3919 = vsyncpa [#allocation5 + $0x1], 1 }

</bundles_post_ra>
